<compile_context>
chip_gen: v7x
topology: tpu7x:2x2x1
jax: 0.10.0
libtpu: 0.0.40
codegen_flags: <defaults>
</compile_context>

<pallas_src>
import functools

import numpy as np
import jax
import jax.numpy as jnp
from jax import lax
from jax.experimental import pallas as pl
from jax.experimental.pallas import tpu as pltpu

CLAMP_MAX = 0.0014163791202008724


# ----------------------------- host-side helpers ---------------------------

def _tap_masks(n_images, H, W):
    """(9, n_images*H*W) float32 validity masks for the 3x3 taps (dy, dx).

    Lane index m = img * H*W + y*W + x.  mask[t, m] == 1 iff (y+dy, x+dx) is a
    valid in-image position.  Because every cross-image (coil/batch) leak of a
    lane shift happens at a masked position, images can be safely concatenated
    along the lane axis.
    """
    N = H * W
    n = np.arange(n_images * N, dtype=np.int64) % N
    yy = n // W
    xx = n % W
    masks = []
    for dy in (-1, 0, 1):
        for dx in (-1, 0, 1):
            valid = ((yy + dy >= 0) & (yy + dy < H) &
                     (xx + dx >= 0) & (xx + dx < W))
            masks.append(valid.astype(np.float32))
    return np.stack(masks, axis=0)


def _prep_conv(w, b):
    """HWIO (3,3,Cin,Cout) -> transposed matmul weights (Cout, 9*Cin), (Cout,1)."""
    kh, kw, cin, cout = w.shape
    wt = jnp.transpose(w.reshape(kh * kw * cin, cout))
    return wt, b.reshape(cout, 1)


def ifft2c(x):
    # ifft2c_new: centered orthonormal 2D inverse FFT on (..., H, W, 2) real/imag.
    # TODO(synk): FFT has no Pallas primitive; computed with jnp.fft (XLA).
    xc = x[..., 0] + 1j * x[..., 1]
    xc = jnp.fft.ifftshift(xc, axes=(-2, -1))
    xc = jnp.fft.ifft2(xc, axes=(-2, -1), norm="ortho")
    xc = jnp.fft.fftshift(xc, axes=(-2, -1))
    return jnp.stack([jnp.real(xc), jnp.imag(xc)], axis=-1).astype(x.dtype)


# ----------------------------- in-kernel helpers ----------------------------

def _shift_lanes(x, s):
    """y[:, m] = x[:, m + s], zero-filled outside the array (lane axis)."""
    if s == 0:
        return x
    cin, L = x.shape
    if s > 0:
        pad = jnp.zeros((cin, s), x.dtype)
        return jnp.concatenate([x[:, s:], pad], axis=1)
    pad = jnp.zeros((cin, -s), x.dtype)
    return jnp.concatenate([pad, x[:, :L + s]], axis=1)


def _conv3x3_lanes(x, w_ref, b_ref, mask_ref, col_ref, W, relu):
    """'Same' 3x3 conv on lane-flattened images.

    x: (Cin, L) with L = n_images*H*W.  Builds the im2col block (9*Cin, L) in
    the VMEM scratch `col_ref` (lane-shifted + boundary-masked copies), then a
    single K-packed MXU matmul with the (Cout, 9*Cin) weight.
    """
    cin, _ = x.shape
    t = 0
    for dy in (-1, 0, 1):
        for dx in (-1, 0, 1):
            sh = _shift_lanes(x, dy * W + dx)
            if not (dy == 0 and dx == 0):
                sh = sh * mask_ref[t:t + 1, :]
            col_ref[t * cin:(t + 1) * cin, :] = sh
            t += 1
    acc = jnp.dot(w_ref[...], col_ref[...], preferred_element_type=jnp.float32)
    acc = acc + b_ref[...]
    if relu:
        acc = jnp.maximum(acc, 0.0)
    return acc


# ----------------------------- Pallas kernels -------------------------------

def _sme_fused_kernel(x_ref, m_ref, w1_ref, b1_ref, w2_ref, b2_ref, o_ref,
                      col1, col2, *, C, H, W):
    """Per batch element: per-coil conv refine (2->chans->2) + residual + RSS norm.

    x_ref: (1, 2, C*H*W)  row 0 = real, row 1 = imag, coils folded into lanes.
    """
    N = H * W
    x = x_ref[0]                                     # (2, C*N)
    h = _conv3x3_lanes(x, w1_ref, b1_ref, m_ref, col1, W, relu=True)
    o = _conv3x3_lanes(h, w2_ref, b2_ref, m_ref, col2, W, relu=False)
    refined = x + o                                  # residual refinement

    # RSS over coils (coil = one N-lane group), then normalize.
    sumsq = jnp.zeros((1, N), jnp.float32)
    for c in range(C):
        sl = refined[:, c * N:(c + 1) * N]
        sumsq = sumsq + jnp.sum(sl * sl, axis=0, keepdims=True)
    inv = lax.rsqrt(sumsq + 1e-24)                   # EUP rsqrt (eps ~ (1e-12)^2)
    for c in range(C):
        o_ref[0, :, c * N:(c + 1) * N] = refined[:, c * N:(c + 1) * N] * inv


def _airs_fused_kernel(x_ref, s_ref, g_ref, m_ref, w1_ref, b1_ref, w2_ref,
                       b2_ref, o_ref, xin_ref, col1, col2,
                       *, C, H, W, clamp_max):
    """sens_reduce + AIRS layer (4->chans->2) + cascade residual + |.| + clamp."""
    N = H * W

    # --- sens_reduce: sum_c complex_mul(x, conj(sens)) ---
    red_re = jnp.zeros((1, N), jnp.float32)
    red_im = jnp.zeros((1, N), jnp.float32)
    for c in range(C):
        lo = c * N
        xr = x_ref[0, 0:1, lo:lo + N]
        xi = x_ref[0, 1:2, lo:lo + N]
        sr = s_ref[0, 0:1, lo:lo + N]
        si = s_ref[0, 1:2, lo:lo + N]
        red_re = red_re + (xr * sr + xi * si)
        red_im = red_im + (xi * sr - xr * si)

    # --- AIRS input channels: [reduced_re, reduced_im, grappa, 0] ---
    xin_ref[0:1, :] = red_re
    xin_ref[1:2, :] = red_im
    xin_ref[2:3, :] = g_ref[0]
    xin_ref[3:4, :] = jnp.zeros((1, N), jnp.float32)
    xin = xin_ref[...]                               # (4, N)

    h = _conv3x3_lanes(xin, w1_ref, b1_ref, m_ref, col1, W, relu=True)
    o = _conv3x3_lanes(h, w2_ref, b2_ref, m_ref, col2, W, relu=False)

    # --- cascade residual (add_later = reduced) + magnitude + clamp ---
    fr = o[0:1, :] + red_re
    fi = o[1:2, :] + red_im
    mag = jnp.sqrt(fr * fr + fi * fi)
    o_ref[0] = jnp.minimum(mag, clamp_max)           # sqrt >= 0, upper clamp only


# ----------------------------- pallas_call wrappers --------------------------

def _sme_fused(x_flat, masks, w1, b1, w2, b2, *, C, H, W):
    B = x_flat.shape[0]
    CN = C * H * W
    kern = functools.partial(_sme_fused_kernel, C=C, H=H, W=W)
    return pl.pallas_call(
        kern,
        out_shape=jax.ShapeDtypeStruct((B, 2, CN), jnp.float32),
        grid=(B,),
        in_specs=[
            pl.BlockSpec((1, 2, CN), lambda b: (b, 0, 0)),
            pl.BlockSpec(masks.shape, lambda b: (0, 0)),
            pl.BlockSpec(w1.shape, lambda b: (0, 0)),
            pl.BlockSpec(b1.shape, lambda b: (0, 0)),
            pl.BlockSpec(w2.shape, lambda b: (0, 0)),
            pl.BlockSpec(b2.shape, lambda b: (0, 0)),
        ],
        out_specs=pl.BlockSpec((1, 2, CN), lambda b: (b, 0, 0)),
        scratch_shapes=[
            pltpu.VMEM((w1.shape[1], CN), jnp.float32),   # im2col for conv1 (9*2)
            pltpu.VMEM((w2.shape[1], CN), jnp.float32),   # im2col for conv2 (9*chans)
        ],
        compiler_params=pltpu.CompilerParams(dimension_semantics=("parallel",)),
    )(x_flat, masks, w1, b1, w2, b2)


def _airs_fused(x_flat, sens, g, masks, w1, b1, w2, b2, *, C, H, W, clamp_max):
    B = x_flat.shape[0]
    N = H * W
    CN = C * N
    kern = functools.partial(_airs_fused_kernel, C=C, H=H, W=W,
                             clamp_max=clamp_max)
    return pl.pallas_call(
        kern,
        out_shape=jax.ShapeDtypeStruct((B, 1, N), jnp.float32),
        grid=(B,),
        in_specs=[
            pl.BlockSpec((1, 2, CN), lambda b: (b, 0, 0)),   # ifft2c(input), flat
            pl.BlockSpec((1, 2, CN), lambda b: (b, 0, 0)),   # sens maps, flat
            pl.BlockSpec((1, 1, N), lambda b: (b, 0, 0)),    # grappa
            pl.BlockSpec(masks.shape, lambda b: (0, 0)),
            pl.BlockSpec(w1.shape, lambda b: (0, 0)),
            pl.BlockSpec(b1.shape, lambda b: (0, 0)),
            pl.BlockSpec(w2.shape, lambda b: (0, 0)),
            pl.BlockSpec(b2.shape, lambda b: (0, 0)),
        ],
        out_specs=pl.BlockSpec((1, 1, N), lambda b: (b, 0, 0)),
        scratch_shapes=[
            pltpu.VMEM((4, N), jnp.float32),                 # 4-channel AIRS input
            pltpu.VMEM((w1.shape[1], N), jnp.float32),       # im2col conv1 (9*4)
            pltpu.VMEM((w2.shape[1], N), jnp.float32),       # im2col conv2 (9*chans)
        ],
        compiler_params=pltpu.CompilerParams(dimension_semantics=("parallel",)),
    )(x_flat, sens, g, masks, w1, b1, w2, b2)


# ----------------------------- model forward --------------------------------

def mymodel_v7_forward(params, inp, grappa, acs):
    B, C, H, W, _ = inp.shape
    N = H * W

    sme_w1, sme_b1 = _prep_conv(params["sme_w1"], params["sme_b1"])
    sme_w2, sme_b2 = _prep_conv(params["sme_w2"], params["sme_b2"])
    # TODO(synk): only the default single AIRS cascade is fused here.
    aw1, ab1, aw2, ab2 = params["airs_layers"][0]
    airs_w1, airs_b1 = _prep_conv(aw1, ab1)
    airs_w2, airs_b2 = _prep_conv(aw2, ab2)

    masks_cn = jnp.asarray(_tap_masks(C, H, W))      # (9, C*H*W)
    masks_n = jnp.asarray(_tap_masks(1, H, W))       # (9, H*W)

    # --- SME: sens_map = rss_normalize(coil + conv2(relu(conv1(coil)))) ---
    acs_img = ifft2c(acs)                                          # (B,C,H,W,2)
    acs_flat = jnp.transpose(acs_img, (0, 4, 1, 2, 3)).reshape(B, 2, C * N)
    sens = _sme_fused(acs_flat, masks_cn, sme_w1, sme_b1, sme_w2, sme_b2,
                      C=C, H=H, W=W)                               # (B,2,C*N)

    # --- sens_reduce + AIRS cascade + |.| + clamp, fully fused ---
    x_img = ifft2c(inp)
    x_flat = jnp.transpose(x_img, (0, 4, 1, 2, 3)).reshape(B, 2, C * N)
    g = grappa.reshape(B, 1, N)
    out = _airs_fused(x_flat, sens, g, masks_n, airs_w1, airs_b1,
                      airs_w2, airs_b2, C=C, H=H, W=W,
                      clamp_max=CLAMP_MAX)                         # (B,1,N)
    return out.reshape(B, H, W)


# ----------------------------- pure-XLA reference ----------------------------

def _reference_forward(params, inp, grappa, acs):
    """Same math via XLA-side im2col (the previous, known-good formulation)."""
    B, C, H, W, _ = inp.shape

    def conv3x3_ref(x_nhwc, w, b, relu=False):
        Bx, Hh, Ww, Cin = x_nhwc.shape
        xp = jnp.pad(x_nhwc, ((0, 0), (1, 1), (1, 1), (0, 0)))
        taps = [xp[:, dy:dy + Hh, dx:dx + Ww, :]
                for dy in range(3) for dx in range(3)]
        col = jnp.concatenate(taps, axis=-1).reshape(Bx, Hh * Ww, 9 * Cin)
        out = jnp.dot(col, w.reshape(9 * Cin, -1),
                      preferred_element_type=jnp.float32) + b
        if relu:
            out = jnp.maximum(out, 0.0)
        return out.reshape(Bx, Hh, Ww, -1)

    coil = ifft2c(acs)
    x = coil.reshape(B * C, H, W, 2)
    h = conv3x3_ref(x, params["sme_w1"], params["sme_b1"], relu=True)
    h = conv3x3_ref(h, params["sme_w2"], params["sme_b2"])
    refined = (x + h).reshape(B, C, H, W, 2)
    sumsq = jnp.sum(refined[..., 0] ** 2 + refined[..., 1] ** 2,
                    axis=1, keepdims=True)
    sens = refined / jnp.sqrt(sumsq + 1e-24)[..., None]

    xi = ifft2c(inp)
    rr = jnp.sum(xi[..., 0] * sens[..., 0] + xi[..., 1] * sens[..., 1], axis=1)
    ri = jnp.sum(xi[..., 1] * sens[..., 0] - xi[..., 0] * sens[..., 1], axis=1)
    red = jnp.stack([rr, ri], axis=-1)[:, None]                  # (B,1,H,W,2)
    g = jnp.stack([grappa[:, None], jnp.zeros_like(grappa[:, None])], axis=-1)
    xcat = jnp.concatenate([red, g], axis=1)                     # (B,2,H,W,2)

    w1, b1, w2, b2 = params["airs_layers"][0]
    xin = jnp.transpose(xcat, (0, 1, 4, 2, 3)).reshape(B, 4, H, W)
    xin = jnp.transpose(xin, (0, 2, 3, 1))
    hh = conv3x3_ref(xin, w1, b1, relu=True)
    oo = conv3x3_ref(hh, w2, b2)
    oc = jnp.transpose(oo, (0, 3, 1, 2))
    fr = oc[:, 0] + rr
    fi = oc[:, 1] + ri
    return jnp.minimum(jnp.sqrt(fr * fr + fi * fi), CLAMP_MAX)


# ----------------------------- params / main --------------------------------

def init_params(key, airs_inchans=4, airs_outchans=2, airs_chans=32,
                sme_chans=8, num_airs_layers=1):
    def conv_init(k, cin, cout):
        kw, kb = jax.random.split(k)
        scale = 1.0 / jnp.sqrt(jnp.float32(9 * cin))
        w = jax.random.uniform(kw, (3, 3, cin, cout), jnp.float32, -1.0, 1.0) * scale
        b = jax.random.uniform(kb, (cout,), jnp.float32, -1.0, 1.0) * scale
        return w, b

    keys = jax.random.split(key, 2 + 2 * num_airs_layers)
    sme_w1, sme_b1 = conv_init(keys[0], 2, sme_chans)
    sme_w2, sme_b2 = conv_init(keys[1], sme_chans, 2)
    layers = []
    for i in range(num_airs_layers):
        w1, b1 = conv_init(keys[2 + 2 * i], airs_inchans, airs_chans)
        w2, b2 = conv_init(keys[3 + 2 * i], airs_chans, airs_outchans)
        layers.append((w1, b1, w2, b2))
    return {"sme_w1": sme_w1, "sme_b1": sme_b1,
            "sme_w2": sme_w2, "sme_b2": sme_b2,
            "airs_layers": layers}


if __name__ == "__main__":
    key = jax.random.PRNGKey(0)
    k_in, k_gr, k_acs, k_par = jax.random.split(key, 4)

    B, C, H, W = 2, 4, 16, 16      # batch, coils, spatial
    scale = 1e-3                   # k-space-like magnitudes near the clamp range
    inp = jax.random.normal(k_in, (B, C, H, W, 2), jnp.float32) * scale
    acs = jax.random.normal(k_acs, (B, C, H, W, 2), jnp.float32) * scale
    grappa = jax.random.normal(k_gr, (B, H, W), jnp.float32) * scale

    params = init_params(k_par, airs_inchans=4, airs_outchans=2,
                         airs_chans=32, sme_chans=8, num_airs_layers=1)

    fwd = jax.jit(mymodel_v7_forward)
    out = fwd(params, inp, grappa, acs)
    jax.block_until_ready(out)

    assert out.shape == (B, H, W), out.shape
    assert out.dtype == jnp.float32

    # Non-fatal numerical cross-check against the pure-XLA reference.
    try:
        ref = jax.jit(_reference_forward)(params, inp, grappa, acs)
        err = float(jnp.max(jnp.abs(out - ref)))
        if not (err < 5e-4):
            print("WARNING: pallas/reference mismatch, max abs err = %.3e" % err)
    except Exception as e:  # pragma: no cover - reference check is best-effort
        print("WARNING: reference check skipped (%s)" % type(e).__name__)

    print("KERNEL_OK")
</pallas_src>

<mosaic_0001>
module attributes {stable_mosaic.version = 11 : i64} {
  func.func @_sme_fused_kernel(%arg0: i32, %arg1: memref<1x2x1024xf32, #tpu.memory_space<vmem>>, %arg2: memref<9x1024xf32, #tpu.memory_space<vmem>>, %arg3: memref<8x18xf32, #tpu.memory_space<vmem>>, %arg4: memref<8x1xf32, #tpu.memory_space<vmem>>, %arg5: memref<2x72xf32, #tpu.memory_space<vmem>>, %arg6: memref<2x1xf32, #tpu.memory_space<vmem>>, %arg7: memref<1x2x1024xf32, #tpu.memory_space<vmem>>, %arg8: memref<18x1024xf32, #tpu.memory_space<vmem>>, %arg9: memref<72x1024xf32, #tpu.memory_space<vmem>>) attributes {dimension_semantics = [#tpu.dimension_semantics<parallel>], iteration_bounds = array<i64: 2>, scalar_prefetch = 0 : i64, scratch_operands = 2 : i64, tpu.core_type = #tpu.core_type<tc>, window_params = [{transform_indices = @transform_0, window_bounds = array<i64: 1, 2, 1024>}, {pipeline_mode = #tpu.pipeline_mode<synchronous>, transform_indices = @transform_1, window_bounds = array<i64: 9, 1024>}, {pipeline_mode = #tpu.pipeline_mode<synchronous>, transform_indices = @transform_2, window_bounds = array<i64: 8, 18>}, {pipeline_mode = #tpu.pipeline_mode<synchronous>, transform_indices = @transform_3, window_bounds = array<i64: 8, 1>}, {pipeline_mode = #tpu.pipeline_mode<synchronous>, transform_indices = @transform_4, window_bounds = array<i64: 2, 72>}, {pipeline_mode = #tpu.pipeline_mode<synchronous>, transform_indices = @transform_5, window_bounds = array<i64: 2, 1>}, {transform_indices = @transform_6, window_bounds = array<i64: 1, 2, 1024>}]} {
    %c0 = arith.constant 0 : index
    %c0_0 = arith.constant 0 : index
    %c0_1 = arith.constant 0 : index
    %0 = vector.load %arg1[%c0, %c0_0, %c0_1] : memref<1x2x1024xf32, #tpu.memory_space<vmem>>, vector<1x2x1024xf32>
    %1 = vector.shape_cast %0 : vector<1x2x1024xf32> to vector<2x1024xf32>
    %cst = arith.constant 0.000000e+00 : f32
    %2 = vector.broadcast %cst : f32 to vector<2x17xf32>
    %3 = vector.extract_strided_slice %1 {offsets = [0, 0], sizes = [2, 1007], strides = [1, 1]} : vector<2x1024xf32> to vector<2x1007xf32>
    %4 = tpu.concatenate %2, %3 in 1 : vector<2x17xf32>, vector<2x1007xf32> -> vector<2x1024xf32>
    %c0_2 = arith.constant 0 : index
    %c0_3 = arith.constant 0 : index
    %5 = vector.load %arg2[%c0_2, %c0_3] : memref<9x1024xf32, #tpu.memory_space<vmem>>, vector<1x1024xf32>
    %6 = vector.broadcast %5 : vector<1x1024xf32> to vector<2x1024xf32>
    %7 = arith.mulf %4, %6 : vector<2x1024xf32>
    %c0_4 = arith.constant 0 : index
    %c0_5 = arith.constant 0 : index
    %8 = vector.load %arg8[%c0_4, %c0_5] : memref<18x1024xf32, #tpu.memory_space<vmem>>, vector<2x1024xf32>
    tpu.vector_store %arg8[%c0_4, %c0_5], %7 {strides = array<i32>} : memref<18x1024xf32, #tpu.memory_space<vmem>>, vector<2x1024xf32>,
    %cst_6 = arith.constant 0.000000e+00 : f32
    %9 = vector.broadcast %cst_6 : f32 to vector<2x16xf32>
    %10 = vector.extract_strided_slice %1 {offsets = [0, 0], sizes = [2, 1008], strides = [1, 1]} : vector<2x1024xf32> to vector<2x1008xf32>
    %11 = tpu.concatenate %9, %10 in 1 : vector<2x16xf32>, vector<2x1008xf32> -> vector<2x1024xf32>
    %c1 = arith.constant 1 : index
    %c0_7 = arith.constant 0 : index
    %12 = vector.load %arg2[%c1, %c0_7] : memref<9x1024xf32, #tpu.memory_space<vmem>>, vector<1x1024xf32>
    %13 = vector.broadcast %12 : vector<1x1024xf32> to vector<2x1024xf32>
    %14 = arith.mulf %11, %13 : vector<2x1024xf32>
    %c2 = arith.constant 2 : index
    %c0_8 = arith.constant 0 : index
    %15 = vector.load %arg8[%c2, %c0_8] : memref<18x1024xf32, #tpu.memory_space<vmem>>, vector<2x1024xf32>
    tpu.vector_store %arg8[%c2, %c0_8], %14 {strides = array<i32>} : memref<18x1024xf32, #tpu.memory_space<vmem>>, vector<2x1024xf32>,
    %cst_9 = arith.constant 0.000000e+00 : f32
    %16 = vector.broadcast %cst_9 : f32 to vector<2x15xf32>
    %17 = vector.extract_strided_slice %1 {offsets = [0, 0], sizes = [2, 1009], strides = [1, 1]} : vector<2x1024xf32> to vector<2x1009xf32>
    %18 = tpu.concatenate %16, %17 in 1 : vector<2x15xf32>, vector<2x1009xf32> -> vector<2x1024xf32>
    %c2_10 = arith.constant 2 : index
    %c0_11 = arith.constant 0 : index
    %19 = vector.load %arg2[%c2_10, %c0_11] : memref<9x1024xf32, #tpu.memory_space<vmem>>, vector<1x1024xf32>
    %20 = vector.broadcast %19 : vector<1x1024xf32> to vector<2x1024xf32>
    %21 = arith.mulf %18, %20 : vector<2x1024xf32>
    %c4 = arith.constant 4 : index
    %c0_12 = arith.constant 0 : index
    %22 = vector.load %arg8[%c4, %c0_12] : memref<18x1024xf32, #tpu.memory_space<vmem>>, vector<2x1024xf32>
    tpu.vector_store %arg8[%c4, %c0_12], %21 {strides = array<i32>} : memref<18x1024xf32, #tpu.memory_space<vmem>>, vector<2x1024xf32>,
    %cst_13 = arith.constant 0.000000e+00 : f32
    %23 = vector.broadcast %cst_13 : f32 to vector<2x1xf32>
    %24 = vector.extract_strided_slice %1 {offsets = [0, 0], sizes = [2, 1023], strides = [1, 1]} : vector<2x1024xf32> to vector<2x1023xf32>
    %25 = tpu.concatenate %23, %24 in 1 : vector<2x1xf32>, vector<2x1023xf32> -> vector<2x1024xf32>
    %c3 = arith.constant 3 : index
    %c0_14 = arith.constant 0 : index
    %26 = vector.load %arg2[%c3, %c0_14] : memref<9x1024xf32, #tpu.memory_space<vmem>>, vector<1x1024xf32>
    %27 = vector.broadcast %26 : vector<1x1024xf32> to vector<2x1024xf32>
    %28 = arith.mulf %25, %27 : vector<2x1024xf32>
    %c6 = arith.constant 6 : index
    %c0_15 = arith.constant 0 : index
    %29 = vector.load %arg8[%c6, %c0_15] : memref<18x1024xf32, #tpu.memory_space<vmem>>, vector<2x1024xf32>
    tpu.vector_store %arg8[%c6, %c0_15], %28 {strides = array<i32>} : memref<18x1024xf32, #tpu.memory_space<vmem>>, vector<2x1024xf32>,
    %c8 = arith.constant 8 : index
    %c0_16 = arith.constant 0 : index
    %30 = vector.load %arg8[%c8, %c0_16] : memref<18x1024xf32, #tpu.memory_space<vmem>>, vector<2x1024xf32>
    tpu.vector_store %arg8[%c8, %c0_16], %1 {strides = array<i32>} : memref<18x1024xf32, #tpu.memory_space<vmem>>, vector<2x1024xf32>,
    %cst_17 = arith.constant 0.000000e+00 : f32
    %31 = vector.broadcast %cst_17 : f32 to vector<2x1xf32>
    %32 = vector.extract_strided_slice %1 {offsets = [0, 1], sizes = [2, 1023], strides = [1, 1]} : vector<2x1024xf32> to vector<2x1023xf32>
    %33 = tpu.concatenate %32, %31 in 1 : vector<2x1023xf32>, vector<2x1xf32> -> vector<2x1024xf32>
    %c5 = arith.constant 5 : index
    %c0_18 = arith.constant 0 : index
    %34 = vector.load %arg2[%c5, %c0_18] : memref<9x1024xf32, #tpu.memory_space<vmem>>, vector<1x1024xf32>
    %35 = vector.broadcast %34 : vector<1x1024xf32> to vector<2x1024xf32>
    %36 = arith.mulf %33, %35 : vector<2x1024xf32>
    %c10 = arith.constant 10 : index
    %c0_19 = arith.constant 0 : index
    %37 = vector.load %arg8[%c10, %c0_19] : memref<18x1024xf32, #tpu.memory_space<vmem>>, vector<2x1024xf32>
    tpu.vector_store %arg8[%c10, %c0_19], %36 {strides = array<i32>} : memref<18x1024xf32, #tpu.memory_space<vmem>>, vector<2x1024xf32>,
    %cst_20 = arith.constant 0.000000e+00 : f32
    %38 = vector.broadcast %cst_20 : f32 to vector<2x15xf32>
    %39 = vector.extract_strided_slice %1 {offsets = [0, 15], sizes = [2, 1009], strides = [1, 1]} : vector<2x1024xf32> to vector<2x1009xf32>
    %40 = tpu.concatenate %39, %38 in 1 : vector<2x1009xf32>, vector<2x15xf32> -> vector<2x1024xf32>
    %c6_21 = arith.constant 6 : index
    %c0_22 = arith.constant 0 : index
    %41 = vector.load %arg2[%c6_21, %c0_22] : memref<9x1024xf32, #tpu.memory_space<vmem>>, vector<1x1024xf32>
    %42 = vector.broadcast %41 : vector<1x1024xf32> to vector<2x1024xf32>
    %43 = arith.mulf %40, %42 : vector<2x1024xf32>
    %c12 = arith.constant 12 : index
    %c0_23 = arith.constant 0 : index
    %44 = vector.load %arg8[%c12, %c0_23] : memref<18x1024xf32, #tpu.memory_space<vmem>>, vector<2x1024xf32>
    tpu.vector_store %arg8[%c12, %c0_23], %43 {strides = array<i32>} : memref<18x1024xf32, #tpu.memory_space<vmem>>, vector<2x1024xf32>,
    %cst_24 = arith.constant 0.000000e+00 : f32
    %45 = vector.broadcast %cst_24 : f32 to vector<2x16xf32>
    %46 = vector.extract_strided_slice %1 {offsets = [0, 16], sizes = [2, 1008], strides = [1, 1]} : vector<2x1024xf32> to vector<2x1008xf32>
    %47 = tpu.concatenate %46, %45 in 1 : vector<2x1008xf32>, vector<2x16xf32> -> vector<2x1024xf32>
    %c7 = arith.constant 7 : index
    %c0_25 = arith.constant 0 : index
    %48 = vector.load %arg2[%c7, %c0_25] : memref<9x1024xf32, #tpu.memory_space<vmem>>, vector<1x1024xf32>
    %49 = vector.broadcast %48 : vector<1x1024xf32> to vector<2x1024xf32>
    %50 = arith.mulf %47, %49 : vector<2x1024xf32>
    %c14 = arith.constant 14 : index
    %c0_26 = arith.constant 0 : index
    %51 = vector.load %arg8[%c14, %c0_26] : memref<18x1024xf32, #tpu.memory_space<vmem>>, vector<2x1024xf32>
    tpu.vector_store %arg8[%c14, %c0_26], %50 {strides = array<i32>} : memref<18x1024xf32, #tpu.memory_space<vmem>>, vector<2x1024xf32>,
    %cst_27 = arith.constant 0.000000e+00 : f32
    %52 = vector.broadcast %cst_27 : f32 to vector<2x17xf32>
    %53 = vector.extract_strided_slice %1 {offsets = [0, 17], sizes = [2, 1007], strides = [1, 1]} : vector<2x1024xf32> to vector<2x1007xf32>
    %54 = tpu.concatenate %53, %52 in 1 : vector<2x1007xf32>, vector<2x17xf32> -> vector<2x1024xf32>
    %c8_28 = arith.constant 8 : index
    %c0_29 = arith.constant 0 : index
    %55 = vector.load %arg2[%c8_28, %c0_29] : memref<9x1024xf32, #tpu.memory_space<vmem>>, vector<1x1024xf32>
    %56 = vector.broadcast %55 : vector<1x1024xf32> to vector<2x1024xf32>
    %57 = arith.mulf %54, %56 : vector<2x1024xf32>
    %c16 = arith.constant 16 : index
    %c0_30 = arith.constant 0 : index
    %58 = vector.load %arg8[%c16, %c0_30] : memref<18x1024xf32, #tpu.memory_space<vmem>>, vector<2x1024xf32>
    tpu.vector_store %arg8[%c16, %c0_30], %57 {strides = array<i32>} : memref<18x1024xf32, #tpu.memory_space<vmem>>, vector<2x1024xf32>,
    %c0_31 = arith.constant 0 : index
    %c0_32 = arith.constant 0 : index
    %59 = vector.load %arg3[%c0_31, %c0_32] : memref<8x18xf32, #tpu.memory_space<vmem>>, vector<8x18xf32>
    %c0_33 = arith.constant 0 : index
    %c0_34 = arith.constant 0 : index
    %60 = vector.load %arg8[%c0_33, %c0_34] : memref<18x1024xf32, #tpu.memory_space<vmem>>, vector<18x1024xf32>
    %cst_35 = arith.constant dense<0.000000e+00> : vector<8x1024xf32>
    %61 = tpu.matmul %59, %60, %cst_35 {dimension_numbers = #tpu.dot_dimension_numbers<[1], [0], [0], [1], [0, 0, 1, 1], [], []>} : vector<8x18xf32>, vector<18x1024xf32>, vector<8x1024xf32> -> vector<8x1024xf32>
    %c0_36 = arith.constant 0 : index
    %c0_37 = arith.constant 0 : index
    %62 = vector.load %arg4[%c0_36, %c0_37] : memref<8x1xf32, #tpu.memory_space<vmem>>, vector<8x1xf32>
    %63 = vector.broadcast %62 : vector<8x1xf32> to vector<8x1024xf32>
    %64 = arith.addf %61, %63 : vector<8x1024xf32>
    %cst_38 = arith.constant 0.000000e+00 : f32
    %65 = vector.broadcast %cst_38 : f32 to vector<8x1024xf32>
    %66 = arith.maximumf %64, %65 : vector<8x1024xf32>
    %cst_39 = arith.constant 0.000000e+00 : f32
    %67 = vector.broadcast %cst_39 : f32 to vector<8x17xf32>
    %68 = vector.extract_strided_slice %66 {offsets = [0, 0], sizes = [8, 1007], strides = [1, 1]} : vector<8x1024xf32> to vector<8x1007xf32>
    %69 = tpu.concatenate %67, %68 in 1 : vector<8x17xf32>, vector<8x1007xf32> -> vector<8x1024xf32>
    %c0_40 = arith.constant 0 : index
    %c0_41 = arith.constant 0 : index
    %70 = vector.load %arg2[%c0_40, %c0_41] : memref<9x1024xf32, #tpu.memory_space<vmem>>, vector<1x1024xf32>
    %71 = vector.broadcast %70 : vector<1x1024xf32> to vector<8x1024xf32>
    %72 = arith.mulf %69, %71 : vector<8x1024xf32>
    %c0_42 = arith.constant 0 : index
    %c0_43 = arith.constant 0 : index
    %73 = vector.load %arg9[%c0_42, %c0_43] : memref<72x1024xf32, #tpu.memory_space<vmem>>, vector<8x1024xf32>
    tpu.vector_store %arg9[%c0_42, %c0_43], %72 {strides = array<i32>} : memref<72x1024xf32, #tpu.memory_space<vmem>>, vector<8x1024xf32>,
    %cst_44 = arith.constant 0.000000e+00 : f32
    %74 = vector.broadcast %cst_44 : f32 to vector<8x16xf32>
    %75 = vector.extract_strided_slice %66 {offsets = [0, 0], sizes = [8, 1008], strides = [1, 1]} : vector<8x1024xf32> to vector<8x1008xf32>
    %76 = tpu.concatenate %74, %75 in 1 : vector<8x16xf32>, vector<8x1008xf32> -> vector<8x1024xf32>
    %c1_45 = arith.constant 1 : index
    %c0_46 = arith.constant 0 : index
    %77 = vector.load %arg2[%c1_45, %c0_46] : memref<9x1024xf32, #tpu.memory_space<vmem>>, vector<1x1024xf32>
    %78 = vector.broadcast %77 : vector<1x1024xf32> to vector<8x1024xf32>
    %79 = arith.mulf %76, %78 : vector<8x1024xf32>
    %c8_47 = arith.constant 8 : index
    %c0_48 = arith.constant 0 : index
    %80 = vector.load %arg9[%c8_47, %c0_48] : memref<72x1024xf32, #tpu.memory_space<vmem>>, vector<8x1024xf32>
    tpu.vector_store %arg9[%c8_47, %c0_48], %79 {strides = array<i32>} : memref<72x1024xf32, #tpu.memory_space<vmem>>, vector<8x1024xf32>,
    %cst_49 = arith.constant 0.000000e+00 : f32
    %81 = vector.broadcast %cst_49 : f32 to vector<8x15xf32>
    %82 = vector.extract_strided_slice %66 {offsets = [0, 0], sizes = [8, 1009], strides = [1, 1]} : vector<8x1024xf32> to vector<8x1009xf32>
    %83 = tpu.concatenate %81, %82 in 1 : vector<8x15xf32>, vector<8x1009xf32> -> vector<8x1024xf32>
    %c2_50 = arith.constant 2 : index
    %c0_51 = arith.constant 0 : index
    %84 = vector.load %arg2[%c2_50, %c0_51] : memref<9x1024xf32, #tpu.memory_space<vmem>>, vector<1x1024xf32>
    %85 = vector.broadcast %84 : vector<1x1024xf32> to vector<8x1024xf32>
    %86 = arith.mulf %83, %85 : vector<8x1024xf32>
    %c16_52 = arith.constant 16 : index
    %c0_53 = arith.constant 0 : index
    %87 = vector.load %arg9[%c16_52, %c0_53] : memref<72x1024xf32, #tpu.memory_space<vmem>>, vector<8x1024xf32>
    tpu.vector_store %arg9[%c16_52, %c0_53], %86 {strides = array<i32>} : memref<72x1024xf32, #tpu.memory_space<vmem>>, vector<8x1024xf32>,
    %cst_54 = arith.constant 0.000000e+00 : f32
    %88 = vector.broadcast %cst_54 : f32 to vector<8x1xf32>
    %89 = vector.extract_strided_slice %66 {offsets = [0, 0], sizes = [8, 1023], strides = [1, 1]} : vector<8x1024xf32> to vector<8x1023xf32>
    %90 = tpu.concatenate %88, %89 in 1 : vector<8x1xf32>, vector<8x1023xf32> -> vector<8x1024xf32>
    %c3_55 = arith.constant 3 : index
    %c0_56 = arith.constant 0 : index
    %91 = vector.load %arg2[%c3_55, %c0_56] : memref<9x1024xf32, #tpu.memory_space<vmem>>, vector<1x1024xf32>
    %92 = vector.broadcast %91 : vector<1x1024xf32> to vector<8x1024xf32>
    %93 = arith.mulf %90, %92 : vector<8x1024xf32>
    %c24 = arith.constant 24 : index
    %c0_57 = arith.constant 0 : index
    %94 = vector.load %arg9[%c24, %c0_57] : memref<72x1024xf32, #tpu.memory_space<vmem>>, vector<8x1024xf32>
    tpu.vector_store %arg9[%c24, %c0_57], %93 {strides = array<i32>} : memref<72x1024xf32, #tpu.memory_space<vmem>>, vector<8x1024xf32>,
    %c32 = arith.constant 32 : index
    %c0_58 = arith.constant 0 : index
    %95 = vector.load %arg9[%c32, %c0_58] : memref<72x1024xf32, #tpu.memory_space<vmem>>, vector<8x1024xf32>
    tpu.vector_store %arg9[%c32, %c0_58], %66 {strides = array<i32>} : memref<72x1024xf32, #tpu.memory_space<vmem>>, vector<8x1024xf32>,
    %cst_59 = arith.constant 0.000000e+00 : f32
    %96 = vector.broadcast %cst_59 : f32 to vector<8x1xf32>
    %97 = vector.extract_strided_slice %66 {offsets = [0, 1], sizes = [8, 1023], strides = [1, 1]} : vector<8x1024xf32> to vector<8x1023xf32>
    %98 = tpu.concatenate %97, %96 in 1 : vector<8x1023xf32>, vector<8x1xf32> -> vector<8x1024xf32>
    %c5_60 = arith.constant 5 : index
    %c0_61 = arith.constant 0 : index
    %99 = vector.load %arg2[%c5_60, %c0_61] : memref<9x1024xf32, #tpu.memory_space<vmem>>, vector<1x1024xf32>
    %100 = vector.broadcast %99 : vector<1x1024xf32> to vector<8x1024xf32>
    %101 = arith.mulf %98, %100 : vector<8x1024xf32>
    %c40 = arith.constant 40 : index
    %c0_62 = arith.constant 0 : index
    %102 = vector.load %arg9[%c40, %c0_62] : memref<72x1024xf32, #tpu.memory_space<vmem>>, vector<8x1024xf32>
    tpu.vector_store %arg9[%c40, %c0_62], %101 {strides = array<i32>} : memref<72x1024xf32, #tpu.memory_space<vmem>>, vector<8x1024xf32>,
    %cst_63 = arith.constant 0.000000e+00 : f32
    %103 = vector.broadcast %cst_63 : f32 to vector<8x15xf32>
    %104 = vector.extract_strided_slice %66 {offsets = [0, 15], sizes = [8, 1009], strides = [1, 1]} : vector<8x1024xf32> to vector<8x1009xf32>
    %105 = tpu.concatenate %104, %103 in 1 : vector<8x1009xf32>, vector<8x15xf32> -> vector<8x1024xf32>
    %c6_64 = arith.constant 6 : index
    %c0_65 = arith.constant 0 : index
    %106 = vector.load %arg2[%c6_64, %c0_65] : memref<9x1024xf32, #tpu.memory_space<vmem>>, vector<1x1024xf32>
    %107 = vector.broadcast %106 : vector<1x1024xf32> to vector<8x1024xf32>
    %108 = arith.mulf %105, %107 : vector<8x1024xf32>
    %c48 = arith.constant 48 : index
    %c0_66 = arith.constant 0 : index
    %109 = vector.load %arg9[%c48, %c0_66] : memref<72x1024xf32, #tpu.memory_space<vmem>>, vector<8x1024xf32>
    tpu.vector_store %arg9[%c48, %c0_66], %108 {strides = array<i32>} : memref<72x1024xf32, #tpu.memory_space<vmem>>, vector<8x1024xf32>,
    %cst_67 = arith.constant 0.000000e+00 : f32
    %110 = vector.broadcast %cst_67 : f32 to vector<8x16xf32>
    %111 = vector.extract_strided_slice %66 {offsets = [0, 16], sizes = [8, 1008], strides = [1, 1]} : vector<8x1024xf32> to vector<8x1008xf32>
    %112 = tpu.concatenate %111, %110 in 1 : vector<8x1008xf32>, vector<8x16xf32> -> vector<8x1024xf32>
    %c7_68 = arith.constant 7 : index
    %c0_69 = arith.constant 0 : index
    %113 = vector.load %arg2[%c7_68, %c0_69] : memref<9x1024xf32, #tpu.memory_space<vmem>>, vector<1x1024xf32>
    %114 = vector.broadcast %113 : vector<1x1024xf32> to vector<8x1024xf32>
    %115 = arith.mulf %112, %114 : vector<8x1024xf32>
    %c56 = arith.constant 56 : index
    %c0_70 = arith.constant 0 : index
    %116 = vector.load %arg9[%c56, %c0_70] : memref<72x1024xf32, #tpu.memory_space<vmem>>, vector<8x1024xf32>
    tpu.vector_store %arg9[%c56, %c0_70], %115 {strides = array<i32>} : memref<72x1024xf32, #tpu.memory_space<vmem>>, vector<8x1024xf32>,
    %cst_71 = arith.constant 0.000000e+00 : f32
    %117 = vector.broadcast %cst_71 : f32 to vector<8x17xf32>
    %118 = vector.extract_strided_slice %66 {offsets = [0, 17], sizes = [8, 1007], strides = [1, 1]} : vector<8x1024xf32> to vector<8x1007xf32>
    %119 = tpu.concatenate %118, %117 in 1 : vector<8x1007xf32>, vector<8x17xf32> -> vector<8x1024xf32>
    %c8_72 = arith.constant 8 : index
    %c0_73 = arith.constant 0 : index
    %120 = vector.load %arg2[%c8_72, %c0_73] : memref<9x1024xf32, #tpu.memory_space<vmem>>, vector<1x1024xf32>
    %121 = vector.broadcast %120 : vector<1x1024xf32> to vector<8x1024xf32>
    %122 = arith.mulf %119, %121 : vector<8x1024xf32>
    %c64 = arith.constant 64 : index
    %c0_74 = arith.constant 0 : index
    %123 = vector.load %arg9[%c64, %c0_74] : memref<72x1024xf32, #tpu.memory_space<vmem>>, vector<8x1024xf32>
    tpu.vector_store %arg9[%c64, %c0_74], %122 {strides = array<i32>} : memref<72x1024xf32, #tpu.memory_space<vmem>>, vector<8x1024xf32>,
    %c0_75 = arith.constant 0 : index
    %c0_76 = arith.constant 0 : index
    %124 = vector.load %arg5[%c0_75, %c0_76] : memref<2x72xf32, #tpu.memory_space<vmem>>, vector<2x72xf32>
    %c0_77 = arith.constant 0 : index
    %c0_78 = arith.constant 0 : index
    %125 = vector.load %arg9[%c0_77, %c0_78] : memref<72x1024xf32, #tpu.memory_space<vmem>>, vector<72x1024xf32>
    %cst_79 = arith.constant dense<0.000000e+00> : vector<2x1024xf32>
    %126 = tpu.matmul %124, %125, %cst_79 {dimension_numbers = #tpu.dot_dimension_numbers<[1], [0], [0], [1], [0, 0, 1, 1], [], []>} : vector<2x72xf32>, vector<72x1024xf32>, vector<2x1024xf32> -> vector<2x1024xf32>
    %c0_80 = arith.constant 0 : index
    %c0_81 = arith.constant 0 : index
    %127 = vector.load %arg6[%c0_80, %c0_81] : memref<2x1xf32, #tpu.memory_space<vmem>>, vector<2x1xf32>
    %128 = vector.broadcast %127 : vector<2x1xf32> to vector<2x1024xf32>
    %129 = arith.addf %126, %128 : vector<2x1024xf32>
    %130 = arith.addf %1, %129 : vector<2x1024xf32>
    %cst_82 = arith.constant 0.000000e+00 : f32
    %131 = vector.broadcast %cst_82 : f32 to vector<1x256xf32>
    %132 = vector.extract_strided_slice %130 {offsets = [0, 0], sizes = [2, 256], strides = [1, 1]} : vector<2x1024xf32> to vector<2x256xf32>
    %133 = arith.mulf %132, %132 : vector<2x256xf32>
    %cst_83 = arith.constant dense<0.000000e+00> : vector<256xf32>
    %134 = vector.multi_reduction <add>, %133, %cst_83 [0] : vector<2x256xf32> to vector<256xf32>
    %135 = vector.shape_cast %134 : vector<256xf32> to vector<1x256xf32>
    %136 = arith.addf %131, %135 : vector<1x256xf32>
    %137 = vector.extract_strided_slice %130 {offsets = [0, 256], sizes = [2, 256], strides = [1, 1]} : vector<2x1024xf32> to vector<2x256xf32>
    %138 = arith.mulf %137, %137 : vector<2x256xf32>
    %cst_84 = arith.constant dense<0.000000e+00> : vector<256xf32>
    %139 = vector.multi_reduction <add>, %138, %cst_84 [0] : vector<2x256xf32> to vector<256xf32>
    %140 = vector.shape_cast %139 : vector<256xf32> to vector<1x256xf32>
    %141 = arith.addf %136, %140 : vector<1x256xf32>
    %142 = vector.extract_strided_slice %130 {offsets = [0, 512], sizes = [2, 256], strides = [1, 1]} : vector<2x1024xf32> to vector<2x256xf32>
    %143 = arith.mulf %142, %142 : vector<2x256xf32>
    %cst_85 = arith.constant dense<0.000000e+00> : vector<256xf32>
    %144 = vector.multi_reduction <add>, %143, %cst_85 [0] : vector<2x256xf32> to vector<256xf32>
    %145 = vector.shape_cast %144 : vector<256xf32> to vector<1x256xf32>
    %146 = arith.addf %141, %145 : vector<1x256xf32>
    %147 = vector.extract_strided_slice %130 {offsets = [0, 768], sizes = [2, 256], strides = [1, 1]} : vector<2x1024xf32> to vector<2x256xf32>
    %148 = arith.mulf %147, %147 : vector<2x256xf32>
    %cst_86 = arith.constant dense<0.000000e+00> : vector<256xf32>
    %149 = vector.multi_reduction <add>, %148, %cst_86 [0] : vector<2x256xf32> to vector<256xf32>
    %150 = vector.shape_cast %149 : vector<256xf32> to vector<1x256xf32>
    %151 = arith.addf %146, %150 : vector<1x256xf32>
    %cst_87 = arith.constant 1.000000e-24 : f32
    %152 = vector.broadcast %cst_87 : f32 to vector<1x256xf32>
    %153 = arith.addf %151, %152 : vector<1x256xf32>
    %154 = math.rsqrt %153 : vector<1x256xf32>
    %155 = vector.extract_strided_slice %130 {offsets = [0, 0], sizes = [2, 256], strides = [1, 1]} : vector<2x1024xf32> to vector<2x256xf32>
    %156 = vector.broadcast %154 : vector<1x256xf32> to vector<2x256xf32>
    %157 = arith.mulf %155, %156 : vector<2x256xf32>
    %c0_88 = arith.constant 0 : index
    %c0_89 = arith.constant 0 : index
    %c0_90 = arith.constant 0 : index
    %158 = vector.load %arg7[%c0_88, %c0_89, %c0_90] : memref<1x2x1024xf32, #tpu.memory_space<vmem>>, vector<1x2x256xf32>
    %159 = vector.shape_cast %158 : vector<1x2x256xf32> to vector<2x256xf32>
    %160 = vector.shape_cast %157 : vector<2x256xf32> to vector<1x2x256xf32>
    tpu.vector_store %arg7[%c0_88, %c0_89, %c0_90], %160 {strides = array<i32>} : memref<1x2x1024xf32, #tpu.memory_space<vmem>>, vector<1x2x256xf32>,
    %161 = vector.extract_strided_slice %130 {offsets = [0, 256], sizes = [2, 256], strides = [1, 1]} : vector<2x1024xf32> to vector<2x256xf32>
    %162 = vector.broadcast %154 : vector<1x256xf32> to vector<2x256xf32>
    %163 = arith.mulf %161, %162 : vector<2x256xf32>
    %c0_91 = arith.constant 0 : index
    %c0_92 = arith.constant 0 : index
    %c256 = arith.constant 256 : index
    %164 = vector.load %arg7[%c0_91, %c0_92, %c256] : memref<1x2x1024xf32, #tpu.memory_space<vmem>>, vector<1x2x256xf32>
    %165 = vector.shape_cast %164 : vector<1x2x256xf32> to vector<2x256xf32>
    %166 = vector.shape_cast %163 : vector<2x256xf32> to vector<1x2x256xf32>
    tpu.vector_store %arg7[%c0_91, %c0_92, %c256], %166 {strides = array<i32>} : memref<1x2x1024xf32, #tpu.memory_space<vmem>>, vector<1x2x256xf32>,
    %167 = vector.extract_strided_slice %130 {offsets = [0, 512], sizes = [2, 256], strides = [1, 1]} : vector<2x1024xf32> to vector<2x256xf32>
    %168 = vector.broadcast %154 : vector<1x256xf32> to vector<2x256xf32>
    %169 = arith.mulf %167, %168 : vector<2x256xf32>
    %c0_93 = arith.constant 0 : index
    %c0_94 = arith.constant 0 : index
    %c512 = arith.constant 512 : index
    %170 = vector.load %arg7[%c0_93, %c0_94, %c512] : memref<1x2x1024xf32, #tpu.memory_space<vmem>>, vector<1x2x256xf32>
    %171 = vector.shape_cast %170 : vector<1x2x256xf32> to vector<2x256xf32>
    %172 = vector.shape_cast %169 : vector<2x256xf32> to vector<1x2x256xf32>
    tpu.vector_store %arg7[%c0_93, %c0_94, %c512], %172 {strides = array<i32>} : memref<1x2x1024xf32, #tpu.memory_space<vmem>>, vector<1x2x256xf32>,
    %173 = vector.extract_strided_slice %130 {offsets = [0, 768], sizes = [2, 256], strides = [1, 1]} : vector<2x1024xf32> to vector<2x256xf32>
    %174 = vector.broadcast %154 : vector<1x256xf32> to vector<2x256xf32>
    %175 = arith.mulf %173, %174 : vector<2x256xf32>
    %c0_95 = arith.constant 0 : index
    %c0_96 = arith.constant 0 : index
    %c768 = arith.constant 768 : index
    %176 = vector.load %arg7[%c0_95, %c0_96, %c768] : memref<1x2x1024xf32, #tpu.memory_space<vmem>>, vector<1x2x256xf32>
    %177 = vector.shape_cast %176 : vector<1x2x256xf32> to vector<2x256xf32>
    %178 = vector.shape_cast %175 : vector<2x256xf32> to vector<1x2x256xf32>
    tpu.vector_store %arg7[%c0_95, %c0_96, %c768], %178 {strides = array<i32>} : memref<1x2x1024xf32, #tpu.memory_space<vmem>>, vector<1x2x256xf32>,
    return
  }
  func.func @transform_0(%arg0: i32) -> (i32, i32, i32) {
    %c0_i32 = arith.constant 0 : i32
    %c0_i32_0 = arith.constant 0 : i32
    %c0_i32_1 = arith.constant 0 : i32
    return %arg0, %c0_i32, %c0_i32_0 : i32, i32, i32
  }
  func.func @transform_1(%arg0: i32) -> (i32, i32) {
    %c0_i32 = arith.constant 0 : i32
    %c0_i32_0 = arith.constant 0 : i32
    %c0_i32_1 = arith.constant 0 : i32
    return %c0_i32, %c0_i32_0 : i32, i32
  }
  func.func @transform_2(%arg0: i32) -> (i32, i32) {
    %c0_i32 = arith.constant 0 : i32
    %c0_i32_0 = arith.constant 0 : i32
    %c0_i32_1 = arith.constant 0 : i32
    return %c0_i32, %c0_i32_0 : i32, i32
  }
  func.func @transform_3(%arg0: i32) -> (i32, i32) {
    %c0_i32 = arith.constant 0 : i32
    %c0_i32_0 = arith.constant 0 : i32
    %c0_i32_1 = arith.constant 0 : i32
    return %c0_i32, %c0_i32_0 : i32, i32
  }
  func.func @transform_4(%arg0: i32) -> (i32, i32) {
    %c0_i32 = arith.constant 0 : i32
    %c0_i32_0 = arith.constant 0 : i32
    %c0_i32_1 = arith.constant 0 : i32
    return %c0_i32, %c0_i32_0 : i32, i32
  }
  func.func @transform_5(%arg0: i32) -> (i32, i32) {
    %c0_i32 = arith.constant 0 : i32
    %c0_i32_0 = arith.constant 0 : i32
    %c0_i32_1 = arith.constant 0 : i32
    return %c0_i32, %c0_i32_0 : i32, i32
  }
  func.func @transform_6(%arg0: i32) -> (i32, i32, i32) {
    %c0_i32 = arith.constant 0 : i32
    %c0_i32_0 = arith.constant 0 : i32
    %c0_i32_1 = arith.constant 0 : i32
    return %arg0, %c0_i32, %c0_i32_0 : i32, i32, i32
  }
}

module attributes {stable_mosaic.version = 11 : i64} {
  func.func @_airs_fused_kernel(%arg0: i32, %arg1: memref<1x2x1024xf32, #tpu.memory_space<vmem>>, %arg2: memref<1x2x1024xf32, #tpu.memory_space<vmem>>, %arg3: memref<1x1x256xf32, #tpu.memory_space<vmem>>, %arg4: memref<9x256xf32, #tpu.memory_space<vmem>>, %arg5: memref<32x36xf32, #tpu.memory_space<vmem>>, %arg6: memref<32x1xf32, #tpu.memory_space<vmem>>, %arg7: memref<2x288xf32, #tpu.memory_space<vmem>>, %arg8: memref<2x1xf32, #tpu.memory_space<vmem>>, %arg9: memref<1x1x256xf32, #tpu.memory_space<vmem>>, %arg10: memref<4x256xf32, #tpu.memory_space<vmem>>, %arg11: memref<36x256xf32, #tpu.memory_space<vmem>>, %arg12: memref<288x256xf32, #tpu.memory_space<vmem>>) attributes {dimension_semantics = [#tpu.dimension_semantics<parallel>], iteration_bounds = array<i64: 2>, scalar_prefetch = 0 : i64, scratch_operands = 3 : i64, tpu.core_type = #tpu.core_type<tc>, window_params = [{transform_indices = @transform_0, window_bounds = array<i64: 1, 2, 1024>}, {transform_indices = @transform_1, window_bounds = array<i64: 1, 2, 1024>}, {transform_indices = @transform_2, window_bounds = array<i64: 1, 1, 256>}, {pipeline_mode = #tpu.pipeline_mode<synchronous>, transform_indices = @transform_3, window_bounds = array<i64: 9, 256>}, {pipeline_mode = #tpu.pipeline_mode<synchronous>, transform_indices = @transform_4, window_bounds = array<i64: 32, 36>}, {pipeline_mode = #tpu.pipeline_mode<synchronous>, transform_indices = @transform_5, window_bounds = array<i64: 32, 1>}, {pipeline_mode = #tpu.pipeline_mode<synchronous>, transform_indices = @transform_6, window_bounds = array<i64: 2, 288>}, {pipeline_mode = #tpu.pipeline_mode<synchronous>, transform_indices = @transform_7, window_bounds = array<i64: 2, 1>}, {transform_indices = @transform_8, window_bounds = array<i64: 1, 1, 256>}]} {
    %cst = arith.constant 0.000000e+00 : f32
    %0 = vector.broadcast %cst : f32 to vector<1x256xf32>
    %cst_0 = arith.constant 0.000000e+00 : f32
    %1 = vector.broadcast %cst_0 : f32 to vector<1x256xf32>
    %c0 = arith.constant 0 : index
    %c0_1 = arith.constant 0 : index
    %c0_2 = arith.constant 0 : index
    %2 = vector.load %arg1[%c0, %c0_1, %c0_2] : memref<1x2x1024xf32, #tpu.memory_space<vmem>>, vector<1x1x256xf32>
    %3 = vector.shape_cast %2 : vector<1x1x256xf32> to vector<1x256xf32>
    %c0_3 = arith.constant 0 : index
    %c1 = arith.constant 1 : index
    %c0_4 = arith.constant 0 : index
    %4 = vector.load %arg1[%c0_3, %c1, %c0_4] : memref<1x2x1024xf32, #tpu.memory_space<vmem>>, vector<1x1x256xf32>
    %5 = vector.shape_cast %4 : vector<1x1x256xf32> to vector<1x256xf32>
    %c0_5 = arith.constant 0 : index
    %c0_6 = arith.constant 0 : index
    %c0_7 = arith.constant 0 : index
    %6 = vector.load %arg2[%c0_5, %c0_6, %c0_7] : memref<1x2x1024xf32, #tpu.memory_space<vmem>>, vector<1x1x256xf32>
    %7 = vector.shape_cast %6 : vector<1x1x256xf32> to vector<1x256xf32>
    %c0_8 = arith.constant 0 : index
    %c1_9 = arith.constant 1 : index
    %c0_10 = arith.constant 0 : index
    %8 = vector.load %arg2[%c0_8, %c1_9, %c0_10] : memref<1x2x1024xf32, #tpu.memory_space<vmem>>, vector<1x1x256xf32>
    %9 = vector.shape_cast %8 : vector<1x1x256xf32> to vector<1x256xf32>
    %10 = arith.mulf %3, %7 : vector<1x256xf32>
    %11 = arith.mulf %5, %9 : vector<1x256xf32>
    %12 = arith.addf %10, %11 : vector<1x256xf32>
    %13 = arith.addf %0, %12 : vector<1x256xf32>
    %14 = arith.mulf %5, %7 : vector<1x256xf32>
    %15 = arith.mulf %3, %9 : vector<1x256xf32>
    %16 = arith.subf %14, %15 : vector<1x256xf32>
    %17 = arith.addf %1, %16 : vector<1x256xf32>
    %c0_11 = arith.constant 0 : index
    %c0_12 = arith.constant 0 : index
    %c256 = arith.constant 256 : index
    %18 = vector.load %arg1[%c0_11, %c0_12, %c256] : memref<1x2x1024xf32, #tpu.memory_space<vmem>>, vector<1x1x256xf32>
    %19 = vector.shape_cast %18 : vector<1x1x256xf32> to vector<1x256xf32>
    %c0_13 = arith.constant 0 : index
    %c1_14 = arith.constant 1 : index
    %c256_15 = arith.constant 256 : index
    %20 = vector.load %arg1[%c0_13, %c1_14, %c256_15] : memref<1x2x1024xf32, #tpu.memory_space<vmem>>, vector<1x1x256xf32>
    %21 = vector.shape_cast %20 : vector<1x1x256xf32> to vector<1x256xf32>
    %c0_16 = arith.constant 0 : index
    %c0_17 = arith.constant 0 : index
    %c256_18 = arith.constant 256 : index
    %22 = vector.load %arg2[%c0_16, %c0_17, %c256_18] : memref<1x2x1024xf32, #tpu.memory_space<vmem>>, vector<1x1x256xf32>
    %23 = vector.shape_cast %22 : vector<1x1x256xf32> to vector<1x256xf32>
    %c0_19 = arith.constant 0 : index
    %c1_20 = arith.constant 1 : index
    %c256_21 = arith.constant 256 : index
    %24 = vector.load %arg2[%c0_19, %c1_20, %c256_21] : memref<1x2x1024xf32, #tpu.memory_space<vmem>>, vector<1x1x256xf32>
    %25 = vector.shape_cast %24 : vector<1x1x256xf32> to vector<1x256xf32>
    %26 = arith.mulf %19, %23 : vector<1x256xf32>
    %27 = arith.mulf %21, %25 : vector<1x256xf32>
    %28 = arith.addf %26, %27 : vector<1x256xf32>
    %29 = arith.addf %13, %28 : vector<1x256xf32>
    %30 = arith.mulf %21, %23 : vector<1x256xf32>
    %31 = arith.mulf %19, %25 : vector<1x256xf32>
    %32 = arith.subf %30, %31 : vector<1x256xf32>
    %33 = arith.addf %17, %32 : vector<1x256xf32>
    %c0_22 = arith.constant 0 : index
    %c0_23 = arith.constant 0 : index
    %c512 = arith.constant 512 : index
    %34 = vector.load %arg1[%c0_22, %c0_23, %c512] : memref<1x2x1024xf32, #tpu.memory_space<vmem>>, vector<1x1x256xf32>
    %35 = vector.shape_cast %34 : vector<1x1x256xf32> to vector<1x256xf32>
    %c0_24 = arith.constant 0 : index
    %c1_25 = arith.constant 1 : index
    %c512_26 = arith.constant 512 : index
    %36 = vector.load %arg1[%c0_24, %c1_25, %c512_26] : memref<1x2x1024xf32, #tpu.memory_space<vmem>>, vector<1x1x256xf32>
    %37 = vector.shape_cast %36 : vector<1x1x256xf32> to vector<1x256xf32>
    %c0_27 = arith.constant 0 : index
    %c0_28 = arith.constant 0 : index
    %c512_29 = arith.constant 512 : index
    %38 = vector.load %arg2[%c0_27, %c0_28, %c512_29] : memref<1x2x1024xf32, #tpu.memory_space<vmem>>, vector<1x1x256xf32>
    %39 = vector.shape_cast %38 : vector<1x1x256xf32> to vector<1x256xf32>
    %c0_30 = arith.constant 0 : index
    %c1_31 = arith.constant 1 : index
    %c512_32 = arith.constant 512 : index
    %40 = vector.load %arg2[%c0_30, %c1_31, %c512_32] : memref<1x2x1024xf32, #tpu.memory_space<vmem>>, vector<1x1x256xf32>
    %41 = vector.shape_cast %40 : vector<1x1x256xf32> to vector<1x256xf32>
    %42 = arith.mulf %35, %39 : vector<1x256xf32>
    %43 = arith.mulf %37, %41 : vector<1x256xf32>
    %44 = arith.addf %42, %43 : vector<1x256xf32>
    %45 = arith.addf %29, %44 : vector<1x256xf32>
    %46 = arith.mulf %37, %39 : vector<1x256xf32>
    %47 = arith.mulf %35, %41 : vector<1x256xf32>
    %48 = arith.subf %46, %47 : vector<1x256xf32>
    %49 = arith.addf %33, %48 : vector<1x256xf32>
    %c0_33 = arith.constant 0 : index
    %c0_34 = arith.constant 0 : index
    %c768 = arith.constant 768 : index
    %50 = vector.load %arg1[%c0_33, %c0_34, %c768] : memref<1x2x1024xf32, #tpu.memory_space<vmem>>, vector<1x1x256xf32>
    %51 = vector.shape_cast %50 : vector<1x1x256xf32> to vector<1x256xf32>
    %c0_35 = arith.constant 0 : index
    %c1_36 = arith.constant 1 : index
    %c768_37 = arith.constant 768 : index
    %52 = vector.load %arg1[%c0_35, %c1_36, %c768_37] : memref<1x2x1024xf32, #tpu.memory_space<vmem>>, vector<1x1x256xf32>
    %53 = vector.shape_cast %52 : vector<1x1x256xf32> to vector<1x256xf32>
    %c0_38 = arith.constant 0 : index
    %c0_39 = arith.constant 0 : index
    %c768_40 = arith.constant 768 : index
    %54 = vector.load %arg2[%c0_38, %c0_39, %c768_40] : memref<1x2x1024xf32, #tpu.memory_space<vmem>>, vector<1x1x256xf32>
    %55 = vector.shape_cast %54 : vector<1x1x256xf32> to vector<1x256xf32>
    %c0_41 = arith.constant 0 : index
    %c1_42 = arith.constant 1 : index
    %c768_43 = arith.constant 768 : index
    %56 = vector.load %arg2[%c0_41, %c1_42, %c768_43] : memref<1x2x1024xf32, #tpu.memory_space<vmem>>, vector<1x1x256xf32>
    %57 = vector.shape_cast %56 : vector<1x1x256xf32> to vector<1x256xf32>
    %58 = arith.mulf %51, %55 : vector<1x256xf32>
    %59 = arith.mulf %53, %57 : vector<1x256xf32>
    %60 = arith.addf %58, %59 : vector<1x256xf32>
    %61 = arith.addf %45, %60 : vector<1x256xf32>
    %62 = arith.mulf %53, %55 : vector<1x256xf32>
    %63 = arith.mulf %51, %57 : vector<1x256xf32>
    %64 = arith.subf %62, %63 : vector<1x256xf32>
    %65 = arith.addf %49, %64 : vector<1x256xf32>
    %c0_44 = arith.constant 0 : index
    %c0_45 = arith.constant 0 : index
    %66 = vector.load %arg10[%c0_44, %c0_45] : memref<4x256xf32, #tpu.memory_space<vmem>>, vector<1x256xf32>
    tpu.vector_store %arg10[%c0_44, %c0_45], %61 {strides = array<i32>} : memref<4x256xf32, #tpu.memory_space<vmem>>, vector<1x256xf32>,
    %c1_46 = arith.constant 1 : index
    %c0_47 = arith.constant 0 : index
    %67 = vector.load %arg10[%c1_46, %c0_47] : memref<4x256xf32, #tpu.memory_space<vmem>>, vector<1x256xf32>
    tpu.vector_store %arg10[%c1_46, %c0_47], %65 {strides = array<i32>} : memref<4x256xf32, #tpu.memory_space<vmem>>, vector<1x256xf32>,
    %c0_48 = arith.constant 0 : index
    %c0_49 = arith.constant 0 : index
    %c0_50 = arith.constant 0 : index
    %68 = vector.load %arg3[%c0_48, %c0_49, %c0_50] : memref<1x1x256xf32, #tpu.memory_space<vmem>>, vector<1x1x256xf32>
    %69 = vector.shape_cast %68 : vector<1x1x256xf32> to vector<1x256xf32>
    %c2 = arith.constant 2 : index
    %c0_51 = arith.constant 0 : index
    %70 = vector.load %arg10[%c2, %c0_51] : memref<4x256xf32, #tpu.memory_space<vmem>>, vector<1x256xf32>
    tpu.vector_store %arg10[%c2, %c0_51], %69 {strides = array<i32>} : memref<4x256xf32, #tpu.memory_space<vmem>>, vector<1x256xf32>,
    %cst_52 = arith.constant 0.000000e+00 : f32
    %71 = vector.broadcast %cst_52 : f32 to vector<1x256xf32>
    %c3 = arith.constant 3 : index
    %c0_53 = arith.constant 0 : index
    %72 = vector.load %arg10[%c3, %c0_53] : memref<4x256xf32, #tpu.memory_space<vmem>>, vector<1x256xf32>
    tpu.vector_store %arg10[%c3, %c0_53], %71 {strides = array<i32>} : memref<4x256xf32, #tpu.memory_space<vmem>>, vector<1x256xf32>,
    %c0_54 = arith.constant 0 : index
    %c0_55 = arith.constant 0 : index
    %73 = vector.load %arg10[%c0_54, %c0_55] : memref<4x256xf32, #tpu.memory_space<vmem>>, vector<4x256xf32>
    %cst_56 = arith.constant 0.000000e+00 : f32
    %74 = vector.broadcast %cst_56 : f32 to vector<4x17xf32>
    %75 = vector.extract_strided_slice %73 {offsets = [0, 0], sizes = [4, 239], strides = [1, 1]} : vector<4x256xf32> to vector<4x239xf32>
    %76 = tpu.concatenate %74, %75 in 1 : vector<4x17xf32>, vector<4x239xf32> -> vector<4x256xf32>
    %c0_57 = arith.constant 0 : index
    %c0_58 = arith.constant 0 : index
    %77 = vector.load %arg4[%c0_57, %c0_58] : memref<9x256xf32, #tpu.memory_space<vmem>>, vector<1x256xf32>
    %78 = vector.broadcast %77 : vector<1x256xf32> to vector<4x256xf32>
    %79 = arith.mulf %76, %78 : vector<4x256xf32>
    %c0_59 = arith.constant 0 : index
    %c0_60 = arith.constant 0 : index
    %80 = vector.load %arg11[%c0_59, %c0_60] : memref<36x256xf32, #tpu.memory_space<vmem>>, vector<4x256xf32>
    tpu.vector_store %arg11[%c0_59, %c0_60], %79 {strides = array<i32>} : memref<36x256xf32, #tpu.memory_space<vmem>>, vector<4x256xf32>,
    %cst_61 = arith.constant 0.000000e+00 : f32
    %81 = vector.broadcast %cst_61 : f32 to vector<4x16xf32>
    %82 = vector.extract_strided_slice %73 {offsets = [0, 0], sizes = [4, 240], strides = [1, 1]} : vector<4x256xf32> to vector<4x240xf32>
    %83 = tpu.concatenate %81, %82 in 1 : vector<4x16xf32>, vector<4x240xf32> -> vector<4x256xf32>
    %c1_62 = arith.constant 1 : index
    %c0_63 = arith.constant 0 : index
    %84 = vector.load %arg4[%c1_62, %c0_63] : memref<9x256xf32, #tpu.memory_space<vmem>>, vector<1x256xf32>
    %85 = vector.broadcast %84 : vector<1x256xf32> to vector<4x256xf32>
    %86 = arith.mulf %83, %85 : vector<4x256xf32>
    %c4 = arith.constant 4 : index
    %c0_64 = arith.constant 0 : index
    %87 = vector.load %arg11[%c4, %c0_64] : memref<36x256xf32, #tpu.memory_space<vmem>>, vector<4x256xf32>
    tpu.vector_store %arg11[%c4, %c0_64], %86 {strides = array<i32>} : memref<36x256xf32, #tpu.memory_space<vmem>>, vector<4x256xf32>,
    %cst_65 = arith.constant 0.000000e+00 : f32
    %88 = vector.broadcast %cst_65 : f32 to vector<4x15xf32>
    %89 = vector.extract_strided_slice %73 {offsets = [0, 0], sizes = [4, 241], strides = [1, 1]} : vector<4x256xf32> to vector<4x241xf32>
    %90 = tpu.concatenate %88, %89 in 1 : vector<4x15xf32>, vector<4x241xf32> -> vector<4x256xf32>
    %c2_66 = arith.constant 2 : index
    %c0_67 = arith.constant 0 : index
    %91 = vector.load %arg4[%c2_66, %c0_67] : memref<9x256xf32, #tpu.memory_space<vmem>>, vector<1x256xf32>
    %92 = vector.broadcast %91 : vector<1x256xf32> to vector<4x256xf32>
    %93 = arith.mulf %90, %92 : vector<4x256xf32>
    %c8 = arith.constant 8 : index
    %c0_68 = arith.constant 0 : index
    %94 = vector.load %arg11[%c8, %c0_68] : memref<36x256xf32, #tpu.memory_space<vmem>>, vector<4x256xf32>
    tpu.vector_store %arg11[%c8, %c0_68], %93 {strides = array<i32>} : memref<36x256xf32, #tpu.memory_space<vmem>>, vector<4x256xf32>,
    %cst_69 = arith.constant 0.000000e+00 : f32
    %95 = vector.broadcast %cst_69 : f32 to vector<4x1xf32>
    %96 = vector.extract_strided_slice %73 {offsets = [0, 0], sizes = [4, 255], strides = [1, 1]} : vector<4x256xf32> to vector<4x255xf32>
    %97 = tpu.concatenate %95, %96 in 1 : vector<4x1xf32>, vector<4x255xf32> -> vector<4x256xf32>
    %c3_70 = arith.constant 3 : index
    %c0_71 = arith.constant 0 : index
    %98 = vector.load %arg4[%c3_70, %c0_71] : memref<9x256xf32, #tpu.memory_space<vmem>>, vector<1x256xf32>
    %99 = vector.broadcast %98 : vector<1x256xf32> to vector<4x256xf32>
    %100 = arith.mulf %97, %99 : vector<4x256xf32>
    %c12 = arith.constant 12 : index
    %c0_72 = arith.constant 0 : index
    %101 = vector.load %arg11[%c12, %c0_72] : memref<36x256xf32, #tpu.memory_space<vmem>>, vector<4x256xf32>
    tpu.vector_store %arg11[%c12, %c0_72], %100 {strides = array<i32>} : memref<36x256xf32, #tpu.memory_space<vmem>>, vector<4x256xf32>,
    %c16 = arith.constant 16 : index
    %c0_73 = arith.constant 0 : index
    %102 = vector.load %arg11[%c16, %c0_73] : memref<36x256xf32, #tpu.memory_space<vmem>>, vector<4x256xf32>
    tpu.vector_store %arg11[%c16, %c0_73], %73 {strides = array<i32>} : memref<36x256xf32, #tpu.memory_space<vmem>>, vector<4x256xf32>,
    %cst_74 = arith.constant 0.000000e+00 : f32
    %103 = vector.broadcast %cst_74 : f32 to vector<4x1xf32>
    %104 = vector.extract_strided_slice %73 {offsets = [0, 1], sizes = [4, 255], strides = [1, 1]} : vector<4x256xf32> to vector<4x255xf32>
    %105 = tpu.concatenate %104, %103 in 1 : vector<4x255xf32>, vector<4x1xf32> -> vector<4x256xf32>
    %c5 = arith.constant 5 : index
    %c0_75 = arith.constant 0 : index
    %106 = vector.load %arg4[%c5, %c0_75] : memref<9x256xf32, #tpu.memory_space<vmem>>, vector<1x256xf32>
    %107 = vector.broadcast %106 : vector<1x256xf32> to vector<4x256xf32>
    %108 = arith.mulf %105, %107 : vector<4x256xf32>
    %c20 = arith.constant 20 : index
    %c0_76 = arith.constant 0 : index
    %109 = vector.load %arg11[%c20, %c0_76] : memref<36x256xf32, #tpu.memory_space<vmem>>, vector<4x256xf32>
    tpu.vector_store %arg11[%c20, %c0_76], %108 {strides = array<i32>} : memref<36x256xf32, #tpu.memory_space<vmem>>, vector<4x256xf32>,
    %cst_77 = arith.constant 0.000000e+00 : f32
    %110 = vector.broadcast %cst_77 : f32 to vector<4x15xf32>
    %111 = vector.extract_strided_slice %73 {offsets = [0, 15], sizes = [4, 241], strides = [1, 1]} : vector<4x256xf32> to vector<4x241xf32>
    %112 = tpu.concatenate %111, %110 in 1 : vector<4x241xf32>, vector<4x15xf32> -> vector<4x256xf32>
    %c6 = arith.constant 6 : index
    %c0_78 = arith.constant 0 : index
    %113 = vector.load %arg4[%c6, %c0_78] : memref<9x256xf32, #tpu.memory_space<vmem>>, vector<1x256xf32>
    %114 = vector.broadcast %113 : vector<1x256xf32> to vector<4x256xf32>
    %115 = arith.mulf %112, %114 : vector<4x256xf32>
    %c24 = arith.constant 24 : index
    %c0_79 = arith.constant 0 : index
    %116 = vector.load %arg11[%c24, %c0_79] : memref<36x256xf32, #tpu.memory_space<vmem>>, vector<4x256xf32>
    tpu.vector_store %arg11[%c24, %c0_79], %115 {strides = array<i32>} : memref<36x256xf32, #tpu.memory_space<vmem>>, vector<4x256xf32>,
    %cst_80 = arith.constant 0.000000e+00 : f32
    %117 = vector.broadcast %cst_80 : f32 to vector<4x16xf32>
    %118 = vector.extract_strided_slice %73 {offsets = [0, 16], sizes = [4, 240], strides = [1, 1]} : vector<4x256xf32> to vector<4x240xf32>
    %119 = tpu.concatenate %118, %117 in 1 : vector<4x240xf32>, vector<4x16xf32> -> vector<4x256xf32>
    %c7 = arith.constant 7 : index
    %c0_81 = arith.constant 0 : index
    %120 = vector.load %arg4[%c7, %c0_81] : memref<9x256xf32, #tpu.memory_space<vmem>>, vector<1x256xf32>
    %121 = vector.broadcast %120 : vector<1x256xf32> to vector<4x256xf32>
    %122 = arith.mulf %119, %121 : vector<4x256xf32>
    %c28 = arith.constant 28 : index
    %c0_82 = arith.constant 0 : index
    %123 = vector.load %arg11[%c28, %c0_82] : memref<36x256xf32, #tpu.memory_space<vmem>>, vector<4x256xf32>
    tpu.vector_store %arg11[%c28, %c0_82], %122 {strides = array<i32>} : memref<36x256xf32, #tpu.memory_space<vmem>>, vector<4x256xf32>,
    %cst_83 = arith.constant 0.000000e+00 : f32
    %124 = vector.broadcast %cst_83 : f32 to vector<4x17xf32>
    %125 = vector.extract_strided_slice %73 {offsets = [0, 17], sizes = [4, 239], strides = [1, 1]} : vector<4x256xf32> to vector<4x239xf32>
    %126 = tpu.concatenate %125, %124 in 1 : vector<4x239xf32>, vector<4x17xf32> -> vector<4x256xf32>
    %c8_84 = arith.constant 8 : index
    %c0_85 = arith.constant 0 : index
    %127 = vector.load %arg4[%c8_84, %c0_85] : memref<9x256xf32, #tpu.memory_space<vmem>>, vector<1x256xf32>
    %128 = vector.broadcast %127 : vector<1x256xf32> to vector<4x256xf32>
    %129 = arith.mulf %126, %128 : vector<4x256xf32>
    %c32 = arith.constant 32 : index
    %c0_86 = arith.constant 0 : index
    %130 = vector.load %arg11[%c32, %c0_86] : memref<36x256xf32, #tpu.memory_space<vmem>>, vector<4x256xf32>
    tpu.vector_store %arg11[%c32, %c0_86], %129 {strides = array<i32>} : memref<36x256xf32, #tpu.memory_space<vmem>>, vector<4x256xf32>,
    %c0_87 = arith.constant 0 : index
    %c0_88 = arith.constant 0 : index
    %131 = vector.load %arg5[%c0_87, %c0_88] : memref<32x36xf32, #tpu.memory_space<vmem>>, vector<32x36xf32>
    %c0_89 = arith.constant 0 : index
    %c0_90 = arith.constant 0 : index
    %132 = vector.load %arg11[%c0_89, %c0_90] : memref<36x256xf32, #tpu.memory_space<vmem>>, vector<36x256xf32>
    %cst_91 = arith.constant dense<0.000000e+00> : vector<32x256xf32>
    %133 = tpu.matmul %131, %132, %cst_91 {dimension_numbers = #tpu.dot_dimension_numbers<[1], [0], [0], [1], [0, 0, 1, 1], [], []>} : vector<32x36xf32>, vector<36x256xf32>, vector<32x256xf32> -> vector<32x256xf32>
    %c0_92 = arith.constant 0 : index
    %c0_93 = arith.constant 0 : index
    %134 = vector.load %arg6[%c0_92, %c0_93] : memref<32x1xf32, #tpu.memory_space<vmem>>, vector<32x1xf32>
    %135 = vector.broadcast %134 : vector<32x1xf32> to vector<32x256xf32>
    %136 = arith.addf %133, %135 : vector<32x256xf32>
    %cst_94 = arith.constant 0.000000e+00 : f32
    %137 = vector.broadcast %cst_94 : f32 to vector<32x256xf32>
    %138 = arith.maximumf %136, %137 : vector<32x256xf32>
    %cst_95 = arith.constant 0.000000e+00 : f32
    %139 = vector.broadcast %cst_95 : f32 to vector<32x17xf32>
    %140 = vector.extract_strided_slice %138 {offsets = [0, 0], sizes = [32, 239], strides = [1, 1]} : vector<32x256xf32> to vector<32x239xf32>
    %141 = tpu.concatenate %139, %140 in 1 : vector<32x17xf32>, vector<32x239xf32> -> vector<32x256xf32>
    %c0_96 = arith.constant 0 : index
    %c0_97 = arith.constant 0 : index
    %142 = vector.load %arg4[%c0_96, %c0_97] : memref<9x256xf32, #tpu.memory_space<vmem>>, vector<1x256xf32>
    %143 = vector.broadcast %142 : vector<1x256xf32> to vector<32x256xf32>
    %144 = arith.mulf %141, %143 : vector<32x256xf32>
    %c0_98 = arith.constant 0 : index
    %c0_99 = arith.constant 0 : index
    %145 = vector.load %arg12[%c0_98, %c0_99] : memref<288x256xf32, #tpu.memory_space<vmem>>, vector<32x256xf32>
    tpu.vector_store %arg12[%c0_98, %c0_99], %144 {strides = array<i32>} : memref<288x256xf32, #tpu.memory_space<vmem>>, vector<32x256xf32>,
    %cst_100 = arith.constant 0.000000e+00 : f32
    %146 = vector.broadcast %cst_100 : f32 to vector<32x16xf32>
    %147 = vector.extract_strided_slice %138 {offsets = [0, 0], sizes = [32, 240], strides = [1, 1]} : vector<32x256xf32> to vector<32x240xf32>
    %148 = tpu.concatenate %146, %147 in 1 : vector<32x16xf32>, vector<32x240xf32> -> vector<32x256xf32>
    %c1_101 = arith.constant 1 : index
    %c0_102 = arith.constant 0 : index
    %149 = vector.load %arg4[%c1_101, %c0_102] : memref<9x256xf32, #tpu.memory_space<vmem>>, vector<1x256xf32>
    %150 = vector.broadcast %149 : vector<1x256xf32> to vector<32x256xf32>
    %151 = arith.mulf %148, %150 : vector<32x256xf32>
    %c32_103 = arith.constant 32 : index
    %c0_104 = arith.constant 0 : index
    %152 = vector.load %arg12[%c32_103, %c0_104] : memref<288x256xf32, #tpu.memory_space<vmem>>, vector<32x256xf32>
    tpu.vector_store %arg12[%c32_103, %c0_104], %151 {strides = array<i32>} : memref<288x256xf32, #tpu.memory_space<vmem>>, vector<32x256xf32>,
    %cst_105 = arith.constant 0.000000e+00 : f32
    %153 = vector.broadcast %cst_105 : f32 to vector<32x15xf32>
    %154 = vector.extract_strided_slice %138 {offsets = [0, 0], sizes = [32, 241], strides = [1, 1]} : vector<32x256xf32> to vector<32x241xf32>
    %155 = tpu.concatenate %153, %154 in 1 : vector<32x15xf32>, vector<32x241xf32> -> vector<32x256xf32>
    %c2_106 = arith.constant 2 : index
    %c0_107 = arith.constant 0 : index
    %156 = vector.load %arg4[%c2_106, %c0_107] : memref<9x256xf32, #tpu.memory_space<vmem>>, vector<1x256xf32>
    %157 = vector.broadcast %156 : vector<1x256xf32> to vector<32x256xf32>
    %158 = arith.mulf %155, %157 : vector<32x256xf32>
    %c64 = arith.constant 64 : index
    %c0_108 = arith.constant 0 : index
    %159 = vector.load %arg12[%c64, %c0_108] : memref<288x256xf32, #tpu.memory_space<vmem>>, vector<32x256xf32>
    tpu.vector_store %arg12[%c64, %c0_108], %158 {strides = array<i32>} : memref<288x256xf32, #tpu.memory_space<vmem>>, vector<32x256xf32>,
    %cst_109 = arith.constant 0.000000e+00 : f32
    %160 = vector.broadcast %cst_109 : f32 to vector<32x1xf32>
    %161 = vector.extract_strided_slice %138 {offsets = [0, 0], sizes = [32, 255], strides = [1, 1]} : vector<32x256xf32> to vector<32x255xf32>
    %162 = tpu.concatenate %160, %161 in 1 : vector<32x1xf32>, vector<32x255xf32> -> vector<32x256xf32>
    %c3_110 = arith.constant 3 : index
    %c0_111 = arith.constant 0 : index
    %163 = vector.load %arg4[%c3_110, %c0_111] : memref<9x256xf32, #tpu.memory_space<vmem>>, vector<1x256xf32>
    %164 = vector.broadcast %163 : vector<1x256xf32> to vector<32x256xf32>
    %165 = arith.mulf %162, %164 : vector<32x256xf32>
    %c96 = arith.constant 96 : index
    %c0_112 = arith.constant 0 : index
    %166 = vector.load %arg12[%c96, %c0_112] : memref<288x256xf32, #tpu.memory_space<vmem>>, vector<32x256xf32>
    tpu.vector_store %arg12[%c96, %c0_112], %165 {strides = array<i32>} : memref<288x256xf32, #tpu.memory_space<vmem>>, vector<32x256xf32>,
    %c128 = arith.constant 128 : index
    %c0_113 = arith.constant 0 : index
    %167 = vector.load %arg12[%c128, %c0_113] : memref<288x256xf32, #tpu.memory_space<vmem>>, vector<32x256xf32>
    tpu.vector_store %arg12[%c128, %c0_113], %138 {strides = array<i32>} : memref<288x256xf32, #tpu.memory_space<vmem>>, vector<32x256xf32>,
    %cst_114 = arith.constant 0.000000e+00 : f32
    %168 = vector.broadcast %cst_114 : f32 to vector<32x1xf32>
    %169 = vector.extract_strided_slice %138 {offsets = [0, 1], sizes = [32, 255], strides = [1, 1]} : vector<32x256xf32> to vector<32x255xf32>
    %170 = tpu.concatenate %169, %168 in 1 : vector<32x255xf32>, vector<32x1xf32> -> vector<32x256xf32>
    %c5_115 = arith.constant 5 : index
    %c0_116 = arith.constant 0 : index
    %171 = vector.load %arg4[%c5_115, %c0_116] : memref<9x256xf32, #tpu.memory_space<vmem>>, vector<1x256xf32>
    %172 = vector.broadcast %171 : vector<1x256xf32> to vector<32x256xf32>
    %173 = arith.mulf %170, %172 : vector<32x256xf32>
    %c160 = arith.constant 160 : index
    %c0_117 = arith.constant 0 : index
    %174 = vector.load %arg12[%c160, %c0_117] : memref<288x256xf32, #tpu.memory_space<vmem>>, vector<32x256xf32>
    tpu.vector_store %arg12[%c160, %c0_117], %173 {strides = array<i32>} : memref<288x256xf32, #tpu.memory_space<vmem>>, vector<32x256xf32>,
    %cst_118 = arith.constant 0.000000e+00 : f32
    %175 = vector.broadcast %cst_118 : f32 to vector<32x15xf32>
    %176 = vector.extract_strided_slice %138 {offsets = [0, 15], sizes = [32, 241], strides = [1, 1]} : vector<32x256xf32> to vector<32x241xf32>
    %177 = tpu.concatenate %176, %175 in 1 : vector<32x241xf32>, vector<32x15xf32> -> vector<32x256xf32>
    %c6_119 = arith.constant 6 : index
    %c0_120 = arith.constant 0 : index
    %178 = vector.load %arg4[%c6_119, %c0_120] : memref<9x256xf32, #tpu.memory_space<vmem>>, vector<1x256xf32>
    %179 = vector.broadcast %178 : vector<1x256xf32> to vector<32x256xf32>
    %180 = arith.mulf %177, %179 : vector<32x256xf32>
    %c192 = arith.constant 192 : index
    %c0_121 = arith.constant 0 : index
    %181 = vector.load %arg12[%c192, %c0_121] : memref<288x256xf32, #tpu.memory_space<vmem>>, vector<32x256xf32>
    tpu.vector_store %arg12[%c192, %c0_121], %180 {strides = array<i32>} : memref<288x256xf32, #tpu.memory_space<vmem>>, vector<32x256xf32>,
    %cst_122 = arith.constant 0.000000e+00 : f32
    %182 = vector.broadcast %cst_122 : f32 to vector<32x16xf32>
    %183 = vector.extract_strided_slice %138 {offsets = [0, 16], sizes = [32, 240], strides = [1, 1]} : vector<32x256xf32> to vector<32x240xf32>
    %184 = tpu.concatenate %183, %182 in 1 : vector<32x240xf32>, vector<32x16xf32> -> vector<32x256xf32>
    %c7_123 = arith.constant 7 : index
    %c0_124 = arith.constant 0 : index
    %185 = vector.load %arg4[%c7_123, %c0_124] : memref<9x256xf32, #tpu.memory_space<vmem>>, vector<1x256xf32>
    %186 = vector.broadcast %185 : vector<1x256xf32> to vector<32x256xf32>
    %187 = arith.mulf %184, %186 : vector<32x256xf32>
    %c224 = arith.constant 224 : index
    %c0_125 = arith.constant 0 : index
    %188 = vector.load %arg12[%c224, %c0_125] : memref<288x256xf32, #tpu.memory_space<vmem>>, vector<32x256xf32>
    tpu.vector_store %arg12[%c224, %c0_125], %187 {strides = array<i32>} : memref<288x256xf32, #tpu.memory_space<vmem>>, vector<32x256xf32>,
    %cst_126 = arith.constant 0.000000e+00 : f32
    %189 = vector.broadcast %cst_126 : f32 to vector<32x17xf32>
    %190 = vector.extract_strided_slice %138 {offsets = [0, 17], sizes = [32, 239], strides = [1, 1]} : vector<32x256xf32> to vector<32x239xf32>
    %191 = tpu.concatenate %190, %189 in 1 : vector<32x239xf32>, vector<32x17xf32> -> vector<32x256xf32>
    %c8_127 = arith.constant 8 : index
    %c0_128 = arith.constant 0 : index
    %192 = vector.load %arg4[%c8_127, %c0_128] : memref<9x256xf32, #tpu.memory_space<vmem>>, vector<1x256xf32>
    %193 = vector.broadcast %192 : vector<1x256xf32> to vector<32x256xf32>
    %194 = arith.mulf %191, %193 : vector<32x256xf32>
    %c256_129 = arith.constant 256 : index
    %c0_130 = arith.constant 0 : index
    %195 = vector.load %arg12[%c256_129, %c0_130] : memref<288x256xf32, #tpu.memory_space<vmem>>, vector<32x256xf32>
    tpu.vector_store %arg12[%c256_129, %c0_130], %194 {strides = array<i32>} : memref<288x256xf32, #tpu.memory_space<vmem>>, vector<32x256xf32>,
    %c0_131 = arith.constant 0 : index
    %c0_132 = arith.constant 0 : index
    %196 = vector.load %arg7[%c0_131, %c0_132] : memref<2x288xf32, #tpu.memory_space<vmem>>, vector<2x288xf32>
    %c0_133 = arith.constant 0 : index
    %c0_134 = arith.constant 0 : index
    %197 = vector.load %arg12[%c0_133, %c0_134] : memref<288x256xf32, #tpu.memory_space<vmem>>, vector<288x256xf32>
    %cst_135 = arith.constant dense<0.000000e+00> : vector<2x256xf32>
    %198 = tpu.matmul %196, %197, %cst_135 {dimension_numbers = #tpu.dot_dimension_numbers<[1], [0], [0], [1], [0, 0, 1, 1], [], []>} : vector<2x288xf32>, vector<288x256xf32>, vector<2x256xf32> -> vector<2x256xf32>
    %c0_136 = arith.constant 0 : index
    %c0_137 = arith.constant 0 : index
    %199 = vector.load %arg8[%c0_136, %c0_137] : memref<2x1xf32, #tpu.memory_space<vmem>>, vector<2x1xf32>
    %200 = vector.broadcast %199 : vector<2x1xf32> to vector<2x256xf32>
    %201 = arith.addf %198, %200 : vector<2x256xf32>
    %202 = vector.extract_strided_slice %201 {offsets = [0, 0], sizes = [1, 256], strides = [1, 1]} : vector<2x256xf32> to vector<1x256xf32>
    %203 = arith.addf %202, %61 : vector<1x256xf32>
    %204 = vector.extract_strided_slice %201 {offsets = [1, 0], sizes = [1, 256], strides = [1, 1]} : vector<2x256xf32> to vector<1x256xf32>
    %205 = arith.addf %204, %65 : vector<1x256xf32>
    %206 = arith.mulf %203, %203 : vector<1x256xf32>
    %207 = arith.mulf %205, %205 : vector<1x256xf32>
    %208 = arith.addf %206, %207 : vector<1x256xf32>
    %209 = math.sqrt %208 : vector<1x256xf32>
    %cst_138 = arith.constant 0.00141637912 : f32
    %210 = vector.broadcast %cst_138 : f32 to vector<1x256xf32>
    %211 = arith.minimumf %209, %210 : vector<1x256xf32>
    %c0_139 = arith.constant 0 : index
    %c0_140 = arith.constant 0 : index
    %c0_141 = arith.constant 0 : index
    %212 = vector.load %arg9[%c0_139, %c0_140, %c0_141] : memref<1x1x256xf32, #tpu.memory_space<vmem>>, vector<1x1x256xf32>
    %213 = vector.shape_cast %212 : vector<1x1x256xf32> to vector<1x256xf32>
    %214 = vector.shape_cast %211 : vector<1x256xf32> to vector<1x1x256xf32>
    tpu.vector_store %arg9[%c0_139, %c0_140, %c0_141], %214 {strides = array<i32>} : memref<1x1x256xf32, #tpu.memory_space<vmem>>, vector<1x1x256xf32>,
    return
  }
  func.func @transform_0(%arg0: i32) -> (i32, i32, i32) {
    %c0_i32 = arith.constant 0 : i32
    %c0_i32_0 = arith.constant 0 : i32
    %c0_i32_1 = arith.constant 0 : i32
    return %arg0, %c0_i32, %c0_i32_0 : i32, i32, i32
  }
  func.func @transform_1(%arg0: i32) -> (i32, i32, i32) {
    %c0_i32 = arith.constant 0 : i32
    %c0_i32_0 = arith.constant 0 : i32
    %c0_i32_1 = arith.constant 0 : i32
    return %arg0, %c0_i32, %c0_i32_0 : i32, i32, i32
  }
  func.func @transform_2(%arg0: i32) -> (i32, i32, i32) {
    %c0_i32 = arith.constant 0 : i32
    %c0_i32_0 = arith.constant 0 : i32
    %c0_i32_1 = arith.constant 0 : i32
    return %arg0, %c0_i32, %c0_i32_0 : i32, i32, i32
  }
  func.func @transform_3(%arg0: i32) -> (i32, i32) {
    %c0_i32 = arith.constant 0 : i32
    %c0_i32_0 = arith.constant 0 : i32
    %c0_i32_1 = arith.constant 0 : i32
    return %c0_i32, %c0_i32_0 : i32, i32
  }
  func.func @transform_4(%arg0: i32) -> (i32, i32) {
    %c0_i32 = arith.constant 0 : i32
    %c0_i32_0 = arith.constant 0 : i32
    %c0_i32_1 = arith.constant 0 : i32
    return %c0_i32, %c0_i32_0 : i32, i32
  }
  func.func @transform_5(%arg0: i32) -> (i32, i32) {
    %c0_i32 = arith.constant 0 : i32
    %c0_i32_0 = arith.constant 0 : i32
    %c0_i32_1 = arith.constant 0 : i32
    return %c0_i32, %c0_i32_0 : i32, i32
  }
  func.func @transform_6(%arg0: i32) -> (i32, i32) {
    %c0_i32 = arith.constant 0 : i32
    %c0_i32_0 = arith.constant 0 : i32
    %c0_i32_1 = arith.constant 0 : i32
    return %c0_i32, %c0_i32_0 : i32, i32
  }
  func.func @transform_7(%arg0: i32) -> (i32, i32) {
    %c0_i32 = arith.constant 0 : i32
    %c0_i32_0 = arith.constant 0 : i32
    %c0_i32_1 = arith.constant 0 : i32
    return %c0_i32, %c0_i32_0 : i32, i32
  }
  func.func @transform_8(%arg0: i32) -> (i32, i32, i32) {
    %c0_i32 = arith.constant 0 : i32
    %c0_i32_0 = arith.constant 0 : i32
    %c0_i32_1 = arith.constant 0 : i32
    return %arg0, %c0_i32, %c0_i32_0 : i32, i32, i32
  }
}

</mosaic_0001>

<bundles_post_ra>
// kernel: mymodel_v7_forward.3
= control target key start
LH: loop header
LB: loop body
LE: loop exit
PB: predicated region body
PF: predicated region fallthrough
CT: control target
= control target key end

     0   :  { %s1923_s27 = smov 0   ;;  %s2505_s0 = inlined_call_operand.vmem [shape: f32[2,2,1024], index: 0, kind: input, shape index: {}]   ;;  %s2506_s1 = inlined_call_operand.vmem [shape: f32[2,2,1024], index: 1, kind: input, shape index: {}]   ;;  %s2507_s2 = inlined_call_operand.vmem [shape: f32[2,1,256], index: 2, kind: input, shape index: {}]   ;;  %s2508_s3 = inlined_call_operand.vmem [shape: f32[9,256], index: 3, kind: input, shape index: {}]   ;;  %s2509_s4 = inlined_call_operand.vmem [shape: f32[32,36], index: 4, kind: input, shape index: {}]   ;;  %s2510_s5 = inlined_call_operand.vmem [shape: f32[32,1], index: 5, kind: input, shape index: {}]   ;;  %s2511_s6 = inlined_call_operand.vmem [shape: f32[2,288], index: 6, kind: input, shape index: {}]   ;;  %s2512_s7 = inlined_call_operand.vmem [shape: f32[2,1], index: 7, kind: input, shape index: {}]   ;;  %s2513_s8 = inlined_call_operand.vmem [shape: f32[2,1,256], index: 8, kind: output, shape index: {}]  }
   0x1 LB: > { %s1696_s28 = sadd.s32 4294967295, %s1864_s27   ;;  %p1700_p0 = scmp.ge.s32.totalorder %s1864_s27, 1  ;;  %s1864_s27 = sphi %s1923_s27, %s18_s27  }
   0x2   : > { %p281_p1 = scmp.lt.s32.totalorder %s1864_s27, 3 }
   0x4   : > { %p282_p2 = pnand %p1700_p0, %p281_p1 }
   0x6   : > { %285 = sbr.rel (%p282_p2) target bundleno = 910 (0x38e), region = 52 }
   0xd   : > { %p323_p3 = scmp.lt.s32.totalorder %s1696_s28, 1  ;;  %v403_v0 = vlaneseq  ;;  %v1866_v1 = vmov 0.0   ;;  %v2516_v2 = vmov 0  ;;  %s1867_s18 = smov 1   ;;  %v666_v52 = vld [vmem:[%s2510_s5] sm:$0xff]  ;;  %v667_v53 = vld [vmem:[%s2510_s5 + $0x8] sm:$0xff] }
   0xe   : > { %774 = vmatprep.mubr.f32.mxu0 %v1866_v1  ;;  %s1868_s19 = smov 16   ;;  %s1869_s20 = smov 112   ;;  %v1875_v54 = vmov 0   ;;  %v669_v55 = vld [vmem:[%s2510_s5 + $0x18] sm:$0xff]  ;;  %v668_v56 = vld [vmem:[%s2510_s5 + $0x10] sm:$0xff]  ;;  %vm505_vm1 = vcmask 7168  }
   0xf   : > { %s2524_s28 = smov (!%p323_p3, %s1696_s28), 1  ;;  %vm1935_vm0 = vcmp.lt.s32.totalorder %v403_v0, 256  ;;  %s1870_s21 = smov 17   ;;  %1850 = vset.pattern.permute.xlu0 %v1875_v54  ;;  %1851 = vset.pattern.permute.xlu1 %v1875_v54  ;;  %v2006_v57 = vshrl.u32 %v403_v0, 7  ;;  %vm447_vm2 = vcmask 130048   ;;  %vm422_vm3 = vcmask 138240  }
  0x10   : > { %v2517_v2 = vsel %vm1935_vm0, 4294967295, %v2516_v2  ;;  %414 = vst.msk [vmem:[#allocation2 + $0x3] ss:$4 sm:$0x3] %vm1935_vm0, %v1866_v1  ;;  %s1744_s29 = sshll.u32 %s2524_s28, 4  ;;  %s1705_s30 = sshll.u32 %s2524_s28, 1 }
  0x11   : > { %2518 = vst [vmem:[#allocation5_spill] sm:$0xff] %v2517_v2  ;;  %s327_s11 = scalar_lea.vmem %s2505_s0, %s1744_s29  ;;  %s1950_s14 = scalar_lea.vmem %s2506_s1, %s1744_s29  ;;  %2519 = vst [vmem:[#allocation6_spill] sm:$0xff] %v2006_v57  ;;  %v2009_v58 = vsub.s32 0, %v2006_v57  ;;  %v1723_v59 = vld [vmem:[%s2508_s3 + $0x3] ss:$8 sm:$0x3] }
  0x12   : > { %v341_v3 = vld [vmem:[%s327_s11] ss:$2 sm:$0x3]  ;;  %v1707_v4 = vld [vmem:[%s327_s11 + $0x1] ss:$2 sm:$0x3]  ;;  %s336_s17 = scalar_lea.vmem %s2507_s2, %s1705_s30 }
  0x13   : > { %v344_v5 = vld [vmem:[%s1950_s14] ss:$2 sm:$0x3]  ;;  %v1708_v6 = vld [vmem:[%s1950_s14 + $0x1] ss:$2 sm:$0x3]  ;;  %v516_v61 = vrot.slane %v1723_v59, %v2009_v58 }
  0x14   : > { %v347_v7 = vmul.f32 %v344_v5, %v341_v3  ;;  %v348_v8 = vmul.f32 %v1708_v6, %v1707_v4  ;;  %v351_v9 = vmul.f32 %v1707_v4, %v344_v5  ;;  %v352_v10 = vmul.f32 %v1708_v6, %v341_v3  ;;  %v1709_v11 = vld [vmem:[%s327_s11 + $0x4] ss:$2 sm:$0x3]  ;;  %v1710_v12 = vld [vmem:[%s327_s11 + $0x5] ss:$2 sm:$0x3] }
  0x15   : > { %v1711_v13 = vld [vmem:[%s1950_s14 + $0x4] ss:$2 sm:$0x3]  ;;  %v1712_v14 = vld [vmem:[%s1950_s14 + $0x5] ss:$2 sm:$0x3] }
  0x16   : > { %v349_v15 = vadd.f32 %v348_v8, %v347_v7  ;;  %v363_v16 = vmul.f32 %v1711_v13, %v1709_v11  ;;  %v364_v17 = vmul.f32 %v1712_v14, %v1710_v12  ;;  %v1713_v18 = vld [vmem:[%s327_s11 + $0x8] ss:$2 sm:$0x3]  ;;  %v1714_v19 = vld [vmem:[%s327_s11 + $0x9] ss:$2 sm:$0x3]  ;;  %v353_v20 = vsub.f32 %v351_v9, %v352_v10 }
  0x17   : > { %v367_v21 = vmul.f32 %v1711_v13, %v1710_v12  ;;  %v368_v22 = vmul.f32 %v1712_v14, %v1709_v11  ;;  %v1715_v23 = vld [vmem:[%s1950_s14 + $0x8] ss:$2 sm:$0x3]  ;;  %v1716_v24 = vld [vmem:[%s1950_s14 + $0x9] ss:$2 sm:$0x3] }
  0x18   : > { %v365_v25 = vadd.f32 %v364_v17, %v363_v16  ;;  %v379_v26 = vmul.f32 %v1715_v23, %v1713_v18  ;;  %v380_v27 = vmul.f32 %v1716_v24, %v1714_v19  ;;  %v383_v28 = vmul.f32 %v1715_v23, %v1714_v19  ;;  %v1717_v29 = vld [vmem:[%s327_s11 + $0xc] ss:$2 sm:$0x3]  ;;  %v1718_v30 = vld [vmem:[%s327_s11 + $0xd] ss:$2 sm:$0x3] }
  0x19   : > { %v369_v31 = vsub.f32 %v367_v21, %v368_v22  ;;  %v384_v32 = vmul.f32 %v1716_v24, %v1713_v18  ;;  %v1719_v33 = vld [vmem:[%s1950_s14 + $0xc] ss:$2 sm:$0x3]  ;;  %v1720_v34 = vld [vmem:[%s1950_s14 + $0xd] ss:$2 sm:$0x3] }
  0x1a   : > { %v366_v35 = vadd.f32 %v365_v25, %v349_v15  ;;  %v381_v36 = vadd.f32 %v380_v27, %v379_v26  ;;  %v395_v37 = vmul.f32 %v1719_v33, %v1717_v29  ;;  %v396_v38 = vmul.f32 %v1720_v34, %v1718_v30  ;;  %v410_v39 = vld [vmem:[%s336_s17] sm:$0x3]  ;;  %s1871_s22 = smov 15   ;;  %s1872_s23 = smov 127  }
  0x1b   : > { %v370_v40 = vadd.f32 %v369_v31, %v353_v20  ;;  %v385_v41 = vsub.f32 %v383_v28, %v384_v32  ;;  %v399_v42 = vmul.f32 %v1719_v33, %v1718_v30  ;;  %v400_v43 = vmul.f32 %v1720_v34, %v1717_v29  ;;  %412 = vst.msk [vmem:[#allocation2 + $0x2] ss:$4 sm:$0x3] %vm1935_vm0, %v410_v39  ;;  %s1873_s24 = smov 113   ;;  %s1874_s25 = smov 111  }
  0x1c   : > { %v382_v44 = vadd.f32 %v381_v36, %v366_v35  ;;  %v397_v45 = vadd.f32 %v396_v38, %v395_v37  ;;  %v1721_v60 = vld [vmem:[%s2508_s3 + $0x1] ss:$8 sm:$0x3]  ;;  %v427_v63 = vld [vmem:[%s2508_s3] ss:$8 sm:$0x3] }
  0x1d   : > { %v386_v46 = vadd.f32 %v385_v41, %v370_v40  ;;  %v401_v47 = vsub.f32 %v399_v42, %v400_v43  ;;  %v458_v62 = vrot.slane %v1721_v60, %v2009_v58  ;;  %v2023_v4 = vsub.s32 1, %v2006_v57  ;;  %v1722_v10 = vld [vmem:[%s2508_s3 + $0x2] ss:$8 sm:$0x3] }
  0x1e   : > { %v1967_v48 = vadd.f32 %v397_v45, %v382_v44  ;;  %v432_v9 = vrot.slane %v427_v63, %v2009_v58  ;;  %vm479_vm4 = vcmask 121856   ;;  %v490_v17 = vrot.slane %v1722_v10, %v2009_v58  ;;  %v1726_v30 = vld [vmem:[%s2508_s3 + $0x7] ss:$8 sm:$0x3] }
  0x1f   : > { %v1969_v49 = vadd.f32 %v401_v47, %v386_v46  ;;  %v520_v18 = vrot.slane %v1723_v59, %v2023_v4  ;;  %v436_v25 = vrot.slane %v427_v63, %v2023_v4  ;;  %v494_v32 = vrot.slane %v1722_v10, %v2023_v4  ;;  %v1724_v34 = vld [vmem:[%s2508_s3 + $0x5] ss:$8 sm:$0x3]  ;;  %v1725_v41 = vld [vmem:[%s2508_s3 + $0x6] ss:$8 sm:$0x3] }
  0x20   : > { %407 = vst.msk [vmem:[#allocation2] ss:$4 sm:$0x3] %vm1935_vm0, %v1967_v48  ;;  %v462_v33 = vrot.slane %v1721_v60, %v2023_v4  ;;  %vm598_vm5 = vcmask 916480   ;;  %v609_v37 = vrot.slane %v1726_v30, %v2009_v58  ;;  %vm540_vm6 = vcmask 1039360  }
  0x21   : > { %409 = vst.msk [vmem:[#allocation2 + $0x1] ss:$4 sm:$0x3] %vm1935_vm0, %v1969_v49  ;;  %v551_v40 = vrot.slane %v1724_v34, %v2009_v58  ;;  %v613_v44 = vrot.slane %v1726_v30, %v2023_v4  ;;  %v555_v45 = vrot.slane %v1724_v34, %v2023_v4  ;;  %vm572_vm7 = vcmask 924672  }
  0x22   : > { %v1727_v63 = vld [vmem:[%s2508_s3 + $0x10] ss:$8 sm:$0x3]  ;;  %vm630_vm8 = vcmask 908288   ;;  %vm703_vm9 = vcmask 1043456   ;;  %vm690_vm10 = vcmask 293888  }
  0x23   : > { %vm1401_vm11 = vcmask 261120  }
  0x28   : > { %v415_v50 = vld [vmem:[#allocation2] sm:$0xff] }
  0x29   : > { %501 = vrot.lane.b32.xlu1 %v415_v50, %s1867_s18  ;;  %534 = vst [vmem:[#allocation3 + $0x20] sm:$0xf] %v415_v50  ;;  %443 = vrot.lane.b32.xlu0 %v415_v50, %s1868_s19  ;;  %v417_v51 = vcombine.high %v415_v50, %v415_v50 }
  0x2b   : > { %535 = vst [vmem:[#allocation3 + $0x28] sm:$0xf] %v417_v51 }
  0x2d   : > { %594 = vrot.lane.b32.xlu1 %v415_v50, %s1869_s20  ;;  %418 = vrot.lane.b32.xlu0 %v415_v50, %s1870_s21 }
  0x31   : > { %475 = vrot.lane.b32.xlu0 %v415_v50, %s1871_s22  ;;  %503 = vrot.lane.b32.xlu1 %v417_v51, %s1867_s18 }
  0x35   : > { %536 = vrot.lane.b32.xlu0 %v415_v50, %s1872_s23  ;;  %420 = vrot.lane.b32.xlu1 %v417_v51, %s1870_s21 }
  0x39   : > { %477 = vrot.lane.b32.xlu1 %v417_v51, %s1871_s22  ;;  %445 = vrot.lane.b32.xlu0 %v417_v51, %s1868_s19 }
  0x3d   : > { %596 = vrot.lane.b32.xlu1 %v417_v51, %s1869_s20  ;;  %538 = vrot.lane.b32.xlu0 %v417_v51, %s1872_s23 }
  0x41   : > { %568 = vrot.lane.b32.xlu1 %v415_v50, %s1873_s24  ;;  %570 = vrot.lane.b32.xlu0 %v417_v51, %s1873_s24 }
  0x45   : > { %626 = vrot.lane.b32.xlu1 %v415_v50, %s1874_s25  ;;  %628 = vrot.lane.b32.xlu0 %v417_v51, %s1874_s25  ;;  %v583_v51 = vrot.slane %v1725_v41, %v2009_v58 }
  0x49   : > { %672 = vperm.xlu0 %1850, %v666_v52   ;;  %677 = vperm.xlu1 %1851, %v667_v53   ;;  %v587_v52 = vrot.slane %v1725_v41, %v2023_v4 }
  0x4d   : > { %687 = vperm.xlu0 %1850, %v669_v55   ;;  %682 = vperm.xlu1 %1851, %v668_v56  }
  0x9b   : > { %v502_v0 = vpop.permute.xlu1 %501  ;;  %v444_v3 = vpop.permute.xlu0 %443 }
  0x9c   : > { %v509_v5 = vsel %vm505_vm1, 0.0, %v502_v0  ;;  %v451_v6 = vsel %vm447_vm2, 0.0, %v444_v3 }
  0x9d   : > { %v523_v7 = vmul.f32 %v516_v61, %v509_v5  ;;  %v465_v8 = vmul.f32 %v458_v62, %v451_v6 }
  0x9f   : > { %v527_v11 = vrot.slane %v523_v7, 4  ;;  %v469_v12 = vrot.slane %v465_v8, 4  ;;  %v595_v13 = vpop.permute.xlu1 %594  ;;  %v419_v14 = vpop.permute.xlu0 %418 }
  0xa0   : > { %v426_v15 = vsel %vm422_vm3, 0.0, %v419_v14 }
  0xa1   : > { %531 = vst [vmem:[#allocation3 + $0x10] sm:$0xf0] %v527_v11  ;;  %473 = vst [vmem:[#allocation3] sm:$0xf0] %v469_v12  ;;  %v439_v16 = vmul.f32 %v432_v9, %v426_v15 }
  0xa3   : > { %441 = vst [vmem:[#allocation3] sm:$0xf] %v439_v16  ;;  %v476_v19 = vpop.permute.xlu0 %475  ;;  %v504_v20 = vpop.permute.xlu1 %503 }
  0xa4   : > { %v483_v21 = vsel %vm479_vm4, 0.0, %v476_v19  ;;  %v506_v22 = vsel %vm505_vm1, %v502_v0, %v504_v20 }
  0xa5   : > { %v497_v23 = vmul.f32 %v490_v17, %v483_v21  ;;  %v524_v24 = vmul.f32 %v520_v18, %v506_v22 }
  0xa7   : > { %499 = vst [vmem:[#allocation3 + $0x10] sm:$0xf] %v497_v23  ;;  %v528_v26 = vrot.slane %v524_v24, 4  ;;  %v537_v27 = vpop.permute.xlu0 %536  ;;  %v421_v28 = vpop.permute.xlu1 %420 }
  0xa8   : > { %v423_v29 = vsel %vm422_vm3, %v419_v14, %v421_v28  ;;  %v645_v14 = vrot.slane %v1727_v63, %v2023_v4 }
  0xa9   : > { %532 = vst [vmem:[#allocation3 + $0x18] sm:$0xf0] %v528_v26  ;;  %v440_v31 = vmul.f32 %v436_v25, %v423_v29 }
  0xaa   : > { %v656_v25 = vld [vmem:[#allocation3] sm:$0xff] }
  0xab   : > { %442 = vst [vmem:[#allocation3 + $0x8] sm:$0xf] %v440_v31  ;;  %v478_v35 = vpop.permute.xlu1 %477  ;;  %v446_v36 = vpop.permute.xlu0 %445 }
  0xac   : > { %v480_v38 = vsel %vm479_vm4, %v476_v19, %v478_v35  ;;  %v448_v39 = vsel %vm447_vm2, %v444_v3, %v446_v36  ;;  %v652_v35 = vld [vmem:[%s2509_s4] sm:$0xff]  ;;  %v653_v36 = vld [vmem:[%s2509_s4 + $0x8] sm:$0xff] }
  0xad   : > { %v498_v42 = vmul.f32 %v494_v32, %v480_v38  ;;  %v466_v43 = vmul.f32 %v462_v33, %v448_v39  ;;  %v655_v38 = vld [vmem:[%s2509_s4 + $0x18] sm:$0xff] }
  0xae   : > { %v658_v17 = vld [vmem:[#allocation3 + $0x10] sm:$0xff] }
  0xaf   : > { %500 = vst [vmem:[#allocation3 + $0x18] sm:$0xf] %v498_v42  ;;  %v470_v46 = vrot.slane %v466_v43, 4  ;;  %v597_v47 = vpop.permute.xlu1 %596  ;;  %v539_v50 = vpop.permute.xlu0 %538  ;;  %v1748_v26 = vpack.c.bf16 %v658_v17, %v656_v25  ;;  %v1376_v25 = vld [vmem:[%s2512_s7] sm:$0x3] }
  0xb0   : > { %v599_v53 = vsel %vm598_vm5, %v595_v13, %v597_v47  ;;  %v602_v54 = vsel %vm598_vm5, %v597_v47, 0.0  ;;  %v541_v55 = vsel %vm540_vm6, %v537_v27, %v539_v50  ;;  %v544_v56 = vsel %vm540_vm6, %v539_v50, 0.0 }
  0xb1   : > { %474 = vst [vmem:[#allocation3 + $0x8] sm:$0xf0] %v470_v46  ;;  %v616_v59 = vmul.f32 %v609_v37, %v599_v53  ;;  %v617_v60 = vmul.f32 %v613_v44, %v602_v54  ;;  %v558_v61 = vmul.f32 %v551_v40, %v541_v55  ;;  %v559_v62 = vmul.f32 %v555_v45, %v544_v56  ;;  %v654_v37 = vld [vmem:[%s2509_s4 + $0x10] sm:$0xff] }
  0xb2   : > { %v641_v13 = vrot.slane %v1727_v63, %v2009_v58 }
  0xb3   : > { %v620_v0 = vrot.slane %v616_v59, 4  ;;  %v621_v3 = vrot.slane %v617_v60, 4  ;;  %v562_v5 = vrot.slane %v558_v61, 4  ;;  %v563_v6 = vrot.slane %v559_v62, 4  ;;  %v569_v7 = vpop.permute.xlu1 %568  ;;  %v571_v8 = vpop.permute.xlu0 %570 }
  0xb4   : > { %v573_v9 = vsel %vm572_vm7, %v569_v7, %v571_v8  ;;  %v576_v10 = vsel %vm572_vm7, %v571_v8, 0.0 }
  0xb5   : > { %624 = vst [vmem:[#allocation3 + $0x30] sm:$0xf0] %v620_v0  ;;  %625 = vst [vmem:[#allocation3 + $0x38] sm:$0xf0] %v621_v3  ;;  %v590_v11 = vmul.f32 %v583_v51, %v573_v9  ;;  %v591_v12 = vmul.f32 %v587_v52, %v576_v10  ;;  %v1876_v9 = vmov 1983009808  }
  0xb6   : > { %566 = vst [vmem:[#allocation3 + $0x20] sm:$0xf0] %v562_v5  ;;  %567 = vst [vmem:[#allocation3 + $0x28] sm:$0xf0] %v563_v6  ;;  %v659_v21 = vld [vmem:[#allocation3 + $0x18] sm:$0xff]  ;;  %v1385_v10 = vunpack.c.l.s4 %v1876_v9 }
  0xb7   : > { %592 = vst [vmem:[#allocation3 + $0x30] sm:$0xf] %v590_v11  ;;  %593 = vst [vmem:[#allocation3 + $0x38] sm:$0xf] %v591_v12  ;;  %v627_v15 = vpop.permute.xlu1 %626  ;;  %v629_v16 = vpop.permute.xlu0 %628 }
  0xb8   : > { %v631_v18 = vsel %vm630_vm8, %v627_v15, %v629_v16  ;;  %v634_v19 = vsel %vm630_vm8, %v629_v16, 0.0  ;;  %v657_v20 = vld [vmem:[#allocation3 + $0x8] sm:$0xff]  ;;  %v1386_v11 = vunpack.c.0.s8 %v1385_v10 }
  0xb9   : > { %v648_v22 = vmul.f32 %v641_v13, %v631_v18  ;;  %v649_v23 = vmul.f32 %v645_v14, %v634_v19  ;;  %v1746_v24 = vpack.c.bf16 %v659_v21, %v657_v20  ;;  %v1303_v13 = vld [vmem:[%s2511_s6] sm:$0x3f] }
  0xba   : > { %v1389_v12 = vsub.s32 %v1386_v11, %v2006_v57  ;;  %v1383_v18 = vcombine.high %v1303_v13, %v1303_v13 }
  0xbb   : > { %650 = vst [vmem:[#allocation3 + $0x40] sm:$0xf] %v648_v22  ;;  %651 = vst [vmem:[#allocation3 + $0x48] sm:$0xf] %v649_v23  ;;  %1747 = vmatprep.subr.bf16.mxu0 %v1746_v24 }
  0xbc   : > { %1749 = vmatpush1.bf16.msra.mxu0 %v1748_v26  ;;  %v2220_v14 = vrot.slane %v1303_v13, %v1389_v12  ;;  %v2230_v19 = vrot.slane %v1383_v18, %v1389_v12 }
  0xbd   : > { %v661_v27 = vld [vmem:[#allocation3 + $0x28] sm:$0xff]  ;;  %v660_v29 = vld [vmem:[#allocation3 + $0x20] sm:$0xff] }
  0xbe   : > { %v663_v28 = vld [vmem:[#allocation3 + $0x38] sm:$0xff]  ;;  %v662_v30 = vld [vmem:[#allocation3 + $0x30] sm:$0xff]  ;;  %v1398_v16 = vcombine.high %v2220_v14, %v2220_v14 }
  0xbf   : > { %v1750_v31 = vpack.c.bf16 %v663_v28, %v661_v27  ;;  %v1752_v32 = vpack.c.bf16 %v662_v30, %v660_v29 }
  0xc0   : > { %1468 = vmatprep.mubr.f32.mxu1 %v1398_v16 }
  0xc1   : > { %1751 = vmatprep.subr.bf16.mxu0 %v1750_v31  ;;  %v847_v31 = vld [vmem:[%s2508_s3] ss:$8 sm:$0x3] }
  0xc2   : > { %1753 = vmatpush1.bf16.msra.mxu0 %v1752_v32  ;;  %v665_v33 = vld [vmem:[#allocation3 + $0x48] sm:$0xf]  ;;  %v664_v34 = vld [vmem:[#allocation3 + $0x40] sm:$0xf] }
  0xc3   : > { %1728 = vmatprep.subr.msk.mxu0 %vm703_vm9, %v665_v33 }
  0xc6   : > { %1729 = vmatpush1.msk.msra.mxu0 %vm703_vm9, %v664_v34 }
  0xc7   : > { %1730 = vmatmul.mubr.msk.f32.vlgmr.msra.gmra.mrb[0].mxu0 %vm690_vm10, %v652_v35  ;;  %v852_v35 = vrot.slane %v847_v31, %v2009_v58 }
  0xc8   : > { %780 = vmatprep.mubr.f32.mxu0 %v1866_v1  ;;  %v673_v39 = vpop.permute.xlu0 %672  ;;  %v678_v52 = vpop.permute.xlu1 %677 }
  0xcb   : > { %1731 = vmatmul.mubr.msk.f32.gmra.mrb[2].mxu0 %vm690_vm10, %v653_v36  ;;  %v856_v36 = vrot.slane %v847_v31, %v2023_v4  ;;  %v1734_v31 = vld [vmem:[%s2508_s3 + $0x1] ss:$8 sm:$0x3] }
  0xcc   : > { %786 = vmatprep.mubr.f32.mxu0 %v1866_v1  ;;  %v683_v60 = vpop.permute.xlu1 %682  ;;  %v688_v3 = vpop.permute.xlu0 %687 }
  0xcf   : > { %1732 = vmatmul.mubr.msk.f32.gmra.mrb[4].mxu0 %vm690_vm10, %v654_v37 }
  0xd0   : > { %792 = vmatprep.mubr.f32.mxu0 %v1866_v1 }
  0xd3   : > { %1733 = vmatmul.mubr.msk.f32.gmra.mrb[6].mxu0 %vm690_vm10, %v655_v38 }
  0xd4   : > { %1539 = vmatprep.mubr.f32.mxu0 %v1866_v1 }
 0x19a   : > { %v776_v40 = vpop.f32.mrb[0].mxu0 }
 0x19b   : > { %v777_v41 = vadd.f32 %v776_v40, %v673_v39  ;;  %v778_v42 = vpop.f32.mrb[1].mxu0 }
 0x19c   : > { %v779_v43 = vadd.f32 %v778_v42, %v673_v39 }
 0x19d   : > { %v2086_v44 = vmax.f32 %v777_v41, 0.0 }
 0x19e   : > { %v2088_v45 = vmax.f32 %v779_v43, 0.0  ;;  %v782_v46 = vpop.f32.mrb[2].mxu0 }
 0x19f   : > { %v784_v47 = vpop.f32.mrb[3].mxu0  ;;  %815 = vrot.lane.b32.xlu1 %v2086_v44, %s1870_s21  ;;  %v783_v54 = vadd.f32 %v782_v46, %v678_v52 }
 0x1a0   : > { %817 = vrot.lane.b32.xlu0 %v2088_v45, %s1870_s21  ;;  %v785_v56 = vadd.f32 %v784_v47, %v678_v52 }
 0x1a1   : > { %v2106_v55 = vmax.f32 %v783_v54, 0.0  ;;  %v2275_v54 = vld [vmem:[%s2508_s3 + $0x5] ss:$8 sm:$0x3] }
 0x1a2   : > { %v788_v50 = vpop.f32.mrb[4].mxu0  ;;  %v2112_v59 = vmax.f32 %v785_v56, 0.0 }
 0x1a3   : > { %875 = vrot.lane.b32.xlu1 %v2086_v44, %s1868_s19  ;;  %v790_v1 = vpop.f32.mrb[5].mxu0  ;;  %v789_v61 = vadd.f32 %v788_v50, %v683_v60 }
 0x1a4   : > { %877 = vrot.lane.b32.xlu0 %v2088_v45, %s1868_s19  ;;  %v791_v62 = vadd.f32 %v790_v1, %v683_v60 }
 0x1a5   : > { %v2134_v63 = vmax.f32 %v789_v61, 0.0  ;;  %v2281_v61 = vrot.slane %v2275_v54, %v2009_v58 }
 0x1a6   : > { %v794_v51 = vpop.f32.mrb[6].mxu0  ;;  %v2136_v0 = vmax.f32 %v791_v62, 0.0 }
 0x1a7   : > { %v796_v53 = vpop.f32.mrb[7].mxu0  ;;  %935 = vrot.lane.b32.xlu1 %v2086_v44, %s1871_s22  ;;  %v795_v5 = vadd.f32 %v794_v51, %v688_v3 }
 0x1a8   : > { %937 = vrot.lane.b32.xlu0 %v2088_v45, %s1871_s22  ;;  %v797_v7 = vadd.f32 %v796_v53, %v688_v3 }
 0x1a9   : > { %v2158_v6 = vmax.f32 %v795_v5, 0.0 }
 0x1aa   : > { %v2164_v8 = vmax.f32 %v797_v7, 0.0 }
 0x1ab   : > { %995 = vrot.lane.b32.xlu1 %v2086_v44, %s1867_s18 }
 0x1ac   : > { %997 = vrot.lane.b32.xlu0 %v2088_v45, %s1867_s18 }
 0x1af   : > { %1063 = vrot.lane.b32.xlu1 %v2086_v44, %s1872_s23 }
 0x1b0   : > { %1067 = vrot.lane.b32.xlu0 %v2106_v55, %s1872_s23 }
 0x1b3   : > { %1065 = vrot.lane.b32.xlu1 %v2088_v45, %s1872_s23 }
 0x1b4   : > { %821 = vrot.lane.b32.xlu0 %v2112_v59, %s1870_s21 }
 0x1b7   : > { %819 = vrot.lane.b32.xlu1 %v2106_v55, %s1870_s21 }
 0x1b8   : > { %881 = vrot.lane.b32.xlu0 %v2112_v59, %s1868_s19 }
 0x1bb   : > { %879 = vrot.lane.b32.xlu1 %v2106_v55, %s1868_s19 }
 0x1bc   : > { %941 = vrot.lane.b32.xlu0 %v2112_v59, %s1871_s22 }
 0x1bf   : > { %939 = vrot.lane.b32.xlu1 %v2106_v55, %s1871_s22 }
 0x1c0   : > { %1001 = vrot.lane.b32.xlu0 %v2112_v59, %s1867_s18 }
 0x1c3   : > { %999 = vrot.lane.b32.xlu1 %v2106_v55, %s1867_s18 }
 0x1c4   : > { %1069 = vrot.lane.b32.xlu0 %v2112_v59, %s1872_s23 }
 0x1c7   : > { %823 = vrot.lane.b32.xlu1 %v2134_v63, %s1870_s21 }
 0x1c8   : > { %825 = vrot.lane.b32.xlu0 %v2136_v0, %s1870_s21 }
 0x1cb   : > { %883 = vrot.lane.b32.xlu1 %v2134_v63, %s1868_s19 }
 0x1cc   : > { %885 = vrot.lane.b32.xlu0 %v2136_v0, %s1868_s19 }
 0x1cf   : > { %943 = vrot.lane.b32.xlu1 %v2134_v63, %s1871_s22 }
 0x1d0   : > { %945 = vrot.lane.b32.xlu0 %v2136_v0, %s1871_s22 }
 0x1d3   : > { %1003 = vrot.lane.b32.xlu1 %v2134_v63, %s1867_s18 }
 0x1d4   : > { %1005 = vrot.lane.b32.xlu0 %v2136_v0, %s1867_s18 }
 0x1d7   : > { %1071 = vrot.lane.b32.xlu1 %v2134_v63, %s1872_s23 }
 0x1d8   : > { %1129 = vrot.lane.b32.xlu0 %v2112_v59, %s1873_s24 }
 0x1db   : > { %1073 = vrot.lane.b32.xlu1 %v2136_v0, %s1872_s23 }
 0x1dc   : > { %1075 = vrot.lane.b32.xlu0 %v2158_v6, %s1872_s23 }
 0x1df   : > { %827 = vrot.lane.b32.xlu1 %v2158_v6, %s1870_s21 }
 0x1e0   : > { %829 = vrot.lane.b32.xlu0 %v2164_v8, %s1870_s21  ;;  %s340_s21 = scalar_lea.vmem %s2513_s8, %s1705_s30 }
 0x1e3   : > { %1125 = vrot.lane.b32.xlu1 %v2088_v45, %s1873_s24 }
 0x1e4   : > { %1127 = vrot.lane.b32.xlu0 %v2106_v55, %s1873_s24 }
 0x1e7   : > { %887 = vrot.lane.b32.xlu1 %v2158_v6, %s1868_s19 }
 0x1e8   : > { %889 = vrot.lane.b32.xlu0 %v2164_v8, %s1868_s19 }
 0x1eb   : > { %1123 = vrot.lane.b32.xlu1 %v2086_v44, %s1873_s24 }
 0x1ec   : > { %1135 = vrot.lane.b32.xlu0 %v2158_v6, %s1873_s24 }
 0x1ef   : > { %947 = vrot.lane.b32.xlu1 %v2158_v6, %s1871_s22 }
 0x1f0   : > { %949 = vrot.lane.b32.xlu0 %v2164_v8, %s1871_s22 }
 0x1f3   : > { %1007 = vrot.lane.b32.xlu1 %v2158_v6, %s1867_s18 }
 0x1f4   : > { %1189 = vrot.lane.b32.xlu0 %v2112_v59, %s1869_s20 }
 0x1f7   : > { %1133 = vrot.lane.b32.xlu1 %v2136_v0, %s1873_s24 }
 0x1f8   : > { %1009 = vrot.lane.b32.xlu0 %v2164_v8, %s1867_s18 }
 0x1fb   : > { %1131 = vrot.lane.b32.xlu1 %v2134_v63, %s1873_s24 }
 0x1fc   : > { %1187 = vrot.lane.b32.xlu0 %v2106_v55, %s1869_s20 }
 0x1ff   : > { %1185 = vrot.lane.b32.xlu1 %v2088_v45, %s1869_s20 }
 0x200   : > { %1249 = vrot.lane.b32.xlu0 %v2112_v59, %s1874_s25 }
 0x203   : > { %1183 = vrot.lane.b32.xlu1 %v2086_v44, %s1869_s20 }
 0x204   : > { %1247 = vrot.lane.b32.xlu0 %v2106_v55, %s1874_s25 }
 0x207   : > { %1245 = vrot.lane.b32.xlu1 %v2088_v45, %s1874_s25 }
 0x208   : > { %1077 = vrot.lane.b32.xlu0 %v2164_v8, %s1872_s23 }
 0x20b   : > { %1243 = vrot.lane.b32.xlu1 %v2086_v44, %s1874_s25 }
 0x20c   : > { %1195 = vrot.lane.b32.xlu0 %v2158_v6, %s1869_s20 }
 0x20f   : > { %1193 = vrot.lane.b32.xlu1 %v2136_v0, %s1869_s20 }
 0x210   : > { %1137 = vrot.lane.b32.xlu0 %v2164_v8, %s1873_s24 }
 0x211   : > { %v816_v15 = vpop.permute.xlu1 %815 }
 0x212   : > { %v818_v17 = vpop.permute.xlu0 %817  ;;  %v843_v37 = vsel %vm422_vm3, 0.0, %v816_v15 }
 0x213   : > { %1191 = vrot.lane.b32.xlu1 %v2134_v63, %s1869_s20  ;;  %v831_v38 = vsel %vm422_vm3, %v816_v15, %v818_v17  ;;  %v859_v43 = vmul.f32 %v852_v35, %v843_v37 }
 0x214   : > { %1197 = vrot.lane.b32.xlu0 %v2164_v8, %s1869_s20  ;;  %v860_v47 = vmul.f32 %v856_v36, %v831_v38  ;;  %v916_v38 = vrot.slane %v1734_v31, %v2023_v4 }
 0x215   : > { %v2232_v20 = vpop.permute.xlu1 %875 }
 0x216   : > { %v2234_v21 = vpop.permute.xlu0 %877 }
 0x217   : > { %1253 = vrot.lane.b32.xlu1 %v2136_v0, %s1874_s25 }
 0x218   : > { %1257 = vrot.lane.b32.xlu0 %v2164_v8, %s1874_s25 }
 0x219   : > { %v2240_v22 = vpop.permute.xlu1 %935 }
 0x21a   : > { %v938_v23 = vpop.permute.xlu0 %937 }
 0x21b   : > { %v2244_v24 = vsel %vm479_vm4, %v2240_v22, %v938_v23  ;;  %1251 = vrot.lane.b32.xlu1 %v2134_v63, %s1874_s25 }
 0x21c   : > { %1255 = vrot.lane.b32.xlu0 %v2158_v6, %s1874_s25 }
 0x21d   : > { %v2253_v26 = vpop.permute.xlu1 %995 }
 0x21e   : > { %v998_v27 = vpop.permute.xlu0 %997 }
 0x21f   : > { %v2257_v28 = vsel %vm505_vm1, %v2253_v26, %v998_v27  ;;  %1379 = vperm.xlu1 %1851, %v1376_v25  }
 0x221   : > { %v1064_v29 = vpop.permute.xlu1 %1063 }
 0x222   : > { %v1068_v30 = vpop.permute.xlu0 %1067 }
 0x225   : > { %v2262_v32 = vpop.permute.xlu1 %1065 }
 0x226   : > { %v1079_v33 = vsel %vm540_vm6, %v1064_v29, %v2262_v32  ;;  %v822_v34 = vpop.permute.xlu0 %821 }
 0x227   : > { %v2290_v7 = vmul.f32 %v2281_v61, %v1079_v33 }
 0x229   : > { %v820_v39 = vpop.permute.xlu1 %819 }
 0x22a   : > { %v832_v40 = vsel %vm422_vm3, %v820_v39, %v822_v34  ;;  %v844_v41 = vsel %vm422_vm3, 0.0, %v820_v39  ;;  %v882_v42 = vpop.permute.xlu0 %881 }
 0x22b   : > { %v861_v46 = vmul.f32 %v852_v35, %v844_v41  ;;  %v862_v50 = vmul.f32 %v856_v36, %v832_v40 }
 0x22d   : > { %v880_v1 = vpop.permute.xlu1 %879  ;;  %v1754_v51 = vpack.c.bf16 %v862_v50, %v860_v47  ;;  %v1756_v52 = vpack.c.bf16 %v861_v46, %v859_v43  ;;  %v891_v43 = vsel %vm447_vm2, %v2232_v20, %v2234_v21 }
 0x22e   : > { %v942_v53 = vpop.permute.xlu0 %941  ;;  %v892_v33 = vsel %vm447_vm2, %v880_v1, %v882_v42  ;;  %v904_v50 = vsel %vm447_vm2, 0.0, %v880_v1  ;;  %v920_v2 = vmul.f32 %v916_v38, %v891_v43 }
 0x22f   : > { %1755 = vmatprep.subr.bf16.mxu1 %v1754_v51  ;;  %v922_v42 = vmul.f32 %v916_v38, %v892_v33 }
 0x230   : > { %1757 = vmatpush1.bf16.msra.mxu1 %v1756_v52 }
 0x231   : > { %v940_v56 = vpop.permute.xlu1 %939 }
 0x232   : > { %v2277_v60 = vpop.permute.xlu0 %1001 }
 0x235   : > { %v2283_v62 = vpop.permute.xlu1 %999 }
 0x236   : > { %v2285_v3 = vpop.permute.xlu0 %1069 }
 0x237   : > { %v1080_v5 = vsel %vm540_vm6, %v1068_v30, %v2285_v3 }
 0x238   : > { %v2293_v9 = vmul.f32 %v2281_v61, %v1080_v5  ;;  %v912_v5 = vrot.slane %v1734_v31, %v2009_v58 }
 0x239   : > { %v824_v10 = vpop.permute.xlu1 %823 }
 0x23a   : > { %v826_v11 = vpop.permute.xlu0 %825  ;;  %v845_v39 = vsel %vm422_vm3, 0.0, %v824_v10  ;;  %v921_v1 = vmul.f32 %v912_v5, %v904_v50 }
 0x23b   : > { %v833_v34 = vsel %vm422_vm3, %v824_v10, %v826_v11  ;;  %v863_v11 = vmul.f32 %v852_v35, %v845_v39  ;;  %v903_v10 = vsel %vm447_vm2, 0.0, %v2232_v20 }
 0x23c   : > { %v864_v51 = vmul.f32 %v856_v36, %v833_v34  ;;  %v919_v34 = vmul.f32 %v912_v5, %v903_v10 }
 0x23d   : > { %v884_v13 = vpop.permute.xlu1 %883 }
 0x23e   : > { %v886_v15 = vpop.permute.xlu0 %885  ;;  %v1764_v50 = vpack.c.bf16 %v921_v1, %v919_v34 }
 0x23f   : > { %v893_v31 = vsel %vm447_vm2, %v884_v13, %v886_v15 }
 0x241   : > { %v2297_v16 = vpop.permute.xlu1 %943 }
 0x242   : > { %v2299_v17 = vpop.permute.xlu0 %945 }
 0x245   : > { %v2301_v18 = vpop.permute.xlu1 %1003 }
 0x246   : > { %v2303_v23 = vpop.permute.xlu0 %1005 }
 0x249   : > { %v2305_v25 = vpop.permute.xlu1 %1071 }
 0x24a   : > { %v2307_v27 = vpop.permute.xlu0 %1129 }
 0x24d   : > { %v2309_v29 = vpop.permute.xlu1 %1073 }
 0x24e   : > { %v2311_v30 = vpop.permute.xlu0 %1075 }
 0x251   : > { %v828_v37 = vpop.permute.xlu1 %827 }
 0x252   : > { %v846_v40 = vsel %vm422_vm3, 0.0, %v828_v37  ;;  %v830_v41 = vpop.permute.xlu0 %829 }
 0x253   : > { %v865_v46 = vmul.f32 %v852_v35, %v846_v40  ;;  %v834_v47 = vsel %vm422_vm3, %v828_v37, %v830_v41  ;;  %v1735_v37 = vld [vmem:[%s2508_s3 + $0x2] ss:$8 sm:$0x3]  ;;  %v952_v35 = vsel %vm479_vm4, %v940_v56, %v942_v53  ;;  %v905_v40 = vsel %vm447_vm2, 0.0, %v884_v13 }
 0x254   : > { %v866_v52 = vmul.f32 %v856_v36, %v834_v47  ;;  %v1762_v36 = vpack.c.bf16 %v922_v42, %v920_v2  ;;  %v976_v20 = vrot.slane %v1735_v37, %v2023_v4  ;;  %v964_v2 = vsel %vm479_vm4, 0.0, %v940_v56  ;;  %v1736_v56 = vld [vmem:[%s2508_s3 + $0x3] ss:$8 sm:$0x3] }
 0x255   : > { %v2327_v12 = vpop.permute.xlu1 %1125  ;;  %v1760_v33 = vpack.c.bf16 %v865_v46, %v863_v11  ;;  %v924_v53 = vmul.f32 %v916_v38, %v893_v31  ;;  %v972_v15 = vrot.slane %v1735_v37, %v2009_v58  ;;  %v963_v13 = vsel %vm479_vm4, 0.0, %v2240_v22 }
 0x256   : > { %v2331_v57 = vpop.permute.xlu0 %1127  ;;  %v1758_v21 = vpack.c.bf16 %v866_v52, %v864_v51  ;;  %v982_v42 = vmul.f32 %v976_v20, %v952_v35  ;;  %v923_v52 = vmul.f32 %v912_v5, %v905_v40  ;;  %v980_v10 = vmul.f32 %v976_v20, %v2244_v24 }
 0x257   : > { %v981_v1 = vmul.f32 %v972_v15, %v964_v2  ;;  %v953_v22 = vsel %vm479_vm4, %v2297_v16, %v2299_v17  ;;  %v1036_v34 = vrot.slane %v1736_v56, %v2023_v4  ;;  %v965_v35 = vsel %vm479_vm4, 0.0, %v2297_v16 }
 0x258   : > { %1759 = vmatprep.subr.bf16.mxu1 %v1758_v21  ;;  %v1770_v37 = vpack.c.bf16 %v982_v42, %v980_v10  ;;  %v984_v17 = vmul.f32 %v976_v20, %v953_v22  ;;  %v983_v2 = vmul.f32 %v972_v15, %v965_v35  ;;  %v1023_v16 = vsel %vm505_vm1, 0.0, %v2253_v26 }
 0x259   : > { %1761 = vmatpush1.bf16.msra.mxu1 %v1760_v33  ;;  %v888_v39 = vpop.permute.xlu1 %887  ;;  %v1025_v26 = vsel %vm505_vm1, 0.0, %v2301_v18 }
 0x25a   : > { %v906_v41 = vsel %vm447_vm2, 0.0, %v888_v39  ;;  %v890_v43 = vpop.permute.xlu0 %889  ;;  %1763 = vmatprep.subr.bf16.mxu1 %v1762_v36  ;;  %v1012_v36 = vsel %vm505_vm1, %v2283_v62, %v2277_v60  ;;  %v1024_v60 = vsel %vm505_vm1, 0.0, %v2283_v62 }
 0x25b   : > { %v925_v47 = vmul.f32 %v912_v5, %v906_v41  ;;  %v894_v46 = vsel %vm447_vm2, %v888_v39, %v890_v43  ;;  %v979_v5 = vmul.f32 %v972_v15, %v963_v13 }
 0x25c   : > { %v926_v51 = vmul.f32 %v916_v38, %v894_v46 }
 0x25d   : > { %1765 = vmatpush1.bf16.msra.mxu1 %v1764_v50  ;;  %v2344_v11 = vpop.permute.xlu1 %1123  ;;  %v1768_v38 = vpack.c.bf16 %v925_v47, %v923_v52  ;;  %v1772_v43 = vpack.c.bf16 %v981_v1, %v979_v5  ;;  %v1042_v47 = vmul.f32 %v1036_v34, %v1012_v36  ;;  %v1032_v50 = vrot.slane %v1736_v56, %v2009_v58 }
 0x25e   : > { %v2349_v21 = vpop.permute.xlu0 %1135  ;;  %v1766_v33 = vpack.c.bf16 %v926_v51, %v924_v53  ;;  %v1040_v53 = vmul.f32 %v1036_v34, %v2257_v28 }
 0x25f   : > { %v1041_v13 = vmul.f32 %v1032_v50, %v1024_v60  ;;  %v1043_v22 = vmul.f32 %v1032_v50, %v1025_v26  ;;  %v1788_v60 = vpack.c.bf16 %v2106_v55, %v2086_v44  ;;  %v1081_v44 = vsel %vm540_vm6, %v2305_v25, %v2309_v29 }
 0x260   : > { %1767 = vmatprep.subr.bf16.mxu1 %v1766_v33  ;;  %v1778_v33 = vpack.c.bf16 %v1042_v47, %v1040_v53  ;;  %v1093_v55 = vsel %vm540_vm6, %v2309_v29, 0.0  ;;  %v1151_v25 = vsel %vm572_vm7, %v2327_v12, 0.0 }
 0x261   : > { %1769 = vmatpush1.bf16.msra.mxu1 %v1768_v38  ;;  %v948_v24 = vpop.permute.xlu1 %947 }
 0x262   : > { %v966_v31 = vsel %vm479_vm4, 0.0, %v948_v24  ;;  %v950_v39 = vpop.permute.xlu0 %949  ;;  %1771 = vmatprep.subr.bf16.mxu1 %v1770_v37 }
 0x263   : > { %v985_v40 = vmul.f32 %v972_v15, %v966_v31  ;;  %v954_v41 = vsel %vm479_vm4, %v948_v24, %v950_v39  ;;  %v1013_v15 = vsel %vm505_vm1, %v2301_v18, %v2303_v23  ;;  %v1786_v18 = vpack.c.bf16 %v2112_v59, %v2088_v45  ;;  %v1740_v45 = vld [vmem:[%s2508_s3 + $0x10] ss:$8 sm:$0x3] }
 0x264   : > { %v986_v46 = vmul.f32 %v976_v20, %v954_v41  ;;  %v1039_v20 = vmul.f32 %v1032_v50, %v1023_v16  ;;  %v1044_v5 = vmul.f32 %v1036_v34, %v1013_v15  ;;  %v1092_v39 = vsel %vm540_vm6, %v2285_v3, 0.0 }
 0x265   : > { %1773 = vmatpush1.bf16.msra.mxu1 %v1772_v43  ;;  %v1008_v42 = vpop.permute.xlu1 %1007  ;;  %v1776_v10 = vpack.c.bf16 %v985_v40, %v983_v2  ;;  %v1091_v43 = vsel %vm540_vm6, %v2262_v32, 0.0  ;;  %v1790_v59 = vpack.c.bf16 %v2164_v8, %v2136_v0  ;;  %v1792_v0 = vpack.c.bf16 %v2158_v6, %v2134_v63 }
 0x266   : > { %v2371_v51 = vpop.permute.xlu0 %1189  ;;  %v1774_v52 = vpack.c.bf16 %v986_v46, %v984_v17  ;;  %v1026_v62 = vsel %vm505_vm1, 0.0, %v1008_v42  ;;  %v1780_v37 = vpack.c.bf16 %v1041_v13, %v1039_v20  ;;  %v2414_v46 = vrot.slane %v1740_v45, %v2023_v4 }
 0x267   : > { %v1045_v1 = vmul.f32 %v1032_v50, %v1026_v62  ;;  %v2426_v29 = vrot.slane %v1740_v45, %v2009_v58  ;;  %v1111_v63 = vmul.f32 %v2281_v61, %v1081_v44  ;;  %v1212_v45 = vsel %vm598_vm5, %v2371_v51, 0.0 }
 0x268   : > { %1775 = vmatprep.subr.bf16.mxu1 %v1774_v52  ;;  %v1139_v52 = vsel %vm572_vm7, %v2344_v11, %v2327_v12  ;;  %v1140_v11 = vsel %vm572_vm7, %v2331_v57, %v2307_v27 }
 0x269   : > { %1777 = vmatpush1.bf16.msra.mxu1 %v1776_v10  ;;  %v2377_v56 = vpop.permute.xlu1 %1133  ;;  %v1784_v31 = vpack.c.bf16 %v1045_v1, %v1043_v22  ;;  %v1739_v22 = vld [vmem:[%s2508_s3 + $0x7] ss:$8 sm:$0x3] }
 0x26a   : > { %v1010_v28 = vpop.permute.xlu0 %1009  ;;  %1779 = vmatprep.subr.bf16.mxu1 %v1778_v33 }
 0x26b   : > { %v1014_v38 = vsel %vm505_vm1, %v1008_v42, %v1010_v28  ;;  %v1152_v42 = vsel %vm572_vm7, %v2307_v27, 0.0 }
 0x26c   : > { %v1046_v36 = vmul.f32 %v1036_v34, %v1014_v38  ;;  %v1104_v34 = vrot.slane %v2275_v54, %v2023_v4  ;;  %v1738_v54 = vld [vmem:[%s2508_s3 + $0x6] ss:$8 sm:$0x3] }
 0x26d   : > { %1781 = vmatpush1.bf16.msra.mxu1 %v1780_v37  ;;  %v2382_v24 = vpop.permute.xlu1 %1131  ;;  %v1164_v8 = vrot.slane %v1738_v54, %v2023_v4  ;;  %v1160_v16 = vrot.slane %v1738_v54, %v2009_v58  ;;  %v1220_v54 = vrot.slane %v1739_v22, %v2009_v58 }
 0x26e   : > { %v2384_v35 = vpop.permute.xlu0 %1187  ;;  %v1782_v23 = vpack.c.bf16 %v1046_v36, %v1044_v5  ;;  %v1110_v47 = vmul.f32 %v1104_v34, %v1092_v39  ;;  %v1108_v17 = vmul.f32 %v1104_v34, %v1091_v43  ;;  %v1112_v6 = vmul.f32 %v1104_v34, %v1093_v55 }
 0x26f   : > { %v1168_v26 = vmul.f32 %v1164_v8, %v1151_v25  ;;  %v1170_v12 = vmul.f32 %v1164_v8, %v1152_v42  ;;  %v2520_v5 = vpack.c.bf16 %v2293_v9, %v2290_v7  ;;  %v1153_v39 = vsel %vm572_vm7, %v2377_v56, 0.0 }
 0x270   : > { %1783 = vmatprep.subr.bf16.mxu1 %v1782_v23  ;;  %v1794_v2 = vpack.c.bf16 %v1110_v47, %v1108_v17  ;;  %v1169_v7 = vmul.f32 %v1160_v16, %v1140_v11  ;;  %v1141_v9 = vsel %vm572_vm7, %v2382_v24, %v2377_v56 }
 0x271   : > { %1785 = vmatpush1.bf16.msra.mxu1 %v1784_v31  ;;  %v2390_v40 = vpop.permute.xlu1 %1185  ;;  %v1171_v56 = vmul.f32 %v1160_v16, %v1141_v9  ;;  %v1550_v9 = vrot.slane %v1967_v48, %v2009_v58 }
 0x272   : > { %v1250_v41 = vpop.permute.xlu0 %1249  ;;  %1787 = vmatprep.subr.bf16.mxu1 %v1786_v18  ;;  %v1211_v43 = vsel %vm598_vm5, %v2390_v40, 0.0 }
 0x273   : > { %v1272_v50 = vsel %vm630_vm8, %v1250_v41, 0.0 }
 0x274   : > { %v1290_v62 = vmul.f32 %v2414_v46, %v1272_v50 }
 0x275   : > { %v2406_v3 = vpop.permute.xlu1 %1183  ;;  %1789 = vmatpush1.bf16.msra.mxu1 %v1788_v60 }
 0x276   : > { %v1248_v32 = vpop.permute.xlu0 %1247  ;;  %1791 = vmatprep.subr.bf16.mxu1 %v1790_v59  ;;  %v1172_v59 = vmul.f32 %v1164_v8, %v1153_v39  ;;  %v1199_v24 = vsel %vm598_vm5, %v2406_v3, %v2390_v40 }
 0x277   : > { %v1260_v28 = vsel %vm630_vm8, %v1248_v32, %v1250_v41  ;;  %v1224_v41 = vrot.slane %v1739_v22, %v2023_v4 }
 0x278   : > { %v1289_v57 = vmul.f32 %v2426_v29, %v1260_v28 }
 0x279   : > { %v1246_v53 = vpop.permute.xlu1 %1245  ;;  %1793 = vmatpush1.bf16.msra.mxu1 %v1792_v0  ;;  %v1200_v0 = vsel %vm598_vm5, %v2384_v35, %v2371_v51  ;;  %v1228_v50 = vmul.f32 %v1224_v41, %v1211_v43 }
 0x27a   : > { %v1271_v13 = vsel %vm630_vm8, %v1246_v53, 0.0  ;;  %v1078_v10 = vpop.permute.xlu0 %1077  ;;  %1795 = vmatprep.subr.bf16.mxu1 %v1794_v2  ;;  %v1229_v3 = vmul.f32 %v1220_v54, %v1200_v0 }
 0x27b   : > { %v1288_v33 = vmul.f32 %v2414_v46, %v1271_v13  ;;  %v1082_v20 = vsel %vm540_vm6, %v2311_v30, %v1078_v10  ;;  %v1094_v15 = vsel %vm540_vm6, %v1078_v10, 0.0  ;;  %v1167_v30 = vmul.f32 %v1160_v16, %v1139_v52 }
 0x27c   : > { %v1113_v1 = vmul.f32 %v2281_v61, %v1082_v20  ;;  %v1114_v38 = vmul.f32 %v1104_v34, %v1094_v15  ;;  %v1802_v34 = vpack.c.bf16 %v1170_v12, %v1168_v26 }
 0x27d   : > { %v1244_v37 = vpop.permute.xlu1 %1243  ;;  %1797 = vmatpush1.bf16.msra.mxu1 %v2520_v5  ;;  %v1818_v36 = vpack.c.bf16 %v1290_v62, %v1288_v33  ;;  %v1804_v32 = vpack.c.bf16 %v1169_v7, %v1167_v30 }
 0x27e   : > { %v1259_v23 = vsel %vm630_vm8, %v1244_v37, %v1246_v53  ;;  %v1196_v61 = vpop.permute.xlu0 %1195  ;;  %v1798_v31 = vpack.c.bf16 %v1114_v38, %v1112_v6  ;;  %v1800_v18 = vpack.c.bf16 %v1113_v1, %v1111_v63  ;;  %v1230_v53 = vmul.f32 %v1224_v41, %v1212_v45 }
 0x27f   : > { %v1287_v27 = vmul.f32 %v2426_v29, %v1259_v23  ;;  %1819 = vmatprep.subr.bf16.mxu0 %v1818_v36  ;;  %v1227_v63 = vmul.f32 %v1220_v54, %v1199_v24 }
 0x280   : > { %1799 = vmatprep.subr.bf16.mxu1 %v1798_v31  ;;  %v1810_v35 = vpack.c.bf16 %v1230_v53, %v1228_v50 }
 0x281   : > { %v1820_v60 = vpack.c.bf16 %v1289_v57, %v1287_v27  ;;  %v1194_v47 = vpop.permute.xlu1 %1193  ;;  %1801 = vmatpush1.bf16.msra.mxu1 %v1800_v18  ;;  %v1812_v15 = vpack.c.bf16 %v1229_v3, %v1227_v63 }
 0x282   : > { %v1138_v17 = vpop.permute.xlu0 %1137  ;;  %1803 = vmatprep.subr.bf16.mxu1 %v1802_v34 }
 0x283   : > { %v1142_v44 = vsel %vm572_vm7, %v2349_v21, %v1138_v17  ;;  %v1154_v55 = vsel %vm572_vm7, %v1138_v17, 0.0  ;;  %1821 = vmatpush1.bf16.msra.mxu0 %v1820_v60  ;;  %v1213_v21 = vsel %vm598_vm5, %v1194_v47, 0.0 }
 0x284   : > { %v1173_v2 = vmul.f32 %v1160_v16, %v1142_v44  ;;  %v1174_v42 = vmul.f32 %v1164_v8, %v1154_v55  ;;  %v1232_v16 = vmul.f32 %v1224_v41, %v1213_v21 }
 0x285   : > { %v1192_v25 = vpop.permute.xlu1 %1191  ;;  %1805 = vmatpush1.bf16.msra.mxu1 %v1804_v32 }
 0x286   : > { %v1198_v6 = vpop.permute.xlu0 %1197  ;;  %v1806_v52 = vpack.c.bf16 %v1174_v42, %v1172_v59  ;;  %v1808_v40 = vpack.c.bf16 %v1173_v2, %v1171_v56  ;;  %v1201_v10 = vsel %vm598_vm5, %v1192_v25, %v1194_v47 }
 0x287   : > { %v1214_v13 = vsel %vm598_vm5, %v1198_v6, 0.0  ;;  %v1202_v62 = vsel %vm598_vm5, %v1196_v61, %v1198_v6  ;;  %v1231_v26 = vmul.f32 %v1220_v54, %v1201_v10  ;;  %v2521_v10 = vld [vmem:[#allocation6_spill] sm:$0xff] }
 0x288   : > { %v1234_v51 = vmul.f32 %v1224_v41, %v1214_v13  ;;  %1807 = vmatprep.subr.bf16.mxu1 %v1806_v52  ;;  %v1233_v28 = vmul.f32 %v1220_v54, %v1202_v62  ;;  %v1554_v41 = vrot.slane %v1967_v48, %v2023_v4  ;;  %v1877_v48 = vmov 1966171168  }
 0x289   : > { %v1254_v8 = vpop.permute.xlu1 %1253  ;;  %1809 = vmatpush1.bf16.msra.mxu1 %v1808_v40  ;;  %v1604_v50 = vunpack.c.l.s4 %v1877_v48 }
 0x28a   : > { %v1273_v33 = vsel %vm630_vm8, %v1254_v8, 0.0  ;;  %v1258_v20 = vpop.permute.xlu0 %1257  ;;  %1811 = vmatprep.subr.bf16.mxu1 %v1810_v35  ;;  %v1814_v11 = vpack.c.bf16 %v1234_v51, %v1232_v16  ;;  %v1816_v61 = vpack.c.bf16 %v1233_v28, %v1231_v26 }
 0x28b   : > { %v1292_v1 = vmul.f32 %v2414_v46, %v1273_v33  ;;  %v1274_v38 = vsel %vm630_vm8, %v1258_v20, 0.0  ;;  %v1605_v53 = vunpack.c.0.s8 %v1604_v50 }
 0x28c   : > { %v1294_v12 = vmul.f32 %v2414_v46, %v1274_v38 }
 0x28d   : > { %v1252_v37 = vpop.permute.xlu1 %1251  ;;  %1813 = vmatpush1.bf16.msra.mxu1 %v1812_v15  ;;  %v1608_v62 = vsub.s32 %v1605_v53, %v2521_v10 }
 0x28e   : > { %v1261_v5 = vsel %vm630_vm8, %v1252_v37, %v1254_v8  ;;  %v1256_v36 = vpop.permute.xlu0 %1255  ;;  %1815 = vmatprep.subr.bf16.mxu1 %v1814_v11  ;;  %v1822_v30 = vpack.c.bf16 %v1294_v12, %v1292_v1 }
 0x28f   : > { %v1291_v22 = vmul.f32 %v2426_v29, %v1261_v5  ;;  %v1262_v23 = vsel %vm630_vm8, %v1256_v36, %v1258_v20 }
 0x290   : > { %v1293_v31 = vmul.f32 %v2426_v29, %v1262_v23  ;;  %1823 = vmatprep.subr.bf16.mxu0 %v1822_v30  ;;  %v1563_v29 = vrot.slane %v1969_v49, %v2009_v58 }
 0x291   : > { %1817 = vmatpush1.bf16.msra.mxu1 %v1816_v61 }
 0x292   : > { %v1824_v18 = vpack.c.bf16 %v1293_v31, %v1291_v22 }
 0x294   : > { %1469 = vmatmul.mubr.f32.vlgmr.msra.gmra.mrb[0].mxu1 %v2220_v14  ;;  %1825 = vmatpush1.bf16.msra.mxu0 %v1824_v18  ;;  %v1567_v14 = vrot.slane %v1969_v49, %v2023_v4 }
 0x297   : > { %1741 = vmatmul.mubr.msk.f32.vlgmr.msra.gmra.mrb[8].mxu0 %vm1401_vm11, %v2230_v19 }
 0x29e   : > { %v1380_v46 = vpop.permute.xlu1 %1379 }
 0x367   : > { %v1470_v39 = vpop.f32.mrb[0].mxu1 }
 0x368   : > { %v1471_v57 = vadd.f32 %v1470_v39, %v1380_v46  ;;  %v1472_v27 = vpop.f32.mrb[1].mxu1 }
 0x369   : > { %v1473_v7 = vadd.f32 %v1472_v27, %v1380_v46 }
 0x36a   : > { %v1541_v34 = vpop.f32.mrb[8].mxu0 }
 0x36b   : > { %v1542_v43 = vadd.f32 %v1541_v34, %v1471_v57  ;;  %v1543_v19 = vpop.f32.mrb[9].mxu0 }
 0x36c   : > { %v1544_v60 = vadd.f32 %v1543_v19, %v1473_v7 }
 0x36d   : > { %v1557_v47 = vadd.f32 %v1550_v9, %v1542_v43  ;;  %v1570_v45 = vadd.f32 %v1563_v29, %v1542_v43 }
 0x36e   : > { %v1558_v59 = vadd.f32 %v1554_v41, %v1544_v60  ;;  %v1571_v54 = vadd.f32 %v1567_v14, %v1544_v60 }
 0x36f   : > { %v1574_v17 = vmul.f32 %v1570_v45, %v1570_v45  ;;  %v1572_v56 = vmul.f32 %v1557_v47, %v1557_v47 }
 0x370   : > { %v1575_v32 = vmul.f32 %v1571_v54, %v1571_v54  ;;  %v1573_v44 = vmul.f32 %v1558_v59, %v1558_v59 }
 0x371   : > { %v1578_v24 = vrot.slane %v1574_v17, 1 }
 0x372   : > { %v1579_v58 = vrot.slane %v1575_v32, 1 }
 0x373   : > { %v1582_v55 = vadd.f32 %v1578_v24, %v1572_v56 }
 0x374   : > { %v1583_v0 = vadd.f32 %v1579_v58, %v1573_v44 }
 0x375   : > { %1854 = vrsqrt.f32 %v1582_v55  ;;  %vm1586_vm12 = vcmp.eq.f32.partialorder %v1582_v55, inf  ;;  %v1589_v42 = vand.u32 2147483648, %v1582_v55  ;;  %vm1588_vm13 = vcmp.eq.f32.partialorder %v1582_v55, 0.0 }
 0x376   : > { %1856 = vrsqrt.f32 %v1583_v0  ;;  %vm1593_vm14 = vcmp.eq.f32.partialorder %v1583_v0, inf  ;;  %v1596_v6 = vand.u32 2147483648, %v1583_v0  ;;  %vm1595_vm15 = vcmp.eq.f32.partialorder %v1583_v0, 0.0 }
 0x37f   : > { %v1855_v49 = vpop.eup %1854 }
 0x380   : > { %v1857_v4 = vpop.eup %1856  ;;  %v1585_v2 = vmul.f32 %v1855_v49, %v1582_v55 }
 0x381   : > { %v1592_v25 = vmul.f32 %v1857_v4, %v1583_v0 }
 0x382   : > { %v1587_v63 = vsel %vm1586_vm12, %v1582_v55, %v1585_v2 }
 0x383   : > { %v1590_v52 = vsel %vm1588_vm13, %v1589_v42, %v1587_v63  ;;  %v1594_v40 = vsel %vm1593_vm14, %v1583_v0, %v1592_v25 }
 0x384   : > { %v1598_v3 = vmin.f32 %v1590_v52, 0.0014163791  ;;  %v1597_v21 = vsel %vm1595_vm15, %v1596_v6, %v1594_v40 }
 0x385   : > { %v1599_v13 = vmin.f32 %v1597_v21, 0.0014163791 }
 0x387   : > { %v1602_v51 = vcombine.low %v1598_v3, %v1599_v13 }
 0x389   : > { %v1609_v35 = vrot.slane %v1602_v51, %v1608_v62 }
 0x38b   : > { %v1616_v8 = vrot.slane %v1609_v35, %v1608_v62 }
 0x38d   : > { %1618 = vst.msk [vmem:[%s340_s21] sm:$0x3] %vm1935_vm0, %v1616_v8 }
 0x38e PF: > { %s18_s27 = sadd.s32 1, %s1864_s27  }
 0x38f   : > { %p15_p4 = scmp.ge.s32.totalorder %s18_s27, 4  }
 0x391   :  { %17 = sbr.rel (!%p15_p4) target bundleno = 1 (0x1), region = 112 }

// kernel: mymodel_v7_forward.2
= control target key start
LH: loop header
LB: loop body
LE: loop exit
PB: predicated region body
PF: predicated region fallthrough
CT: control target
= control target key end

     0   :  { %s3133_s21 = smov 0   ;;  %s4260_s0 = inlined_call_operand.vmem [shape: f32[2,2,1024], index: 0, kind: input, shape index: {}]   ;;  %s4261_s1 = inlined_call_operand.vmem [shape: f32[9,1024], index: 1, kind: input, shape index: {}]   ;;  %s4262_s2 = inlined_call_operand.vmem [shape: f32[8,18], index: 2, kind: input, shape index: {}]   ;;  %s4263_s3 = inlined_call_operand.vmem [shape: f32[8,1], index: 3, kind: input, shape index: {}]   ;;  %s4264_s4 = inlined_call_operand.vmem [shape: f32[2,72], index: 4, kind: input, shape index: {}]   ;;  %s4265_s5 = inlined_call_operand.vmem [shape: f32[2,1], index: 5, kind: input, shape index: {}]   ;;  %s4266_s6 = inlined_call_operand.vmem [shape: f32[2,2,1024], index: 6, kind: output, shape index: {}]  }
   0x1 LB: > { %s2914_s22 = sadd.s32 4294967295, %s3085_s21   ;;  %p2918_p0 = scmp.ge.s32.totalorder %s3085_s21, 1  ;;  %s3085_s21 = sphi %s3133_s21, %s16_s21  }
   0x2   : > { %p212_p1 = scmp.lt.s32.totalorder %s3085_s21, 3 }
   0x4   : > { %p213_p2 = pnand %p2918_p0, %p212_p1 }
   0x5   : > { %p242_p3 = scmp.lt.s32.totalorder (!%p213_p2), %s2914_s22, 1  ;;  %v260_v0 = vlaneseq (!%p213_p2)  ;;  %v3087_v1 = vmov (!%p213_p2), 1983009808   ;;  %s3088_s27 = smov (!%p213_p2), 16   ;;  %v3096_v18 = vmov (!%p213_p2), 0.0   ;;  %vm399_vm0 = vcmask (!%p213_p2), 130048  }
   0x6   : > { %216 = sbr.rel (%p213_p2) target bundleno = 971 (0x3cb), region = 44  ;;  %v258_v2 = vunpack.c.l.s4 (!%p213_p2), %v3087_v1  ;;  %s3089_s28 = smov (!%p213_p2), 15   ;;  %1396 = vmatprep.mubr.f32.mxu1 (!%p213_p2), %v3096_v18  ;;  %1325 = vmatprep.mubr.f32.mxu0 (!%p213_p2), %v3096_v18  ;;  %v2923_v19 = vld [vmem:[%s4261_s1 + $0x1] ss:$8 sm:$0xf] (!%p213_p2)  ;;  %vm517_vm1 = vcmask (!%p213_p2), 121856  }
   0x7   : > { %v3143_v3 = vshrl.u32 (!%p213_p2), %v260_v0, 7  ;;  %s3090_s29 = smov (!%p213_p2), 1   ;;  %s3091_s30 = smov (!%p213_p2), 127   ;;  %v2924_v20 = vld [vmem:[%s4261_s1 + $0x1] ss:$8 sm:$0xf0] (!%p213_p2) }
   0x8   : > { %v259_v4 = vunpack.c.0.s8 (!%p213_p2), %v258_v2  ;;  %s3092_s7 = smov (!%p213_p2), 113   ;;  %s3093_s8 = smov (!%p213_p2), 112   ;;  %v3287_v22 = vor.u32 (!%p213_p2), %v2924_v20, %v2923_v19  ;;  %v2925_v23 = vld [vmem:[%s4261_s1 + $0x2] ss:$8 sm:$0xf] (!%p213_p2)  ;;  %vm635_vm2 = vcmask (!%p213_p2), 7168  }
   0x9   : > { %s3094_s9 = smov (!%p213_p2), 17   ;;  %s3095_s10 = smov (!%p213_p2), 111   ;;  %v3283_v21 = vsub.s32 (!%p213_p2), 0, %v3143_v3  ;;  %v2926_v24 = vld [vmem:[%s4261_s1 + $0x2] ss:$8 sm:$0xf0] (!%p213_p2) }
   0xa   : > { %v3152_v5 = vsub.s32 (!%p213_p2), %v259_v4, %v3143_v3  ;;  %v3301_v27 = vor.u32 (!%p213_p2), %v2926_v24, %v2925_v23  ;;  %v3304_v28 = vsub.s32 (!%p213_p2), 1, %v3143_v3  ;;  %v3312_v33 = vsub.s32 (!%p213_p2), 2, %v3143_v3  ;;  %v2927_v50 = vld [vmem:[%s4261_s1 + $0x3] ss:$8 sm:$0xf] (!%p213_p2) }
   0xb   : > { %v424_v25 = vrot.slane (!%p213_p2), %v3287_v22, %v3283_v21  ;;  %v3319_v37 = vsub.s32 (!%p213_p2), 3, %v3143_v3  ;;  %v2928_v51 = vld [vmem:[%s4261_s1 + $0x3] ss:$8 sm:$0xf0] (!%p213_p2)  ;;  %v3097_v19 = vmov (!%p213_p2), 0   ;;  %vm769_vm3 = vcmask (!%p213_p2), 1039360  }
   0xc   : > { %v542_v32 = vrot.slane (!%p213_p2), %v3301_v27, %v3283_v21  ;;  %v546_v36 = vrot.slane (!%p213_p2), %v3301_v27, %v3304_v28  ;;  %v428_v41 = vrot.slane (!%p213_p2), %v3287_v22, %v3304_v28  ;;  %v432_v42 = vrot.slane (!%p213_p2), %v3287_v22, %v3312_v33  ;;  %3074 = vset.pattern.permute.xlu0 (!%p213_p2), %v3097_v19 }
   0xd   : > { %s4268_s22 = smov (!%p242_p3, %s2914_s22), 1  ;;  %v436_v47 = vrot.slane %v3287_v22, %v3319_v37  ;;  %v550_v56 = vrot.slane %v3301_v27, %v3312_v33  ;;  %v554_v58 = vrot.slane %v3301_v27, %v3319_v37  ;;  %v3351_v63 = vor.u32 %v2928_v51, %v2927_v50 }
   0xe   : > { %s2973_s23 = sshll.u32 %s4268_s22, 4  ;;  %vm887_vm4 = vcmask 924672   ;;  %vm1005_vm5 = vcmask 916480   ;;  %vm306_vm6 = vcmask 138240   ;;  %vm1123_vm7 = vcmask 908288  }
   0xf   : > { %s246_s26 = scalar_lea.vmem %s4260_s0, %s2973_s23  ;;  %vm1236_vm8 = vcmask 1041408   ;;  %vm1232_vm9 = vcmask 146432   ;;  %vm2384_vm10 = vcmask 588800   ;;  %s251_s18 = scalar_lea.vmem %s4266_s6, %s2973_s23 }
  0x10   : > { %v3154_v6 = vld [vmem:[%s246_s26] sm:$0xff]  ;;  %v3156_v7 = vld [vmem:[%s246_s26 + $0x8] sm:$0xff] }
  0x11   : > { %v3160_v8 = vrot.slane %v3154_v6, %v3152_v5  ;;  %2929 = vst.sshfl [vmem:[#allocation2 + $0x40] sm:$0x3 pattern:$0x76325410] %v3154_v6  ;;  %v256_v9 = vcombine.high %v3154_v6, %v3154_v6  ;;  %v3167_v10 = vrot.slane %v3156_v7, %v3152_v5  ;;  %v273_v11 = vcombine.high %v3156_v7, %v3156_v7 }
  0x12   : > { %2931 = vst.sshfl [vmem:[#allocation2 + $0x60] sm:$0x3 pattern:$0x76325410] %v3156_v7 }
  0x13   : > { %383 = vrot.lane.b32.xlu0 %v3160_v8, %s3088_s27  ;;  %v270_v12 = vrot.slane %v256_v9, %v3152_v5  ;;  %2930 = vst.sshfl [vmem:[#allocation2 + $0x50] sm:$0x3 pattern:$0x76325410] %v256_v9  ;;  %v271_v13 = vcombine.high %v3160_v8, %v3160_v8  ;;  %v3179_v14 = vcombine.high %v3167_v10, %v3167_v10 }
  0x14   : > { %v3182_v15 = vrot.slane %v273_v11, %v3152_v5  ;;  %2932 = vst.sshfl [vmem:[#allocation2 + $0x70] sm:$0x3 pattern:$0x76325410] %v273_v11 }
  0x15   : > { %387 = vrot.lane.b32.xlu1 %v270_v12, %s3088_s27  ;;  %746 = vst [vmem:[#allocation2 + $0x48] sm:$0x3] %v271_v13  ;;  %v272_v16 = vcombine.high %v270_v12, %v270_v12  ;;  %750 = vst [vmem:[#allocation2 + $0x68] sm:$0x3] %v3179_v14 }
  0x16   : > { %v3188_v17 = vcombine.high %v3182_v15, %v3182_v15 }
  0x17   : > { %501 = vrot.lane.b32.xlu0 %v3160_v8, %s3089_s28  ;;  %748 = vst [vmem:[#allocation2 + $0x58] sm:$0x3] %v272_v16 }
  0x18   : > { %752 = vst [vmem:[#allocation2 + $0x78] sm:$0x3] %v3188_v17 }
  0x19   : > { %503 = vrot.lane.b32.xlu1 %v271_v13, %s3089_s28 }
  0x1b   : > { %385 = vrot.lane.b32.xlu0 %v271_v13, %s3088_s27 }
  0x1d   : > { %389 = vrot.lane.b32.xlu1 %v272_v16, %s3088_s27 }
  0x1f   : > { %505 = vrot.lane.b32.xlu0 %v270_v12, %s3089_s28 }
  0x21   : > { %507 = vrot.lane.b32.xlu1 %v272_v16, %s3089_s28 }
  0x23   : > { %619 = vrot.lane.b32.xlu0 %v3160_v8, %s3090_s29 }
  0x25   : > { %621 = vrot.lane.b32.xlu1 %v271_v13, %s3090_s29 }
  0x27   : > { %623 = vrot.lane.b32.xlu0 %v270_v12, %s3090_s29 }
  0x29   : > { %625 = vrot.lane.b32.xlu1 %v272_v16, %s3090_s29 }
  0x2b   : > { %755 = vrot.lane.b32.xlu0 %v271_v13, %s3091_s30 }
  0x2d   : > { %757 = vrot.lane.b32.xlu1 %v270_v12, %s3091_s30 }
  0x2f   : > { %759 = vrot.lane.b32.xlu0 %v272_v16, %s3091_s30 }
  0x31   : > { %761 = vrot.lane.b32.xlu1 %v3167_v10, %s3091_s30 }
  0x33   : > { %873 = vrot.lane.b32.xlu0 %v271_v13, %s3092_s7 }
  0x35   : > { %875 = vrot.lane.b32.xlu1 %v270_v12, %s3092_s7 }
  0x37   : > { %877 = vrot.lane.b32.xlu0 %v272_v16, %s3092_s7 }
  0x39   : > { %879 = vrot.lane.b32.xlu1 %v3167_v10, %s3092_s7 }
  0x3b   : > { %991 = vrot.lane.b32.xlu0 %v271_v13, %s3093_s8 }
  0x3d   : > { %993 = vrot.lane.b32.xlu1 %v270_v12, %s3093_s8 }
  0x3f   : > { %995 = vrot.lane.b32.xlu0 %v272_v16, %s3093_s8 }
  0x41   : > { %997 = vrot.lane.b32.xlu1 %v3167_v10, %s3093_s8 }
  0x43   : > { %753 = vrot.lane.b32.xlu0 %v3160_v8, %s3091_s30 }
  0x45   : > { %871 = vrot.lane.b32.xlu1 %v3160_v8, %s3092_s7 }
  0x47   : > { %989 = vrot.lane.b32.xlu0 %v3160_v8, %s3093_s8 }
  0x49   : > { %290 = vrot.lane.b32.xlu1 %v3160_v8, %s3094_s9 }
  0x4b   : > { %292 = vrot.lane.b32.xlu0 %v271_v13, %s3094_s9 }
  0x4d   : > { %294 = vrot.lane.b32.xlu1 %v270_v12, %s3094_s9 }
  0x4f   : > { %296 = vrot.lane.b32.xlu0 %v272_v16, %s3094_s9 }
  0x51   : > { %1109 = vrot.lane.b32.xlu1 %v271_v13, %s3095_s10  ;;  %v664_v13 = vrot.slane %v3351_v63, %v3304_v28 }
  0x53   : > { %1111 = vrot.lane.b32.xlu0 %v270_v12, %s3095_s10 }
  0x55   : > { %1113 = vrot.lane.b32.xlu1 %v272_v16, %s3095_s10 }
  0x57   : > { %1115 = vrot.lane.b32.xlu0 %v3167_v10, %s3095_s10 }
  0x59   : > { %391 = vrot.lane.b32.xlu1 %v3167_v10, %s3088_s27 }
  0x5b   : > { %393 = vrot.lane.b32.xlu0 %v3179_v14, %s3088_s27 }
  0x5d   : > { %509 = vrot.lane.b32.xlu1 %v3167_v10, %s3089_s28 }
  0x5f   : > { %511 = vrot.lane.b32.xlu0 %v3179_v14, %s3089_s28 }
  0x61   : > { %627 = vrot.lane.b32.xlu1 %v3167_v10, %s3090_s29 }
  0x63   : > { %629 = vrot.lane.b32.xlu0 %v3179_v14, %s3090_s29 }
  0x65   : > { %763 = vrot.lane.b32.xlu1 %v3179_v14, %s3091_s30 }
  0x67   : > { %765 = vrot.lane.b32.xlu0 %v3182_v15, %s3091_s30 }
  0x69   : > { %881 = vrot.lane.b32.xlu1 %v3179_v14, %s3092_s7 }
  0x6b   : > { %883 = vrot.lane.b32.xlu0 %v3182_v15, %s3092_s7 }
  0x6d   : > { %999 = vrot.lane.b32.xlu1 %v3179_v14, %s3093_s8 }
  0x6f   : > { %1001 = vrot.lane.b32.xlu0 %v3182_v15, %s3093_s8 }
  0x71   : > { %1107 = vrot.lane.b32.xlu1 %v3160_v8, %s3095_s10  ;;  %v660_v8 = vrot.slane %v3351_v63, %v3283_v21 }
  0x73   : > { %298 = vrot.lane.b32.xlu0 %v3167_v10, %s3094_s9 }
  0x75   : > { %300 = vrot.lane.b32.xlu1 %v3179_v14, %s3094_s9 }
  0x77   : > { %1117 = vrot.lane.b32.xlu0 %v3179_v14, %s3095_s10  ;;  %v2933_v14 = vld [vmem:[%s4261_s1 + $0x5] ss:$8 sm:$0xf] }
  0x79   : > { %1119 = vrot.lane.b32.xlu1 %v3182_v15, %s3095_s10 }
  0x7b   : > { %395 = vrot.lane.b32.xlu0 %v3182_v15, %s3088_s27 }
  0x7d   : > { %397 = vrot.lane.b32.xlu1 %v3188_v17, %s3088_s27 }
  0x7f   : > { %513 = vrot.lane.b32.xlu0 %v3182_v15, %s3089_s28 }
  0x81   : > { %515 = vrot.lane.b32.xlu1 %v3188_v17, %s3089_s28 }
  0x83   : > { %631 = vrot.lane.b32.xlu0 %v3182_v15, %s3090_s29 }
  0x85   : > { %v384_v26 = vpop.permute.xlu0 %383  ;;  %633 = vrot.lane.b32.xlu1 %v3188_v17, %s3090_s29 }
  0x86   : > { %v415_v29 = vsel %vm399_vm0, 0.0, %v384_v26 }
  0x87   : > { %v461_v30 = vmul.f32 %v424_v25, %v415_v29  ;;  %v388_v31 = vpop.permute.xlu1 %387  ;;  %767 = vrot.lane.b32.xlu0 %v3188_v17, %s3091_s30  ;;  %v668_v25 = vrot.slane %v3351_v63, %v3312_v33 }
  0x89   : > { %v477_v34 = vrot.slane %v461_v30, 6  ;;  %v502_v35 = vpop.permute.xlu0 %501  ;;  %885 = vrot.lane.b32.xlu1 %v3188_v17, %s3092_s7 }
  0x8a   : > { %v533_v38 = vsel %vm517_vm1, 0.0, %v502_v35 }
  0x8b   : > { %493 = vst [vmem:[#allocation2] sm:$0xc] %v477_v34  ;;  %v579_v39 = vmul.f32 %v542_v32, %v533_v38  ;;  %v504_v40 = vpop.permute.xlu1 %503  ;;  %1003 = vrot.lane.b32.xlu0 %v3188_v17, %s3093_s8  ;;  %v672_v32 = vrot.slane %v3351_v63, %v3319_v37 }
  0x8c   : > { %v518_v43 = vsel %vm517_vm1, %v502_v35, %v504_v40 }
  0x8d   : > { %v595_v44 = vrot.slane %v579_v39, 4  ;;  %v580_v45 = vmul.f32 %v546_v36, %v518_v43  ;;  %v386_v46 = vpop.permute.xlu0 %385  ;;  %302 = vrot.lane.b32.xlu1 %v3182_v15, %s3094_s9  ;;  %v1226_v15 = vld [vmem:[%s4263_s3] sm:$0xff] }
  0x8e   : > { %v400_v48 = vsel %vm399_vm0, %v384_v26, %v386_v46  ;;  %v401_v49 = vsel %vm399_vm0, %v386_v46, %v388_v31  ;;  %v2936_v46 = vld [vmem:[%s4261_s1 + $0x6] ss:$8 sm:$0xf0] }
  0x8f   : > { %611 = vst [vmem:[#allocation2] sm:$0x30] %v595_v44  ;;  %v596_v52 = vrot.slane %v580_v45, 4  ;;  %v462_v53 = vmul.f32 %v428_v41, %v400_v48  ;;  %v463_v54 = vmul.f32 %v432_v42, %v401_v49  ;;  %304 = vrot.lane.b32.xlu0 %v3188_v17, %s3094_s9  ;;  %v3343_v55 = vpop.permute.xlu1 %389  ;;  %v2935_v45 = vld [vmem:[%s4261_s1 + $0x6] ss:$8 sm:$0xf] }
  0x90   : > { %v402_v57 = vsel %vm399_vm0, %v388_v31, %v3343_v55 }
  0x91   : > { %612 = vst [vmem:[#allocation2 + $0x8] sm:$0x30] %v596_v52  ;;  %v478_v59 = vrot.slane %v462_v53, 6  ;;  %v479_v60 = vrot.slane %v463_v54, 6  ;;  %v464_v61 = vmul.f32 %v436_v47, %v402_v57  ;;  %v506_v62 = vpop.permute.xlu0 %505  ;;  %1121 = vrot.lane.b32.xlu1 %v3188_v17, %s3095_s10  ;;  %v3402_v54 = vor.u32 %v2936_v46, %v2935_v45 }
  0x92   : > { %v519_v0 = vsel %vm517_vm1, %v504_v40, %v506_v62  ;;  %v2934_v17 = vld [vmem:[%s4261_s1 + $0x5] ss:$8 sm:$0xf0]  ;;  %v324_v45 = vld [vmem:[%s4261_s1] ss:$8 sm:$0xf0] }
  0x93   : > { %494 = vst [vmem:[#allocation2 + $0x8] sm:$0xc] %v478_v59  ;;  %495 = vst [vmem:[#allocation2 + $0x10] sm:$0xc] %v479_v60  ;;  %v480_v1 = vrot.slane %v464_v61, 6  ;;  %v581_v2 = vmul.f32 %v550_v56, %v519_v0  ;;  %v3356_v4 = vpop.permute.xlu1 %507  ;;  %1229 = vperm.xlu0 %3074, %v1226_v15   ;;  %v3379_v34 = vor.u32 %v2934_v17, %v2933_v14 }
  0x94   : > { %v520_v9 = vsel %vm517_vm1, %v506_v62, %v3356_v4  ;;  %v924_v15 = vrot.slane %v3402_v54, %v3319_v37 }
  0x95   : > { %496 = vst [vmem:[#allocation2 + $0x18] sm:$0xc] %v480_v1  ;;  %v597_v10 = vrot.slane %v581_v2, 4  ;;  %v582_v11 = vmul.f32 %v554_v58, %v520_v9  ;;  %v620_v12 = vpop.permute.xlu0 %619  ;;  %v798_v44 = vrot.slane %v3379_v34, %v3304_v28  ;;  %v802_v49 = vrot.slane %v3379_v34, %v3312_v33  ;;  %v2937_v2 = vld [vmem:[%s4261_s1 + $0x7] ss:$8 sm:$0xf] }
  0x96   : > { %v651_v16 = vsel %vm635_vm2, 0.0, %v620_v12  ;;  %v806_v53 = vrot.slane %v3379_v34, %v3319_v37  ;;  %v916_v1 = vrot.slane %v3402_v54, %v3304_v28 }
  0x97   : > { %613 = vst [vmem:[#allocation2 + $0x10] sm:$0x30] %v597_v10  ;;  %v598_v20 = vrot.slane %v582_v11, 4  ;;  %v697_v23 = vmul.f32 %v660_v8, %v651_v16  ;;  %v622_v24 = vpop.permute.xlu1 %621  ;;  %v2938_v8 = vld [vmem:[%s4261_s1 + $0x7] ss:$8 sm:$0xf0]  ;;  %v920_v11 = vrot.slane %v3402_v54, %v3312_v33 }
  0x98   : > { %v636_v26 = vsel %vm635_vm2, %v620_v12, %v622_v24  ;;  %v3422_v16 = vor.u32 %v2938_v8, %v2937_v2 }
  0x99   : > { %614 = vst [vmem:[#allocation2 + $0x18] sm:$0x30] %v598_v20  ;;  %v713_v29 = vrot.slane %v697_v23, 2  ;;  %v698_v30 = vmul.f32 %v664_v13, %v636_v26  ;;  %v624_v31 = vpop.permute.xlu0 %623 }
  0x9a   : > { %v637_v35 = vsel %vm635_vm2, %v622_v24, %v624_v31 }
  0x9b   : > { %729 = vst [vmem:[#allocation2] sm:$0xc0] %v713_v29  ;;  %v714_v36 = vrot.slane %v698_v30, 2  ;;  %v699_v38 = vmul.f32 %v668_v25, %v637_v35  ;;  %v3382_v39 = vpop.permute.xlu1 %625  ;;  %v1034_v30 = vrot.slane %v3422_v16, %v3304_v28  ;;  %v1038_v35 = vrot.slane %v3422_v16, %v3312_v33 }
  0x9c   : > { %v638_v40 = vsel %vm635_vm2, %v624_v31, %v3382_v39 }
  0x9d   : > { %730 = vst [vmem:[#allocation2 + $0x8] sm:$0xc0] %v714_v36  ;;  %v715_v41 = vrot.slane %v699_v38, 2  ;;  %v700_v42 = vmul.f32 %v672_v32, %v638_v40  ;;  %v3386_v43 = vpop.permute.xlu0 %755 }
  0x9f   : > { %731 = vst [vmem:[#allocation2 + $0x10] sm:$0xc0] %v715_v41  ;;  %v716_v47 = vrot.slane %v700_v42, 2  ;;  %v758_v48 = vpop.permute.xlu1 %757  ;;  %v1042_v41 = vrot.slane %v3422_v16, %v3319_v37 }
  0xa0   : > { %v771_v50 = vsel %vm769_vm3, %v3386_v43, %v758_v48 }
  0xa1   : > { %732 = vst [vmem:[#allocation2 + $0x18] sm:$0xc0] %v716_v47  ;;  %v832_v51 = vmul.f32 %v798_v44, %v771_v50  ;;  %v760_v52 = vpop.permute.xlu0 %759  ;;  %v323_v44 = vld [vmem:[%s4261_s1] ss:$8 sm:$0xf] }
  0xa2   : > { %v772_v56 = vsel %vm769_vm3, %v758_v48, %v760_v52 }
  0xa3   : > { %v848_v57 = vrot.slane %v832_v51, 6  ;;  %v833_v58 = vmul.f32 %v802_v49, %v772_v56  ;;  %v3405_v59 = vpop.permute.xlu1 %761  ;;  %v794_v49 = vrot.slane %v3379_v34, %v3283_v21  ;;  %v912_v56 = vrot.slane %v3402_v54, %v3283_v21 }
  0xa4   : > { %v773_v60 = vsel %vm769_vm3, %v760_v52, %v3405_v59 }
  0xa5   : > { %864 = vst [vmem:[#allocation2 + $0x48] sm:$0xc] %v848_v57  ;;  %v849_v61 = vrot.slane %v833_v58, 6  ;;  %v834_v62 = vmul.f32 %v806_v53, %v773_v60  ;;  %v874_v0 = vpop.permute.xlu0 %873  ;;  %v3451_v57 = vor.u32 %v324_v45, %v323_v44 }
  0xa7   : > { %865 = vst [vmem:[#allocation2 + $0x50] sm:$0xc] %v849_v61  ;;  %v850_v9 = vrot.slane %v834_v62, 6  ;;  %v876_v10 = vpop.permute.xlu1 %875 }
  0xa8   : > { %v889_v12 = vsel %vm887_vm4, %v874_v0, %v876_v10 }
  0xa9   : > { %866 = vst [vmem:[#allocation2 + $0x58] sm:$0xc] %v850_v9  ;;  %v950_v13 = vmul.f32 %v916_v1, %v889_v12  ;;  %v878_v14 = vpop.permute.xlu0 %877  ;;  %v1030_v1 = vrot.slane %v3422_v16, %v3283_v21 }
  0xaa   : > { %v890_v17 = vsel %vm887_vm4, %v876_v10, %v878_v14 }
  0xab   : > { %v966_v19 = vrot.slane %v950_v13, 4  ;;  %v951_v20 = vmul.f32 %v920_v11, %v890_v17  ;;  %v3425_v23 = vpop.permute.xlu1 %879  ;;  %v330_v11 = vrot.slane %v3451_v57, %v3283_v21 }
  0xac   : > { %v891_v24 = vsel %vm887_vm4, %v878_v14, %v3425_v23 }
  0xad   : > { %982 = vst [vmem:[#allocation2 + $0x48] sm:$0x30] %v966_v19  ;;  %v967_v25 = vrot.slane %v951_v20, 4  ;;  %v952_v26 = vmul.f32 %v924_v15, %v891_v24  ;;  %v992_v29 = vpop.permute.xlu0 %991  ;;  %v334_v15 = vrot.slane %v3451_v57, %v3304_v28  ;;  %v2940_v19 = vld [vmem:[%s4261_s1 + $0x40] ss:$8 sm:$0xf0] }
  0xaf   : > { %983 = vst [vmem:[#allocation2 + $0x50] sm:$0x30] %v967_v25  ;;  %v968_v31 = vrot.slane %v952_v26, 4  ;;  %v994_v32 = vpop.permute.xlu1 %993  ;;  %v338_v26 = vrot.slane %v3451_v57, %v3312_v33 }
  0xb0   : > { %v1007_v36 = vsel %vm1005_vm5, %v992_v29, %v994_v32 }
  0xb1   : > { %984 = vst [vmem:[#allocation2 + $0x58] sm:$0x30] %v968_v31  ;;  %v1068_v38 = vmul.f32 %v1034_v30, %v1007_v36  ;;  %v996_v40 = vpop.permute.xlu0 %995 }
  0xb2   : > { %v1008_v42 = vsel %vm1005_vm5, %v994_v32, %v996_v40  ;;  %v342_v32 = vrot.slane %v3451_v57, %v3319_v37 }
  0xb3   : > { %v1084_v46 = vrot.slane %v1068_v38, 2  ;;  %v1069_v47 = vmul.f32 %v1038_v35, %v1008_v42  ;;  %v3443_v48 = vpop.permute.xlu1 %997 }
  0xb4   : > { %v1009_v50 = vsel %vm1005_vm5, %v996_v40, %v3443_v48 }
  0xb5   : > { %1100 = vst [vmem:[#allocation2 + $0x48] sm:$0xc0] %v1084_v46  ;;  %v1085_v51 = vrot.slane %v1069_v47, 2  ;;  %v1070_v52 = vmul.f32 %v1042_v41, %v1009_v50  ;;  %v754_v53 = vpop.permute.xlu0 %753 }
  0xb6   : > { %v770_v58 = vsel %vm769_vm3, %v754_v53, %v3386_v43 }
  0xb7   : > { %1101 = vst [vmem:[#allocation2 + $0x50] sm:$0xc0] %v1085_v51  ;;  %v1086_v60 = vrot.slane %v1070_v52, 2  ;;  %v831_v61 = vmul.f32 %v794_v49, %v770_v58  ;;  %v872_v62 = vpop.permute.xlu1 %871  ;;  %v3489_v49 = vsub.s32 4, %v3143_v3 }
  0xb8   : > { %v888_v2 = vsel %vm887_vm4, %v872_v62, %v874_v0  ;;  %v2939_v0 = vld [vmem:[%s4261_s1 + $0x40] ss:$8 sm:$0xf] }
  0xb9   : > { %1102 = vst [vmem:[#allocation2 + $0x58] sm:$0xc0] %v1086_v60  ;;  %v847_v8 = vrot.slane %v831_v61, 6  ;;  %v949_v9 = vmul.f32 %v912_v56, %v888_v2  ;;  %v990_v10 = vpop.permute.xlu0 %989  ;;  %v3475_v35 = vor.u32 %v2940_v19, %v2939_v0  ;;  %v3496_v60 = vsub.s32 5, %v3143_v3 }
  0xba   : > { %v1006_v12 = vsel %vm1005_vm5, %v990_v10, %v992_v29  ;;  %v440_v10 = vrot.slane %v3287_v22, %v3489_v49 }
  0xbb   : > { %863 = vst [vmem:[#allocation2 + $0x40] sm:$0xc] %v847_v8  ;;  %v965_v43 = vrot.slane %v949_v9, 4  ;;  %v1067_v13 = vmul.f32 %v1030_v1, %v1006_v12  ;;  %v291_v14 = vpop.permute.xlu1 %290  ;;  %v1152_v45 = vrot.slane %v3475_v35, %v3304_v28  ;;  %v1156_v47 = vrot.slane %v3475_v35, %v3312_v33 }
  0xbc   : > { %v322_v17 = vsel %vm306_vm6, 0.0, %v291_v14  ;;  %v1160_v53 = vrot.slane %v3475_v35, %v3319_v37  ;;  %v1211_v1 = vld [vmem:[#allocation2 + $0x48] sm:$0xff] }
  0xbd   : > { %981 = vst [vmem:[#allocation2 + $0x40] sm:$0x30] %v965_v43  ;;  %v1083_v20 = vrot.slane %v1067_v13, 2  ;;  %v367_v24 = vmul.f32 %v330_v11, %v322_v17  ;;  %v293_v25 = vpop.permute.xlu0 %292 }
  0xbe   : > { %v307_v29 = vsel %vm306_vm6, %v291_v14, %v293_v25  ;;  %v444_v14 = vrot.slane %v3287_v22, %v3496_v60 }
  0xbf   : > { %1099 = vst [vmem:[#allocation2 + $0x40] sm:$0xc0] %v1083_v20  ;;  %375 = vst [vmem:[#allocation2] sm:$0x3] %v367_v24  ;;  %v368_v30 = vmul.f32 %v334_v15, %v307_v29  ;;  %v295_v31 = vpop.permute.xlu1 %294  ;;  %v1212_v29 = vld [vmem:[#allocation2 + $0x50] sm:$0xff] }
  0xc0   : > { %v308_v36 = vsel %vm306_vm6, %v293_v25, %v295_v31  ;;  %v1213_v19 = vld [vmem:[#allocation2 + $0x58] sm:$0xff]  ;;  %v558_v25 = vrot.slane %v3301_v27, %v3489_v49 }
  0xc1   : > { %376 = vst [vmem:[#allocation2 + $0x8] sm:$0x3] %v368_v30  ;;  %v369_v38 = vmul.f32 %v338_v26, %v308_v36  ;;  %v3478_v40 = vpop.permute.xlu0 %296 }
  0xc2   : > { %v309_v41 = vsel %vm306_vm6, %v295_v31, %v3478_v40 }
  0xc3   : > { %377 = vst [vmem:[#allocation2 + $0x10] sm:$0x3] %v369_v38  ;;  %v370_v42 = vmul.f32 %v342_v32, %v309_v41  ;;  %v3482_v44 = vpop.permute.xlu1 %1109  ;;  %v562_v38 = vrot.slane %v3301_v27, %v3496_v60 }
  0xc5   : > { %378 = vst [vmem:[#allocation2 + $0x18] sm:$0x3] %v370_v42  ;;  %v1112_v46 = vpop.permute.xlu0 %1111 }
  0xc6   : > { %v1125_v50 = vsel %vm1123_vm7, %v3482_v44, %v1112_v46  ;;  %v1202_v56 = vld [vmem:[#allocation2] sm:$0xff] }
  0xc7   : > { %v1186_v51 = vmul.f32 %v1152_v45, %v1125_v50  ;;  %v1114_v52 = vpop.permute.xlu1 %1113  ;;  %v1210_v58 = vld [vmem:[#allocation2 + $0x40] sm:$0xff]  ;;  %v676_v50 = vrot.slane %v3351_v63, %v3489_v49 }
  0xc8   : > { %v1126_v61 = vsel %vm1123_vm7, %v1112_v46, %v1114_v52  ;;  %v1203_v62 = vld [vmem:[#allocation2 + $0x8] sm:$0xff]  ;;  %v2977_v12 = vpack.c.bf16 %v1210_v58, %v1202_v56 }
  0xc9   : > { %1194 = vst [vmem:[#allocation2 + $0x88] sm:$0x3] %v1186_v51  ;;  %v1187_v2 = vmul.f32 %v1156_v47, %v1126_v61  ;;  %v3499_v8 = vpop.permute.xlu0 %1115  ;;  %v2975_v9 = vpack.c.bf16 %v1211_v1, %v1203_v62  ;;  %v3533_v62 = vld [vmem:[%s4262_s2] sm:$0xff] }
  0xca   : > { %v1127_v11 = vsel %vm1123_vm7, %v1114_v52, %v3499_v8  ;;  %v1204_v15 = vld [vmem:[#allocation2 + $0x10] sm:$0xff] }
  0xcb   : > { %1195 = vst [vmem:[#allocation2 + $0x90] sm:$0x3] %v1187_v2  ;;  %v1188_v43 = vmul.f32 %v1160_v53, %v1127_v11  ;;  %2976 = vmatprep.subr.bf16.mxu0 %v2975_v9  ;;  %v392_v13 = vpop.permute.xlu1 %391  ;;  %v2981_v31 = vpack.c.bf16 %v1212_v29, %v1204_v15  ;;  %v810_v11 = vrot.slane %v3379_v34, %v3489_v49 }
  0xcc   : > { %v403_v0 = vsel %vm399_vm0, %v3343_v55, %v392_v13  ;;  %2978 = vmatpush1.bf16.msra.mxu0 %v2977_v12  ;;  %v1205_v17 = vld [vmem:[#allocation2 + $0x18] sm:$0xff] }
  0xcd   : > { %1196 = vst [vmem:[#allocation2 + $0x98] sm:$0x3] %v1188_v43  ;;  %v465_v20 = vmul.f32 %v440_v10, %v403_v0  ;;  %v3509_v24 = vpop.permute.xlu0 %393  ;;  %v2979_v26 = vpack.c.bf16 %v1213_v19, %v1205_v17 }
  0xce   : > { %v404_v30 = vsel %vm399_vm0, %v392_v13, %v3509_v24 }
  0xcf   : > { %v481_v32 = vrot.slane %v465_v20, 6  ;;  %v466_v36 = vmul.f32 %v444_v14, %v404_v30  ;;  %v510_v55 = vpop.permute.xlu1 %509  ;;  %2980 = vmatprep.subr.bf16.mxu1 %v2979_v26  ;;  %v814_v14 = vrot.slane %v3379_v34, %v3496_v60  ;;  %v928_v20 = vrot.slane %v3402_v54, %v3489_v49 }
  0xd0   : > { %v521_v41 = vsel %vm517_vm1, %v3356_v4, %v510_v55  ;;  %2982 = vmatpush1.bf16.msra.mxu1 %v2981_v31  ;;  %v1219_v42 = vld [vmem:[#allocation2 + $0x88] sm:$0x3]  ;;  %v680_v4 = vrot.slane %v3351_v63, %v3496_v60 }
  0xd1   : > { %497 = vst [vmem:[#allocation2 + $0x20] sm:$0xc] %v481_v32  ;;  %v482_v45 = vrot.slane %v466_v36, 6  ;;  %v583_v46 = vmul.f32 %v558_v25, %v521_v41  ;;  %v3519_v47 = vpop.permute.xlu0 %511  ;;  %2941 = vmatprep.subr.msk.mxu0 %vm1236_vm8, %v1219_v42 }
  0xd2   : > { %v522_v51 = vsel %vm517_vm1, %v510_v55, %v3519_v47  ;;  %v1220_v10 = vld [vmem:[#allocation2 + $0x90] sm:$0x3] }
  0xd3   : > { %498 = vst [vmem:[#allocation2 + $0x28] sm:$0xc] %v482_v45  ;;  %v599_v52 = vrot.slane %v583_v46, 4  ;;  %v584_v53 = vmul.f32 %v562_v38, %v522_v51  ;;  %v628_v56 = vpop.permute.xlu1 %627  ;;  %v1046_v38 = vrot.slane %v3422_v16, %v3489_v49 }
  0xd4   : > { %v639_v58 = vsel %vm635_vm2, %v3382_v39, %v628_v56  ;;  %v1221_v61 = vld [vmem:[#allocation2 + $0x98] sm:$0x3] }
  0xd5   : > { %615 = vst [vmem:[#allocation2 + $0x20] sm:$0x30] %v599_v52  ;;  %v600_v1 = vrot.slane %v584_v53, 4  ;;  %v701_v2 = vmul.f32 %v676_v50, %v639_v58  ;;  %v3535_v9 = vpop.permute.xlu0 %629  ;;  %2944 = vmatprep.subr.msk.mxu1 %vm1236_vm8, %v1221_v61  ;;  %v1050_v50 = vrot.slane %v3422_v16, %v3496_v60 }
  0xd6   : > { %v640_v39 = vsel %vm635_vm2, %v628_v56, %v3535_v9  ;;  %2945 = vmatpush1.msk.msra.mxu1 %vm1236_vm8, %v1220_v10  ;;  %v1148_v56 = vrot.slane %v3475_v35, %v3283_v21 }
  0xd7   : > { %616 = vst [vmem:[#allocation2 + $0x28] sm:$0x30] %v600_v1  ;;  %v717_v12 = vrot.slane %v701_v2, 2  ;;  %v702_v43 = vmul.f32 %v680_v4, %v640_v39  ;;  %v764_v13 = vpop.permute.xlu1 %763  ;;  %2946 = vmatmul.mubr.msk.f32.vlgmr.msra.gmra.mrb[0].mxu1 %vm1232_vm9, %v3533_v62  ;;  %v346_v2 = vrot.slane %v3451_v57, %v3489_v49 }
  0xd8   : > { %v774_v15 = vsel %vm769_vm3, %v3405_v59, %v764_v13  ;;  %1538 = vmatprep.mubr.f32.mxu1 %v3096_v18  ;;  %v932_v59 = vrot.slane %v3402_v54, %v3496_v60 }
  0xd9   : > { %733 = vst [vmem:[#allocation2 + $0x20] sm:$0xc0] %v717_v12  ;;  %v718_v0 = vrot.slane %v702_v43, 2  ;;  %v835_v17 = vmul.f32 %v810_v11, %v774_v15  ;;  %v3550_v19 = vpop.permute.xlu0 %765  ;;  %v350_v12 = vrot.slane %v3451_v57, %v3496_v60  ;;  %v1164_v15 = vrot.slane %v3475_v35, %v3489_v49 }
  0xda   : > { %v775_v25 = vsel %vm769_vm3, %v764_v13, %v3550_v19 }
  0xdb   : > { %734 = vst [vmem:[#allocation2 + $0x28] sm:$0xc0] %v718_v0  ;;  %v851_v26 = vrot.slane %v835_v17, 6  ;;  %v836_v29 = vmul.f32 %v814_v14, %v775_v25  ;;  %v882_v30 = vpop.permute.xlu1 %881  ;;  %v3596_v25 = vsub.s32 7, %v3143_v3 }
  0xdc   : > { %v892_v31 = vsel %vm887_vm4, %v3425_v23, %v882_v30 }
  0xdd   : > { %867 = vst [vmem:[#allocation2 + $0x60] sm:$0xc] %v851_v26  ;;  %v852_v32 = vrot.slane %v836_v29, 6  ;;  %v953_v36 = vmul.f32 %v928_v20, %v892_v31  ;;  %v3560_v55 = vpop.permute.xlu0 %883 }
  0xde   : > { %v893_v41 = vsel %vm887_vm4, %v882_v30, %v3560_v55 }
  0xdf   : > { %868 = vst [vmem:[#allocation2 + $0x68] sm:$0xc] %v852_v32  ;;  %v969_v42 = vrot.slane %v953_v36, 4  ;;  %v954_v45 = vmul.f32 %v932_v59, %v893_v41  ;;  %v1000_v46 = vpop.permute.xlu1 %999 }
  0xe0   : > { %v1010_v23 = vsel %vm1005_vm5, %v3443_v48, %v1000_v46 }
  0xe1   : > { %985 = vst [vmem:[#allocation2 + $0x60] sm:$0x30] %v969_v42  ;;  %v970_v51 = vrot.slane %v954_v45, 4  ;;  %v1071_v52 = vmul.f32 %v1046_v38, %v1010_v23  ;;  %v3570_v53 = vpop.permute.xlu0 %1001 }
  0xe2   : > { %v1011_v4 = vsel %vm1005_vm5, %v1000_v46, %v3570_v53 }
  0xe3   : > { %986 = vst [vmem:[#allocation2 + $0x68] sm:$0x30] %v970_v51  ;;  %v1087_v58 = vrot.slane %v1071_v52, 2  ;;  %v1072_v61 = vmul.f32 %v1050_v50, %v1011_v4  ;;  %v1108_v1 = vpop.permute.xlu1 %1107 }
  0xe4   : > { %v1124_v48 = vsel %vm1123_vm7, %v1108_v1, %v3482_v44  ;;  %v3589_v44 = vsub.s32 6, %v3143_v3  ;;  %v452_v3 = vrot.slane %v3287_v22, %v3596_v25 }
  0xe5   : > { %1103 = vst [vmem:[#allocation2 + $0x60] sm:$0xc0] %v1087_v58  ;;  %v1088_v10 = vrot.slane %v1072_v61, 2  ;;  %v1185_v11 = vmul.f32 %v1148_v56, %v1124_v48  ;;  %v299_v39 = vpop.permute.xlu0 %298 }
  0xe6   : > { %v310_v43 = vsel %vm306_vm6, %v3478_v40, %v299_v39  ;;  %v1168_v40 = vrot.slane %v3475_v35, %v3496_v60  ;;  %v448_v30 = vrot.slane %v3287_v22, %v3589_v44  ;;  %v566_v42 = vrot.slane %v3301_v27, %v3589_v44 }
  0xe7   : > { %1104 = vst [vmem:[#allocation2 + $0x68] sm:$0xc0] %v1088_v10  ;;  %1193 = vst [vmem:[#allocation2 + $0x80] sm:$0x3] %v1185_v11  ;;  %v371_v13 = vmul.f32 %v346_v2, %v310_v43  ;;  %v3584_v14 = vpop.permute.xlu1 %300  ;;  %v684_v1 = vrot.slane %v3351_v63, %v3589_v44 }
  0xe8   : > { %v311_v0 = vsel %vm306_vm6, %v299_v39, %v3584_v14 }
  0xe9   : > { %379 = vst [vmem:[#allocation2 + $0x20] sm:$0x3] %v371_v13  ;;  %v372_v17 = vmul.f32 %v350_v12, %v311_v0  ;;  %v1118_v20 = vpop.permute.xlu0 %1117 }
  0xea   : > { %v1128_v26 = vsel %vm1123_vm7, %v3499_v8, %v1118_v20 }
  0xeb   : > { %380 = vst [vmem:[#allocation2 + $0x28] sm:$0x3] %v372_v17  ;;  %v1189_v29 = vmul.f32 %v1164_v15, %v1128_v26  ;;  %v3602_v59 = vpop.permute.xlu1 %1119 }
  0xec   : > { %v1129_v31 = vsel %vm1123_vm7, %v1118_v20, %v3602_v59  ;;  %v1214_v10 = vld [vmem:[#allocation2 + $0x60] sm:$0xff]  ;;  %v818_v20 = vrot.slane %v3379_v34, %v3589_v44 }
  0xed   : > { %1197 = vst [vmem:[#allocation2 + $0xa0] sm:$0x3] %v1189_v29  ;;  %v396_v32 = vpop.permute.xlu0 %395  ;;  %v1190_v36 = vmul.f32 %v1168_v40, %v1129_v31  ;;  %v822_v40 = vrot.slane %v3379_v34, %v3596_v25 }
  0xee   : > { %v405_v38 = vsel %vm399_vm0, %v3509_v24, %v396_v32  ;;  %v1218_v8 = vld [vmem:[#allocation2 + $0x80] sm:$0x3]  ;;  %v570_v24 = vrot.slane %v3301_v27, %v3596_v25  ;;  %v1215_v4 = vld [vmem:[#allocation2 + $0x68] sm:$0xff] }
  0xef   : > { %v467_v41 = vmul.f32 %v448_v30, %v405_v38  ;;  %1198 = vst [vmem:[#allocation2 + $0xa8] sm:$0x3] %v1190_v36  ;;  %2942 = vmatpush1.msk.msra.mxu0 %vm1236_vm8, %v1218_v8  ;;  %v398_v45 = vpop.permute.xlu1 %397  ;;  %v940_v36 = vrot.slane %v3402_v54, %v3596_v25  ;;  %v1054_v38 = vrot.slane %v3422_v16, %v3589_v44 }
  0xf0   : > { %2943 = vmatmul.mubr.msk.f32.vlgmr.msra.gmra.mrb[0].mxu0 %vm1232_vm9, %v3533_v62  ;;  %v406_v46 = vsel %vm399_vm0, %v396_v32, %v398_v45  ;;  %v1206_v51 = vld [vmem:[#allocation2 + $0x20] sm:$0xff]  ;;  %v936_v32 = vrot.slane %v3402_v54, %v3589_v44  ;;  %v1058_v54 = vrot.slane %v3422_v16, %v3596_v25 }
  0xf1   : > { %v483_v50 = vrot.slane %v467_v41, 6  ;;  %v514_v23 = vpop.permute.xlu0 %513  ;;  %v468_v22 = vmul.f32 %v452_v3, %v406_v46  ;;  %1467 = vmatprep.mubr.f32.mxu0 %v3096_v18  ;;  %v2985_v27 = vpack.c.bf16 %v1214_v10, %v1206_v51  ;;  %v1172_v10 = vrot.slane %v3475_v35, %v3589_v44 }
  0xf2   : > { %v523_v52 = vsel %vm517_vm1, %v3519_v47, %v514_v23  ;;  %v1207_v56 = vld [vmem:[#allocation2 + $0x28] sm:$0xff]  ;;  %v688_v47 = vrot.slane %v3351_v63, %v3596_v25 }
  0xf3   : > { %499 = vst [vmem:[#allocation2 + $0x30] sm:$0xc] %v483_v50  ;;  %v585_v58 = vmul.f32 %v566_v42, %v523_v52  ;;  %v484_v61 = vrot.slane %v468_v22, 6  ;;  %v2983_v2 = vpack.c.bf16 %v1215_v4, %v1207_v56  ;;  %v516_v48 = vpop.permute.xlu1 %515  ;;  %v354_v50 = vrot.slane %v3451_v57, %v3589_v44 }
  0xf4   : > { %v524_v11 = vsel %vm517_vm1, %v514_v23, %v516_v48  ;;  %v1222_v29 = vld [vmem:[#allocation2 + $0xa0] sm:$0x3] }
  0xf5   : > { %v601_v39 = vrot.slane %v585_v58, 4  ;;  %500 = vst [vmem:[#allocation2 + $0x38] sm:$0xc] %v484_v61  ;;  %v632_v12 = vpop.permute.xlu0 %631  ;;  %2984 = vmatprep.subr.bf16.mxu0 %v2983_v2  ;;  %v586_v43 = vmul.f32 %v570_v24, %v524_v11 }
  0xf6   : > { %v641_v13 = vsel %vm635_vm2, %v3535_v9, %v632_v12  ;;  %2986 = vmatpush1.bf16.msra.mxu0 %v2985_v27  ;;  %v1223_v15 = vld [vmem:[#allocation2 + $0xa8] sm:$0x3] }
  0xf7   : > { %617 = vst [vmem:[#allocation2 + $0x30] sm:$0x30] %v601_v39  ;;  %v703_v0 = vmul.f32 %v684_v1, %v641_v13  ;;  %v602_v17 = vrot.slane %v586_v43, 4  ;;  %2947 = vmatprep.subr.msk.mxu0 %vm1236_vm8, %v1223_v15  ;;  %v634_v26 = vpop.permute.xlu1 %633 }
  0xf8   : > { %v642_v63 = vsel %vm635_vm2, %v632_v12, %v634_v26 }
  0xf9   : > { %v719_v30 = vrot.slane %v703_v0, 2  ;;  %618 = vst [vmem:[#allocation2 + $0x38] sm:$0x30] %v602_v17  ;;  %v768_v9 = vpop.permute.xlu0 %767  ;;  %v704_v31 = vmul.f32 %v688_v47, %v642_v63 }
  0xfa   : > { %v776_v3 = vsel %vm769_vm3, %v3550_v19, %v768_v9  ;;  %v785_v34 = vsel %vm769_vm3, %v768_v9, 0.0  ;;  %2948 = vmatpush1.msk.msra.mxu0 %vm1236_vm8, %v1222_v29 }
  0xfb   : > { %735 = vst [vmem:[#allocation2 + $0x30] sm:$0xc0] %v719_v30  ;;  %v837_v8 = vmul.f32 %v818_v20, %v776_v3  ;;  %v838_v41 = vmul.f32 %v822_v40, %v785_v34  ;;  %v720_v42 = vrot.slane %v704_v31, 2  ;;  %2949 = vmatmul.mubr.msk.f32.vlgmr.msra.gmra.mrb[2].mxu0 %vm1232_vm9, %v3533_v62  ;;  %v886_v45 = vpop.permute.xlu1 %885 }
  0xfc   : > { %v894_v19 = vsel %vm887_vm4, %v3560_v55, %v886_v45  ;;  %v903_v46 = vsel %vm887_vm4, %v886_v45, 0.0  ;;  %2452 = vmatprep.mubr.f32.mxu0 %v3096_v18  ;;  %v358_v55 = vrot.slane %v3451_v57, %v3596_v25  ;;  %v1176_v57 = vrot.slane %v3475_v35, %v3596_v25 }
  0xfd   : > { %v853_v23 = vrot.slane %v837_v8, 6  ;;  %v854_v22 = vrot.slane %v838_v41, 6  ;;  %736 = vst [vmem:[#allocation2 + $0x38] sm:$0xc0] %v720_v42  ;;  %v1004_v24 = vpop.permute.xlu0 %1003  ;;  %v955_v51 = vmul.f32 %v936_v32, %v894_v19  ;;  %v956_v52 = vmul.f32 %v940_v36, %v903_v46 }
  0xfe   : > { %v1012_v16 = vsel %vm1005_vm5, %v3570_v53, %v1004_v24  ;;  %v1021_v56 = vsel %vm1005_vm5, %v1004_v24, 0.0 }
  0xff   : > { %869 = vst [vmem:[#allocation2 + $0x70] sm:$0xc] %v853_v23  ;;  %870 = vst [vmem:[#allocation2 + $0x78] sm:$0xc] %v854_v22  ;;  %v1073_v4 = vmul.f32 %v1054_v38, %v1012_v16  ;;  %v1074_v58 = vmul.f32 %v1058_v54, %v1021_v56  ;;  %v971_v61 = vrot.slane %v955_v51, 4  ;;  %v972_v1 = vrot.slane %v956_v52, 4  ;;  %v303_v2 = vpop.permute.xlu1 %302 }
 0x100   : > { %v312_v48 = vsel %vm306_vm6, %v3584_v14, %v303_v2 }
 0x101   : > { %v1089_v11 = vrot.slane %v1073_v4, 2  ;;  %v1090_v53 = vrot.slane %v1074_v58, 2  ;;  %987 = vst [vmem:[#allocation2 + $0x70] sm:$0x30] %v971_v61  ;;  %988 = vst [vmem:[#allocation2 + $0x78] sm:$0x30] %v972_v1  ;;  %v305_v27 = vpop.permute.xlu0 %304  ;;  %v373_v39 = vmul.f32 %v354_v50, %v312_v48 }
 0x102   : > { %v313_v12 = vsel %vm306_vm6, %v303_v2, %v305_v27  ;;  %v2953_v2 = vld [vmem:[%s4261_s1 + $0x1] ss:$8 sm:$0xf] }
 0x103   : > { %1105 = vst [vmem:[#allocation2 + $0x70] sm:$0xc0] %v1089_v11  ;;  %1106 = vst [vmem:[#allocation2 + $0x78] sm:$0xc0] %v1090_v53  ;;  %v374_v43 = vmul.f32 %v358_v55, %v313_v12  ;;  %v1122_v47 = vpop.permute.xlu1 %1121  ;;  %v2378_v53 = vld [vmem:[%s4265_s5] sm:$0x3] }
 0x104   : > { %381 = vst [vmem:[#allocation2 + $0x30] sm:$0x3] %v373_v39  ;;  %v1130_v14 = vsel %vm1123_vm7, %v3602_v59, %v1122_v47  ;;  %v1139_v13 = vsel %vm1123_vm7, %v1122_v47, 0.0  ;;  %v2954_v48 = vld [vmem:[%s4261_s1 + $0x1] ss:$8 sm:$0xf0] }
 0x105   : > { %382 = vst [vmem:[#allocation2 + $0x38] sm:$0x3] %v374_v43  ;;  %v1191_v15 = vmul.f32 %v1172_v10, %v1130_v14  ;;  %v1192_v0 = vmul.f32 %v1176_v57, %v1139_v13  ;;  %v1593_v10 = vld [vmem:[%s4261_s1] ss:$8 sm:$0xf]  ;;  %v3843_v57 = vor.u32 %v2954_v48, %v2953_v2 }
 0x106   : > { %v1594_v11 = vld [vmem:[%s4261_s1] ss:$8 sm:$0xf0] }
 0x107   : > { %1199 = vst [vmem:[#allocation2 + $0xb0] sm:$0x3] %v1191_v15  ;;  %1200 = vst [vmem:[#allocation2 + $0xb8] sm:$0x3] %v1192_v0  ;;  %v3845_v12 = vor.u32 %v1594_v11, %v1593_v10  ;;  %v1692_v14 = vrot.slane %v3843_v57, %v3283_v21 }
 0x108   : > { %v2957_v15 = vld [vmem:[%s4261_s1 + $0x3] ss:$8 sm:$0xf] }
 0x109   : > { %v1600_v13 = vrot.slane %v3845_v12, %v3283_v21 }
 0x10a   : > { %v1217_v17 = vld [vmem:[#allocation2 + $0x78] sm:$0xff]  ;;  %v1216_v35 = vld [vmem:[#allocation2 + $0x70] sm:$0xff] }
 0x10b   : > { %v1208_v20 = vld [vmem:[#allocation2 + $0x30] sm:$0xff] }
 0x10c   : > { %v1209_v40 = vld [vmem:[#allocation2 + $0x38] sm:$0xff]  ;;  %v2989_v26 = vpack.c.bf16 %v1216_v35, %v1208_v20  ;;  %v1604_v35 = vrot.slane %v3845_v12, %v3304_v28 }
 0x10d   : > { %v2987_v29 = vpack.c.bf16 %v1217_v17, %v1209_v40  ;;  %v2958_v20 = vld [vmem:[%s4261_s1 + $0x3] ss:$8 sm:$0xf0]  ;;  %v1696_v40 = vrot.slane %v3843_v57, %v3304_v28 }
 0x10e   : > { %v1225_v63 = vld [vmem:[#allocation2 + $0xb8] sm:$0x3]  ;;  %v1224_v30 = vld [vmem:[#allocation2 + $0xb0] sm:$0x3] }
 0x10f   : > { %2988 = vmatprep.subr.bf16.mxu1 %v2987_v29  ;;  %v2955_v29 = vld [vmem:[%s4261_s1 + $0x2] ss:$8 sm:$0xf] }
 0x110   : > { %2990 = vmatpush1.bf16.msra.mxu1 %v2989_v26 }
 0x111   : > { %2950 = vmatprep.subr.msk.mxu1 %vm1236_vm8, %v1225_v63  ;;  %v2956_v63 = vld [vmem:[%s4261_s1 + $0x2] ss:$8 sm:$0xf0] }
 0x112   : > { %v3674_v31 = vpop.permute.xlu0 %1229 }
 0x114   : > { %2951 = vmatpush1.msk.msra.mxu1 %vm1236_vm8, %v1224_v30 }
 0x115   : > { %2952 = vmatmul.mubr.msk.f32.vlgmr.msra.gmra.mrb[2].mxu1 %vm1232_vm9, %v3533_v62 }
 0x116   : > { %2523 = vmatprep.mubr.f32.mxu1 %v3096_v18 }
 0x1aa   : > { %v1398_v59 = vpop.f32.mrb[0].mxu1 }
 0x1ab   : > { %v1400_v9 = vpop.f32.mrb[1].mxu1  ;;  %v1399_v42 = vadd.f32 %v1398_v59, %v3674_v31 }
 0x1ac   : > { %v1401_v46 = vadd.f32 %v1400_v9, %v3674_v31 }
 0x1ad   : > { %v3707_v54 = vmax.f32 %v1399_v42, 0.0 }
 0x1ae   : > { %v3730_v50 = vmax.f32 %v1401_v46, 0.0 }
 0x1c3   : > { %v1327_v32 = vpop.f32.mrb[0].mxu0 }
 0x1c4   : > { %v1328_v36 = vadd.f32 %v1327_v32, %v3674_v31  ;;  %v1329_v3 = vpop.f32.mrb[1].mxu0  ;;  %v3881_v32 = vor.u32 %v2958_v20, %v2957_v15 }
 0x1c5   : > { %v1330_v62 = vadd.f32 %v1329_v3, %v3674_v31 }
 0x1c6   : > { %v3677_v34 = vmax.f32 %v1328_v36, 0.0  ;;  %v1876_v46 = vrot.slane %v3881_v32, %v3283_v21 }
 0x1c7   : > { %v3692_v41 = vmax.f32 %v1330_v62, 0.0 }
 0x1c8   : > { %1653 = vrot.lane.b32.xlu0 %v3677_v34, %s3088_s27  ;;  %1561 = vrot.lane.b32.xlu1 %v3677_v34, %s3094_s9 }
 0x1cc   : > { %1745 = vrot.lane.b32.xlu0 %v3677_v34, %s3089_s28  ;;  %2029 = vrot.lane.b32.xlu1 %v3677_v34, %s3092_s7 }
 0x1ce   : > { %v1469_v38 = vpop.f32.mrb[2].mxu0 }
 0x1cf   : > { %v1471_v8 = vpop.f32.mrb[3].mxu0  ;;  %v1470_v23 = vadd.f32 %v1469_v38, %v3674_v31  ;;  %v3885_v38 = vor.u32 %v2956_v63, %v2955_v29  ;;  %v2963_v29 = vld [vmem:[%s4261_s1 + $0x7] ss:$8 sm:$0xf] }
 0x1d0   : > { %1837 = vrot.lane.b32.xlu0 %v3677_v34, %s3090_s29  ;;  %2213 = vrot.lane.b32.xlu1 %v3677_v34, %s3095_s10  ;;  %v1472_v24 = vadd.f32 %v1471_v8, %v3674_v31  ;;  %v2964_v63 = vld [vmem:[%s4261_s1 + $0x7] ss:$8 sm:$0xf0] }
 0x1d1   : > { %v3745_v22 = vmax.f32 %v1470_v23, 0.0 }
 0x1d2   : > { %v3768_v51 = vmax.f32 %v1472_v24, 0.0  ;;  %v1788_v24 = vrot.slane %v3885_v38, %v3304_v28 }
 0x1d4   : > { %1937 = vrot.lane.b32.xlu0 %v3677_v34, %s3091_s30  ;;  %1563 = vrot.lane.b32.xlu1 %v3692_v41, %s3094_s9 }
 0x1d8   : > { %2121 = vrot.lane.b32.xlu0 %v3677_v34, %s3093_s8  ;;  %1655 = vrot.lane.b32.xlu1 %v3692_v41, %s3088_s27 }
 0x1dc   : > { %1939 = vrot.lane.b32.xlu0 %v3692_v41, %s3091_s30  ;;  %1747 = vrot.lane.b32.xlu1 %v3692_v41, %s3089_s28 }
 0x1e0   : > { %1839 = vrot.lane.b32.xlu1 %v3692_v41, %s3090_s29  ;;  %1565 = vrot.lane.b32.xlu0 %v3707_v54, %s3094_s9 }
 0x1e4   : > { %2031 = vrot.lane.b32.xlu1 %v3692_v41, %s3092_s7  ;;  %1657 = vrot.lane.b32.xlu0 %v3707_v54, %s3088_s27 }
 0x1e8   : > { %2123 = vrot.lane.b32.xlu1 %v3692_v41, %s3093_s8  ;;  %v1540_v45 = vpop.f32.mrb[2].mxu1  ;;  %1749 = vrot.lane.b32.xlu0 %v3707_v54, %s3089_s28 }
 0x1e9   : > { %v1542_v19 = vpop.f32.mrb[3].mxu1  ;;  %v1541_v52 = vadd.f32 %v1540_v45, %v3674_v31 }
 0x1ea   : > { %v1543_v56 = vadd.f32 %v1542_v19, %v3674_v31 }
 0x1eb   : > { %v3783_v16 = vmax.f32 %v1541_v52, 0.0  ;;  %v1880_v52 = vrot.slane %v3881_v32, %v3304_v28 }
 0x1ec   : > { %2215 = vrot.lane.b32.xlu1 %v3692_v41, %s3095_s10  ;;  %1841 = vrot.lane.b32.xlu0 %v3707_v54, %s3090_s29  ;;  %v3798_v55 = vmax.f32 %v1543_v56, 0.0  ;;  %v1784_v56 = vrot.slane %v3885_v38, %v3283_v21 }
 0x1f0   : > { %1941 = vrot.lane.b32.xlu1 %v3707_v54, %s3091_s30  ;;  %2033 = vrot.lane.b32.xlu0 %v3707_v54, %s3092_s7 }
 0x1f4   : > { %1567 = vrot.lane.b32.xlu1 %v3730_v50, %s3094_s9  ;;  %2125 = vrot.lane.b32.xlu0 %v3707_v54, %s3093_s8 }
 0x1f8   : > { %1659 = vrot.lane.b32.xlu1 %v3730_v50, %s3088_s27  ;;  %2217 = vrot.lane.b32.xlu0 %v3707_v54, %s3095_s10 }
 0x1fc   : > { %1751 = vrot.lane.b32.xlu1 %v3730_v50, %s3089_s28  ;;  %1943 = vrot.lane.b32.xlu0 %v3730_v50, %s3091_s30 }
 0x200   : > { %1843 = vrot.lane.b32.xlu1 %v3730_v50, %s3090_s29  ;;  %2037 = vrot.lane.b32.xlu0 %v3745_v22, %s3092_s7 }
 0x204   : > { %2035 = vrot.lane.b32.xlu1 %v3730_v50, %s3092_s7  ;;  %2129 = vrot.lane.b32.xlu0 %v3745_v22, %s3093_s8 }
 0x208   : > { %2127 = vrot.lane.b32.xlu1 %v3730_v50, %s3093_s8  ;;  %2221 = vrot.lane.b32.xlu0 %v3745_v22, %s3095_s10 }
 0x20c   : > { %2219 = vrot.lane.b32.xlu1 %v3730_v50, %s3095_s10  ;;  %1753 = vrot.lane.b32.xlu0 %v3745_v22, %s3089_s28 }
 0x210   : > { %1945 = vrot.lane.b32.xlu1 %v3745_v22, %s3091_s30  ;;  %1845 = vrot.lane.b32.xlu0 %v3745_v22, %s3090_s29 }
 0x214   : > { %1569 = vrot.lane.b32.xlu1 %v3745_v22, %s3094_s9  ;;  %1571 = vrot.lane.b32.xlu0 %v3768_v51, %s3094_s9 }
 0x218   : > { %1661 = vrot.lane.b32.xlu1 %v3745_v22, %s3088_s27  ;;  %1663 = vrot.lane.b32.xlu0 %v3768_v51, %s3088_s27 }
 0x21c   : > { %1755 = vrot.lane.b32.xlu1 %v3768_v51, %s3089_s28  ;;  %1947 = vrot.lane.b32.xlu0 %v3768_v51, %s3091_s30 }
 0x220   : > { %1847 = vrot.lane.b32.xlu1 %v3768_v51, %s3090_s29  ;;  %1757 = vrot.lane.b32.xlu0 %v3783_v16, %s3089_s28 }
 0x224   : > { %2039 = vrot.lane.b32.xlu1 %v3768_v51, %s3092_s7  ;;  %1849 = vrot.lane.b32.xlu0 %v3783_v16, %s3090_s29 }
 0x228   : > { %1573 = vrot.lane.b32.xlu1 %v3783_v16, %s3094_s9  ;;  %2041 = vrot.lane.b32.xlu0 %v3783_v16, %s3092_s7 }
 0x22c   : > { %1665 = vrot.lane.b32.xlu1 %v3783_v16, %s3088_s27  ;;  %1575 = vrot.lane.b32.xlu0 %v3798_v55, %s3094_s9 }
 0x230   : > { %1949 = vrot.lane.b32.xlu1 %v3783_v16, %s3091_s30  ;;  %1667 = vrot.lane.b32.xlu0 %v3798_v55, %s3088_s27 }
 0x234   : > { %1759 = vrot.lane.b32.xlu1 %v3798_v55, %s3089_s28  ;;  %2131 = vrot.lane.b32.xlu0 %v3768_v51, %s3093_s8 }
 0x238   : > { %1851 = vrot.lane.b32.xlu1 %v3798_v55, %s3090_s29  ;;  %1951 = vrot.lane.b32.xlu0 %v3798_v55, %s3091_s30 }
 0x23a   : > { %v1654_v4 = vpop.permute.xlu0 %1653  ;;  %v1562_v58 = vpop.permute.xlu1 %1561 }
 0x23b   : > { %v1684_v0 = vsel %vm399_vm0, 0.0, %v1654_v4  ;;  %v1592_v17 = vsel %vm306_vm6, 0.0, %v1562_v58 }
 0x23c   : > { %2133 = vrot.lane.b32.xlu1 %v3783_v16, %s3093_s8  ;;  %2135 = vrot.lane.b32.xlu0 %v3798_v55, %s3093_s8  ;;  %v1729_v9 = vmul.f32 %v1692_v14, %v1684_v0  ;;  %v1637_v31 = vmul.f32 %v1600_v13, %v1592_v17 }
 0x23e   : > { %v1746_v61 = vpop.permute.xlu0 %1745  ;;  %v3820_v1 = vpop.permute.xlu1 %2029  ;;  %v2993_v19 = vpack.c.bf16 %v1729_v9, %v1637_v31  ;;  %v2961_v9 = vld [vmem:[%s4261_s1 + $0x6] ss:$8 sm:$0xf] }
 0x23f   : > { %v2962_v31 = vld [vmem:[%s4261_s1 + $0x6] ss:$8 sm:$0xf0] }
 0x240   : > { %2043 = vrot.lane.b32.xlu1 %v3798_v55, %s3092_s7  ;;  %2225 = vrot.lane.b32.xlu0 %v3783_v16, %s3095_s10 }
 0x242   : > { %v1838_v27 = vpop.permute.xlu0 %1837  ;;  %v3841_v39 = vpop.permute.xlu1 %2213 }
 0x243   : > { %v1868_v23 = vsel %vm635_vm2, 0.0, %v1838_v27 }
 0x244   : > { %2223 = vrot.lane.b32.xlu1 %v3768_v51, %s3095_s10  ;;  %2381 = vperm.xlu0 %3074, %v2378_v53   ;;  %v1913_v10 = vmul.f32 %v1876_v46, %v1868_v23  ;;  %v3937_v23 = vor.u32 %v2962_v31, %v2961_v9 }
 0x246   : > { %v3849_v43 = vpop.permute.xlu0 %1937  ;;  %v3851_v47 = vpop.permute.xlu1 %1563 }
 0x247   : > { %v1577_v26 = vsel %vm306_vm6, %v1562_v58, %v3851_v47  ;;  %v1776_v58 = vsel %vm517_vm1, 0.0, %v1746_v61 }
 0x248   : > { %2227 = vrot.lane.b32.xlu1 %v3798_v55, %s3095_s10  ;;  %v1638_v3 = vmul.f32 %v1604_v35, %v1577_v26  ;;  %v1821_v13 = vmul.f32 %v1784_v56, %v1776_v58  ;;  %v2959_v35 = vld [vmem:[%s4261_s1 + $0x5] ss:$8 sm:$0xf]  ;;  %v2965_v58 = vld [vmem:[%s4261_s1 + $0x40] ss:$8 sm:$0xf] }
 0x24a   : > { %v2122_v30 = vpop.permute.xlu0 %2121  ;;  %v3879_v59 = vpop.permute.xlu1 %1655  ;;  %v2997_v20 = vpack.c.bf16 %v1913_v10, %v1821_v13 }
 0x24b   : > { %v1669_v36 = vsel %vm399_vm0, %v1654_v4, %v3879_v59 }
 0x24c   : > { %v1730_v62 = vmul.f32 %v1696_v40, %v1669_v36 }
 0x24e   : > { %v1940_v8 = vpop.permute.xlu0 %1939  ;;  %v3887_v42 = vpop.permute.xlu1 %1747  ;;  %v2991_v45 = vpack.c.bf16 %v1730_v62, %v1638_v3 }
 0x24f   : > { %v1761_v4 = vsel %vm517_vm1, %v1746_v61, %v3887_v42  ;;  %v2960_v61 = vld [vmem:[%s4261_s1 + $0x5] ss:$8 sm:$0xf0] }
 0x250   : > { %2992 = vmatprep.subr.bf16.mxu0 %v2991_v45  ;;  %v1822_v53 = vmul.f32 %v1788_v24, %v1761_v4  ;;  %v3931_v45 = vor.u32 %v2964_v63, %v2963_v29 }
 0x251   : > { %2994 = vmatpush1.bf16.msra.mxu0 %v2993_v19  ;;  %v1953_v19 = vsel %vm769_vm3, %v3849_v43, %v1940_v8  ;;  %v2966_v43 = vld [vmem:[%s4261_s1 + $0x40] ss:$8 sm:$0xf0] }
 0x252   : > { %v3901_v2 = vpop.permute.xlu1 %1839  ;;  %v1566_v48 = vpop.permute.xlu0 %1565  ;;  %v2160_v4 = vrot.slane %v3931_v45, %v3283_v21  ;;  %v2164_v13 = vrot.slane %v3931_v45, %v3304_v28 }
 0x253   : > { %v1853_v11 = vsel %vm635_vm2, %v1838_v27, %v3901_v2  ;;  %v3913_v27 = vor.u32 %v2960_v61, %v2959_v35  ;;  %v1612_v61 = vrot.slane %v3845_v12, %v3319_v37 }
 0x254   : > { %v1914_v14 = vmul.f32 %v1880_v52, %v1853_v11 }
 0x255   : > { %v1976_v62 = vrot.slane %v3913_v27, %v3283_v21  ;;  %v1980_v46 = vrot.slane %v3913_v27, %v3304_v28 }
 0x256   : > { %v2032_v15 = vpop.permute.xlu1 %2031  ;;  %v1658_v0 = vpop.permute.xlu0 %1657  ;;  %v2995_v17 = vpack.c.bf16 %v1914_v14, %v1822_v53  ;;  %v2072_v14 = vrot.slane %v3937_v23, %v3304_v28 }
 0x257   : > { %v2013_v56 = vmul.f32 %v1976_v62, %v1953_v19 }
 0x258   : > { %2996 = vmatprep.subr.bf16.mxu0 %v2995_v17  ;;  %v2068_v17 = vrot.slane %v3937_v23, %v3283_v21 }
 0x259   : > { %2998 = vmatpush1.bf16.msra.mxu0 %v2997_v20  ;;  %v1700_v20 = vrot.slane %v3843_v57, %v3312_v33  ;;  %v3001_v31 = vpack.c.bf16 %v2013_v56, %v3677_v34 }
 0x25a   : > { %v2124_v40 = vpop.permute.xlu1 %2123  ;;  %v3911_v26 = vpop.permute.xlu0 %1749 }
 0x25b   : > { %v2137_v11 = vsel %vm1005_vm5, %v2122_v30, %v2124_v40  ;;  %v3966_v30 = vor.u32 %v2966_v43, %v2965_v58 }
 0x25c   : > { %v2197_v62 = vmul.f32 %v2160_v4, %v2137_v11 }
 0x25d   : > { %v2256_v43 = vrot.slane %v3966_v30, %v3304_v28 }
 0x25e   : > { %v2216_v36 = vpop.permute.xlu1 %2215  ;;  %v3927_v3 = vpop.permute.xlu0 %1841 }
 0x262   : > { %v3939_v24 = vpop.permute.xlu1 %1941  ;;  %v3941_v52 = vpop.permute.xlu0 %2033 }
 0x263   : > { %v1954_v10 = vsel %vm769_vm3, %v1940_v8, %v3939_v24  ;;  %v2046_v35 = vsel %vm887_vm4, %v2032_v15, %v3941_v52  ;;  %v2045_v8 = vsel %vm887_vm4, %v3820_v1, %v2032_v15  ;;  %v1704_v1 = vrot.slane %v3843_v57, %v3319_v37 }
 0x264   : > { %v2014_v53 = vmul.f32 %v1980_v46, %v1954_v10  ;;  %v1670_v15 = vsel %vm399_vm0, %v3879_v59, %v1658_v0  ;;  %v2106_v46 = vmul.f32 %v2072_v14, %v2046_v35  ;;  %v2105_v34 = vmul.f32 %v2068_v17, %v2045_v8 }
 0x265   : > { %v2252_v59 = vrot.slane %v3966_v30, %v3283_v21  ;;  %v1731_v28 = vmul.f32 %v1700_v20, %v1670_v15  ;;  %v2229_v17 = vsel %vm1123_vm7, %v3841_v39, %v2216_v36  ;;  %v4009_v39 = vld [vmem:[%s4264_s4] sm:$0x3] }
 0x266   : > { %v3970_v29 = vpop.permute.xlu1 %1567  ;;  %v3972_v63 = vpop.permute.xlu0 %2125  ;;  %v2999_v9 = vpack.c.bf16 %v2014_v53, %v3692_v41  ;;  %v1608_v41 = vrot.slane %v3845_v12, %v3312_v33  ;;  %v3005_v53 = vpack.c.bf16 %v2197_v62, %v2105_v34 }
 0x267   : > { %v2138_v19 = vsel %vm1005_vm5, %v2124_v40, %v3972_v63  ;;  %v1579_v56 = vsel %vm306_vm6, %v1566_v48, %v3970_v29  ;;  %v1578_v40 = vsel %vm306_vm6, %v3851_v47, %v1566_v48  ;;  %v2289_v62 = vmul.f32 %v2252_v59, %v2229_v17 }
 0x268   : > { %v2198_v58 = vmul.f32 %v2164_v13, %v2138_v19  ;;  %3000 = vmatprep.subr.bf16.mxu0 %v2999_v9  ;;  %v1640_v47 = vmul.f32 %v1612_v61, %v1579_v56  ;;  %v1639_v21 = vmul.f32 %v1608_v41, %v1578_v40  ;;  %v1796_v61 = vrot.slane %v3885_v38, %v3319_v37 }
 0x269   : > { %3002 = vmatpush1.bf16.msra.mxu0 %v3001_v31  ;;  %v1888_v19 = vrot.slane %v3881_v32, %v3319_v37 }
 0x26a   : > { %v3992_v4 = vpop.permute.xlu1 %1659  ;;  %v3994_v10 = vpop.permute.xlu0 %2217  ;;  %v3003_v11 = vpack.c.bf16 %v2198_v58, %v2106_v46  ;;  %v3009_v31 = vpack.c.bf16 %v1731_v28, %v1639_v21  ;;  %v2080_v21 = vrot.slane %v3937_v23, %v3319_v37 }
 0x26b   : > { %v1671_v14 = vsel %vm399_vm0, %v1658_v0, %v3992_v4  ;;  %v2230_v13 = vsel %vm1123_vm7, %v2216_v36, %v3994_v10  ;;  %v1884_v0 = vrot.slane %v3881_v32, %v3312_v33  ;;  %v1854_v36 = vsel %vm635_vm2, %v3901_v2, %v3927_v3 }
 0x26c   : > { %v1732_v48 = vmul.f32 %v1704_v1, %v1671_v14  ;;  %v2290_v35 = vmul.f32 %v2256_v43, %v2230_v13  ;;  %3004 = vmatprep.subr.bf16.mxu0 %v3003_v11  ;;  %v1792_v1 = vrot.slane %v3885_v38, %v3312_v33  ;;  %v1762_v2 = vsel %vm517_vm1, %v3887_v42, %v3911_v26 }
 0x26d   : > { %3006 = vmatpush1.bf16.msra.mxu0 %v3005_v53  ;;  %v1915_v43 = vmul.f32 %v1884_v0, %v1854_v36 }
 0x26e   : > { %v4002_v8 = vpop.permute.xlu1 %1751  ;;  %2404 = vmatprep.subr.mxu0 %v2290_v35  ;;  %v1944_v20 = vpop.permute.xlu0 %1943  ;;  %v3007_v9 = vpack.c.bf16 %v1732_v48, %v1640_v47  ;;  %v1823_v40 = vmul.f32 %v1792_v1, %v1762_v2  ;;  %v2172_v47 = vrot.slane %v3931_v45, %v3319_v37  ;;  %v1988_v48 = vrot.slane %v3913_v27, %v3319_v37 }
 0x26f   : > { %v1763_v15 = vsel %vm517_vm1, %v3911_v26, %v4002_v8  ;;  %v1955_v17 = vsel %vm769_vm3, %v3939_v24, %v1944_v20 }
 0x270   : > { %3008 = vmatprep.subr.bf16.mxu1 %v3007_v9  ;;  %v1824_v34 = vmul.f32 %v1796_v61, %v1763_v15  ;;  %v3013_v26 = vpack.c.bf16 %v1915_v43, %v1823_v40  ;;  %v2168_v9 = vrot.slane %v3931_v45, %v3312_v33 }
 0x271   : > { %2405 = vmatpush1.msra.mxu0 %v2289_v62  ;;  %3010 = vmatpush1.bf16.msra.mxu1 %v3009_v31 }
 0x272   : > { %v4026_v46 = vpop.permute.xlu1 %1843  ;;  %2967 = vmatmul.mubr.msk.f32.vlgmr.msra.gmra.mrb[4].mxu0 %vm2384_vm10, %v4009_v39  ;;  %v4030_v58 = vpop.permute.xlu0 %2037 }
 0x273   : > { %v1855_v41 = vsel %vm635_vm2, %v3927_v3, %v4026_v46  ;;  %2594 = vmatprep.mubr.f32.mxu0 %v3096_v18  ;;  %v1984_v3 = vrot.slane %v3913_v27, %v3312_v33 }
 0x274   : > { %v1916_v56 = vmul.f32 %v1888_v19, %v1855_v41  ;;  %v2076_v19 = vrot.slane %v3937_v23, %v3312_v33 }
 0x275   : > { %v2015_v0 = vmul.f32 %v1984_v3, %v1955_v17 }
 0x276   : > { %v2036_v59 = vpop.permute.xlu1 %2035  ;;  %v4036_v11 = vpop.permute.xlu0 %2129  ;;  %v3011_v42 = vpack.c.bf16 %v1916_v56, %v1824_v34  ;;  %v2264_v34 = vrot.slane %v3966_v30, %v3319_v37 }
 0x277   : > { %v2048_v24 = vsel %vm887_vm4, %v2036_v59, %v4030_v58  ;;  %v2047_v2 = vsel %vm887_vm4, %v3941_v52, %v2036_v59  ;;  %v1708_v52 = vrot.slane %v3843_v57, %v3489_v49 }
 0x278   : > { %3012 = vmatprep.subr.bf16.mxu1 %v3011_v42  ;;  %v2108_v43 = vmul.f32 %v2080_v21, %v2048_v24  ;;  %v1616_v42 = vrot.slane %v3845_v12, %v3489_v49  ;;  %v2107_v59 = vmul.f32 %v2076_v19, %v2047_v2 }
 0x279   : > { %3014 = vmatpush1.bf16.msra.mxu1 %v3013_v26  ;;  %v1620_v26 = vrot.slane %v3845_v12, %v3496_v60 }
 0x27a   : > { %v2128_v28 = vpop.permute.xlu1 %2127  ;;  %v4038_v53 = vpop.permute.xlu0 %2221 }
 0x27b   : > { %v2140_v35 = vsel %vm1005_vm5, %v2128_v28, %v4036_v11  ;;  %v2139_v36 = vsel %vm1005_vm5, %v3972_v63, %v2128_v28 }
 0x27c   : > { %v2200_v1 = vmul.f32 %v2172_v47, %v2140_v35  ;;  %v2199_v41 = vmul.f32 %v2168_v9, %v2139_v36  ;;  %v2260_v47 = vrot.slane %v3966_v30, %v3312_v33 }
 0x27e   : > { %v2220_v14 = vpop.permute.xlu1 %2219  ;;  %v4040_v13 = vpop.permute.xlu0 %1753  ;;  %v3019_v28 = vpack.c.bf16 %v2200_v1, %v2108_v43  ;;  %v3021_v17 = vpack.c.bf16 %v2199_v41, %v2107_v59  ;;  %v1896_v41 = vrot.slane %v3881_v32, %v3496_v60 }
 0x27f   : > { %v2232_v37 = vsel %vm1123_vm7, %v2220_v14, %v4038_v53  ;;  %v2231_v21 = vsel %vm1123_vm7, %v3994_v10, %v2220_v14  ;;  %v1892_v10 = vrot.slane %v3881_v32, %v3489_v49  ;;  %v1804_v14 = vrot.slane %v3885_v38, %v3496_v60 }
 0x280   : > { %v2292_v9 = vmul.f32 %v2264_v34, %v2232_v37  ;;  %v2291_v43 = vmul.f32 %v2260_v47, %v2231_v21  ;;  %v1800_v34 = vrot.slane %v3885_v38, %v3489_v49 }
 0x282   : > { %v4056_v31 = vpop.permute.xlu1 %1945  ;;  %v1846_v62 = vpop.permute.xlu0 %1845 }
 0x283   : > { %v1956_v61 = vsel %vm769_vm3, %v1944_v20, %v4056_v31  ;;  %v3017_v20 = vpack.c.bf16 %v2015_v0, %v3707_v54 }
 0x284   : > { %v2016_v15 = vmul.f32 %v1988_v48, %v1956_v61 }
 0x286   : > { %v1570_v56 = vpop.permute.xlu1 %1569  ;;  %v4070_v40 = vpop.permute.xlu0 %1571  ;;  %v3015_v63 = vpack.c.bf16 %v2016_v15, %v3730_v50  ;;  %v1712_v50 = vrot.slane %v3843_v57, %v3496_v60 }
 0x287   : > { %v1580_v54 = vsel %vm306_vm6, %v3970_v29, %v1570_v56  ;;  %v1581_v3 = vsel %vm306_vm6, %v1570_v56, %v4070_v40 }
 0x288   : > { %3016 = vmatprep.subr.bf16.mxu1 %v3015_v63  ;;  %v1641_v24 = vmul.f32 %v1616_v42, %v1580_v54  ;;  %v1642_v36 = vmul.f32 %v1620_v26, %v1581_v3 }
 0x289   : > { %3018 = vmatpush1.bf16.msra.mxu1 %v3017_v20 }
 0x28a   : > { %v1662_v48 = vpop.permute.xlu1 %1661  ;;  %3020 = vmatprep.subr.bf16.mxu1 %v3019_v28  ;;  %v1664_v35 = vpop.permute.xlu0 %1663 }
 0x28b   : > { %v1672_v0 = vsel %vm399_vm0, %v3992_v4, %v1662_v48  ;;  %v1673_v29 = vsel %vm399_vm0, %v1662_v48, %v1664_v35  ;;  %v1856_v4 = vsel %vm635_vm2, %v4026_v46, %v1846_v62  ;;  %v1764_v46 = vsel %vm517_vm1, %v4002_v8, %v4040_v13 }
 0x28c   : > { %v1733_v61 = vmul.f32 %v1708_v52, %v1672_v0  ;;  %v1734_v19 = vmul.f32 %v1712_v50, %v1673_v29  ;;  %v1917_v42 = vmul.f32 %v1892_v10, %v1856_v4  ;;  %v1825_v37 = vmul.f32 %v1800_v34, %v1764_v46 }
 0x28d   : > { %3022 = vmatpush1.bf16.msra.mxu1 %v3021_v17  ;;  %v1628_v48 = vrot.slane %v3845_v12, %v3596_v25  ;;  %v1996_v0 = vrot.slane %v3913_v27, %v3496_v60  ;;  %v1720_v29 = vrot.slane %v3843_v57, %v3596_v25 }
 0x28e   : > { %v3025_v1 = vpack.c.bf16 %v1733_v61, %v1641_v24  ;;  %v4095_v15 = vpop.permute.xlu1 %1755  ;;  %2475 = vmatprep.subr.mxu1 %v2292_v9  ;;  %v1948_v33 = vpop.permute.xlu0 %1947  ;;  %v3023_v2 = vpack.c.bf16 %v1734_v19, %v1642_v36  ;;  %v3029_v3 = vpack.c.bf16 %v1917_v42, %v1825_v37  ;;  %v1624_v24 = vrot.slane %v3845_v12, %v3589_v44 }
 0x28f   : > { %v1765_v56 = vsel %vm517_vm1, %v4040_v13, %v4095_v15  ;;  %v1957_v21 = vsel %vm769_vm3, %v4056_v31, %v1948_v33 }
 0x290   : > { %3024 = vmatprep.subr.bf16.mxu0 %v3023_v2  ;;  %v1826_v52 = vmul.f32 %v1804_v14, %v1765_v56 }
 0x291   : > { %2476 = vmatpush1.msra.mxu1 %v2291_v43  ;;  %3026 = vmatpush1.bf16.msra.mxu0 %v3025_v1 }
 0x292   : > { %v1848_v63 = vpop.permute.xlu1 %1847  ;;  %2968 = vmatmul.mubr.msk.f32.vlgmr.msra.gmra.mrb[4].mxu1 %vm2384_vm10, %v4009_v39  ;;  %v1758_v20 = vpop.permute.xlu0 %1757 }
 0x293   : > { %v1857_v26 = vsel %vm635_vm2, %v1846_v62, %v1848_v63  ;;  %2665 = vmatprep.mubr.f32.mxu1 %v3096_v18  ;;  %v1992_v62 = vrot.slane %v3913_v27, %v3489_v49  ;;  %v1716_v18 = vrot.slane %v3843_v57, %v3589_v44 }
 0x294   : > { %v1918_v59 = vmul.f32 %v1896_v41, %v1857_v26 }
 0x295   : > { %v2017_v2 = vmul.f32 %v1992_v62, %v1957_v21 }
 0x296   : > { %v4117_v28 = vpop.permute.xlu1 %2039  ;;  %v1850_v50 = vpop.permute.xlu0 %1849  ;;  %v3027_v54 = vpack.c.bf16 %v1918_v59, %v1826_v52  ;;  %v1904_v52 = vrot.slane %v3881_v32, %v3596_v25  ;;  %v2088_v59 = vrot.slane %v3937_v23, %v3496_v60 }
 0x297   : > { %v3033_v46 = vpack.c.bf16 %v2017_v2, %v3745_v22  ;;  %v1858_v26 = vsel %vm635_vm2, %v1848_v63, %v1850_v50  ;;  %v1808_v22 = vrot.slane %v3885_v38, %v3589_v44  ;;  %v1766_v63 = vsel %vm517_vm1, %v4095_v15, %v1758_v20 }
 0x298   : > { %3028 = vmatprep.subr.bf16.mxu0 %v3027_v54  ;;  %v2176_v54 = vrot.slane %v3931_v45, %v3489_v49 }
 0x299   : > { %3030 = vmatpush1.bf16.msra.mxu0 %v3029_v3  ;;  %v2000_v3 = vrot.slane %v3913_v27, %v3589_v44 }
 0x29a   : > { %v1574_v8 = vpop.permute.xlu1 %1573  ;;  %v4119_v13 = vpop.permute.xlu0 %2041 }
 0x29b   : > { %v1582_v61 = vsel %vm306_vm6, %v4070_v40, %v1574_v8  ;;  %v1900_v40 = vrot.slane %v3881_v32, %v3589_v44 }
 0x29c   : > { %v1643_v57 = vmul.f32 %v1624_v24, %v1582_v61  ;;  %v2188_v24 = vrot.slane %v3931_v45, %v3596_v25 }
 0x29e   : > { %v1666_v17 = vpop.permute.xlu1 %1665  ;;  %v1576_v47 = vpop.permute.xlu0 %1575 }
 0x29f   : > { %v1674_v9 = vsel %vm399_vm0, %v1664_v35, %v1666_v17  ;;  %v1583_v36 = vsel %vm306_vm6, %v1574_v8, %v1576_v47 }
 0x2a0   : > { %v1735_v31 = vmul.f32 %v1716_v18, %v1674_v9  ;;  %v1644_v10 = vmul.f32 %v1628_v48, %v1583_v36  ;;  %v1827_v9 = vmul.f32 %v1808_v22, %v1766_v63  ;;  %v2280_v63 = vrot.slane %v3966_v30, %v3596_v25 }
 0x2a2   : > { %v1950_v19 = vpop.permute.xlu1 %1949  ;;  %v1668_v1 = vpop.permute.xlu0 %1667  ;;  %v3041_v42 = vpack.c.bf16 %v1735_v31, %v1643_v57 }
 0x2a3   : > { %v1958_v35 = vsel %vm769_vm3, %v1948_v33, %v1950_v19  ;;  %v1675_v43 = vsel %vm399_vm0, %v1666_v17, %v1668_v1  ;;  %v1812_v33 = vrot.slane %v3885_v38, %v3596_v25  ;;  %v2180_v38 = vrot.slane %v3931_v45, %v3496_v60 }
 0x2a4   : > { %v2018_v4 = vmul.f32 %v1996_v0, %v1958_v35  ;;  %v1736_v14 = vmul.f32 %v1720_v29, %v1675_v43  ;;  %v1919_v17 = vmul.f32 %v1900_v40, %v1858_v26  ;;  %v2050_v0 = vsel %vm887_vm4, %v4117_v28, %v4119_v13 }
 0x2a5   : > { %v2110_v43 = vmul.f32 %v2088_v59, %v2050_v0 }
 0x2a6   : > { %v1760_v41 = vpop.permute.xlu1 %1759  ;;  %v2132_v34 = vpop.permute.xlu0 %2131  ;;  %v3031_v12 = vpack.c.bf16 %v2018_v4, %v3768_v51  ;;  %v3039_v56 = vpack.c.bf16 %v1736_v14, %v1644_v10  ;;  %v2004_v51 = vrot.slane %v3913_v27, %v3596_v25  ;;  %v2084_v27 = vrot.slane %v3937_v23, %v3489_v49 }
 0x2a7   : > { %v1767_v37 = vsel %vm517_vm1, %v1758_v20, %v1760_v41  ;;  %v2141_v47 = vsel %vm1005_vm5, %v4036_v11, %v2132_v34  ;;  %v2184_v11 = vrot.slane %v3931_v45, %v3589_v44  ;;  %v3045_v1 = vpack.c.bf16 %v1919_v17, %v1827_v9 }
 0x2a8   : > { %3032 = vmatprep.subr.bf16.mxu0 %v3031_v12  ;;  %3040 = vmatprep.subr.bf16.mxu1 %v3039_v56  ;;  %v1828_v15 = vmul.f32 %v1812_v33, %v1767_v37  ;;  %v2201_v2 = vmul.f32 %v2176_v54, %v2141_v47  ;;  %v2272_v12 = vrot.slane %v3966_v30, %v3496_v60 }
 0x2a9   : > { %3034 = vmatpush1.bf16.msra.mxu0 %v3033_v46  ;;  %3042 = vmatpush1.bf16.msra.mxu1 %v3041_v42  ;;  %v2276_v37 = vrot.slane %v3966_v30, %v3589_v44 }
 0x2aa   : > { %v1852_v32 = vpop.permute.xlu1 %1851  ;;  %v1952_v8 = vpop.permute.xlu0 %1951 }
 0x2ab   : > { %v1859_v62 = vsel %vm635_vm2, %v1850_v50, %v1852_v32  ;;  %v1968_v18 = vsel %vm769_vm3, %v1952_v8, 0.0  ;;  %v1959_v48 = vsel %vm769_vm3, %v1950_v19, %v1952_v8  ;;  %v2049_v50 = vsel %vm887_vm4, %v4030_v58, %v4117_v28 }
 0x2ac   : > { %v1920_v20 = vmul.f32 %v1904_v52, %v1859_v62  ;;  %v2020_v21 = vmul.f32 %v2004_v51, %v1968_v18  ;;  %v2092_v19 = vrot.slane %v3937_v23, %v3589_v44  ;;  %v2019_v31 = vmul.f32 %v2000_v3, %v1959_v48 }
 0x2ad   : > { %v2096_v58 = vrot.slane %v3937_v23, %v3596_v25  ;;  %v2109_v4 = vmul.f32 %v2084_v27, %v2049_v50 }
 0x2ae   : > { %v2134_v29 = vpop.permute.xlu1 %2133  ;;  %v2136_v36 = vpop.permute.xlu0 %2135  ;;  %v3043_v61 = vpack.c.bf16 %v1920_v20, %v1828_v15  ;;  %v3047_v28 = vpack.c.bf16 %v2020_v21, %v3798_v55  ;;  %v3049_v23 = vpack.c.bf16 %v2019_v31, %v3783_v16 }
 0x2af   : > { %v2142_v35 = vsel %vm1005_vm5, %v2132_v34, %v2134_v29  ;;  %v2143_v45 = vsel %vm1005_vm5, %v2134_v29, %v2136_v36  ;;  %v2152_v14 = vsel %vm1005_vm5, %v2136_v36, 0.0  ;;  %v2268_v34 = vrot.slane %v3966_v30, %v3489_v49 }
 0x2b0   : > { %v2202_v10 = vmul.f32 %v2180_v38, %v2142_v35  ;;  %3044 = vmatprep.subr.bf16.mxu1 %v3043_v61  ;;  %v3037_v56 = vpack.c.bf16 %v2201_v2, %v2109_v4  ;;  %v2203_v40 = vmul.f32 %v2184_v11, %v2143_v45  ;;  %v2204_v42 = vmul.f32 %v2188_v24, %v2152_v14 }
 0x2b1   : > { %3046 = vmatpush1.bf16.msra.mxu1 %v3045_v1 }
 0x2b2   : > { %v2044_v57 = vpop.permute.xlu1 %2043  ;;  %3048 = vmatprep.subr.bf16.mxu1 %v3047_v28  ;;  %v3035_v41 = vpack.c.bf16 %v2202_v10, %v2110_v43  ;;  %v2226_v49 = vpop.permute.xlu0 %2225 }
 0x2b3   : > { %v2051_v55 = vsel %vm887_vm4, %v4119_v13, %v2044_v57  ;;  %v2060_v46 = vsel %vm887_vm4, %v2044_v57, 0.0 }
 0x2b4   : > { %v2111_v33 = vmul.f32 %v2092_v19, %v2051_v55  ;;  %v2112_v26 = vmul.f32 %v2096_v58, %v2060_v46  ;;  %3036 = vmatprep.subr.bf16.mxu0 %v3035_v41 }
 0x2b5   : > { %3038 = vmatpush1.bf16.msra.mxu0 %v3037_v56  ;;  %3050 = vmatpush1.bf16.msra.mxu1 %v3049_v23 }
 0x2b6   : > { %v3053_v52 = vpack.c.bf16 %v2203_v40, %v2111_v33  ;;  %v2224_v51 = vpop.permute.xlu1 %2223  ;;  %v3051_v22 = vpack.c.bf16 %v2204_v42, %v2112_v26 }
 0x2b7   : > { %v2233_v60 = vsel %vm1123_vm7, %v4038_v53, %v2224_v51  ;;  %v2234_v16 = vsel %vm1123_vm7, %v2224_v51, %v2226_v49 }
 0x2b8   : > { %v2293_v59 = vmul.f32 %v2268_v34, %v2233_v60  ;;  %v2294_v13 = vmul.f32 %v2272_v12, %v2234_v16  ;;  %3052 = vmatprep.subr.bf16.mxu1 %v3051_v22 }
 0x2b9   : > { %3054 = vmatpush1.bf16.msra.mxu1 %v3053_v52 }
 0x2ba   : > { %v2228_v54 = vpop.permute.xlu1 %2227  ;;  %2546 = vmatprep.subr.mxu0 %v2294_v13 }
 0x2bb   : > { %v2235_v32 = vsel %vm1123_vm7, %v2226_v49, %v2228_v54  ;;  %v2244_v3 = vsel %vm1123_vm7, %v2228_v54, 0.0  ;;  %2547 = vmatpush1.msra.mxu0 %v2293_v59 }
 0x2bc   : > { %v2295_v53 = vmul.f32 %v2276_v37, %v2235_v32  ;;  %v2296_v8 = vmul.f32 %v2280_v63, %v2244_v3  ;;  %2969 = vmatmul.mubr.msk.f32.vlgmr.msra.gmra.mrb[6].mxu0 %vm2384_vm10, %v4009_v39 }
 0x2be   : > { %2617 = vmatprep.subr.mxu1 %v2296_v8 }
 0x2bf   : > { %2618 = vmatpush1.msra.mxu1 %v2295_v53 }
 0x2c0   : > { %2970 = vmatmul.mubr.msk.f32.vlgmr.msra.gmra.mrb[6].mxu1 %vm2384_vm10, %v4009_v39 }
 0x2c3   : > { %v2382_v44 = vpop.permute.xlu0 %2381 }
 0x345   : > { %v2454_v25 = vpop.f32.mrb[4].mxu0 }
 0x346   : > { %v2455_v30 = vadd.f32 %v2454_v25, %v2382_v44  ;;  %v2456_v38 = vpop.f32.mrb[5].mxu0 }
 0x347   : > { %v2457_v17 = vadd.f32 %v2456_v38, %v2382_v44 }
 0x349   : > { %v2680_v47 = vcombine.low %v2455_v30, %v2457_v17 }
 0x34b   : > { %v2688_v21 = vrot.slane %v2680_v47, %v3152_v5 }
 0x365   : > { %v2525_v62 = vpop.f32.mrb[4].mxu1 }
 0x366   : > { %v2526_v18 = vadd.f32 %v2525_v62, %v2382_v44  ;;  %v2527_v15 = vpop.f32.mrb[5].mxu1 }
 0x367   : > { %v2528_v20 = vadd.f32 %v2527_v15, %v2382_v44 }
 0x369   : > { %v2681_v48 = vcombine.low %v2526_v18, %v2528_v20 }
 0x36b   : > { %v2695_v9 = vrot.slane %v2681_v48, %v3152_v5 }
 0x36d   : > { %v2696_v27 = vcombine.low %v2688_v21, %v2695_v9 }
 0x36f   : > { %v4214_v0 = vadd.f32 %v2696_v27, %v3154_v6 }
 0x371   : > { %v4217_v39 = vrot.slane %v4214_v0, 4  ;;  %v2718_v50 = vmul.f32 %v4214_v0, %v4214_v0 }
 0x373   : > { %v2749_v11 = vmul.f32 %v4217_v39, %v4217_v39  ;;  %v2726_v24 = vrot.slane %v2718_v50, %v3152_v5 }
 0x375   : > { %v2757_v29 = vrot.slane %v2749_v11, %v3152_v5  ;;  %v2727_v2 = vcombine.high %v2726_v24, %v2726_v24  ;;  %v2730_v35 = vsel %vm1236_vm8, %v2726_v24, 0.0 }
 0x376   : > { %v2731_v41 = vrot.slane %v2730_v35, 4 }
 0x377   : > { %v2758_v61 = vcombine.high %v2757_v29, %v2757_v29  ;;  %v2761_v31 = vsel %vm1236_vm8, %v2757_v29, 0.0  ;;  %v2737_v45 = vsel %vm1236_vm8, %v2727_v2, 0.0 }
 0x378   : > { %v2762_v14 = vrot.slane %v2761_v31, 4  ;;  %v2738_v56 = vrot.slane %v2737_v45, 4  ;;  %v2732_v40 = vadd.f32 %v2731_v41, %v2730_v35 }
 0x379   : > { %v2768_v58 = vsel %vm1236_vm8, %v2758_v61, 0.0 }
 0x37a   : > { %v2769_v34 = vrot.slane %v2768_v58, 4  ;;  %v2763_v23 = vadd.f32 %v2762_v14, %v2761_v31  ;;  %v2739_v26 = vadd.f32 %v2738_v56, %v2737_v45  ;;  %v2733_v51 = vrot.slane %v2732_v40, 2 }
 0x37c   : > { %v2770_v42 = vadd.f32 %v2769_v34, %v2768_v58  ;;  %v2764_v52 = vrot.slane %v2763_v23, 2  ;;  %v2740_v59 = vrot.slane %v2739_v26, 2  ;;  %v2734_v54 = vadd.f32 %v2733_v51, %v2732_v40 }
 0x37e   : > { %v2771_v22 = vrot.slane %v2770_v42, 2  ;;  %v2765_v13 = vadd.f32 %v2764_v52, %v2763_v23  ;;  %v2741_v8 = vadd.f32 %v2740_v59, %v2739_v26  ;;  %v2735_v15 = vrot.slane %v2734_v54, 1 }
 0x380   : > { %v2772_v32 = vadd.f32 %v2771_v22, %v2770_v42  ;;  %v2766_v25 = vrot.slane %v2765_v13, 1  ;;  %v2742_v50 = vrot.slane %v2741_v8, 1 }
 0x382   : > { %v2773_v20 = vrot.slane %v2772_v32, 1  ;;  %v2767_v29 = vadd.f32 %v2766_v25, %v2765_v13 }
 0x384   : > { %v2774_v2 = vadd.f32 %v2773_v20, %v2772_v32 }
 0x38f   : > { %v2596_v36 = vpop.f32.mrb[6].mxu0 }
 0x390   : > { %v2597_v19 = vadd.f32 %v2596_v36, %v2382_v44  ;;  %v2598_v1 = vpop.f32.mrb[7].mxu0 }
 0x391   : > { %v2599_v6 = vadd.f32 %v2598_v1, %v2382_v44  ;;  %v2736_v1 = vadd.f32 %v2735_v15, %v2734_v54 }
 0x393   : > { %v2697_v43 = vcombine.low %v2597_v19, %v2599_v6  ;;  %v2667_v10 = vpop.f32.mrb[6].mxu1  ;;  %v2775_v58 = vadd.f32 %v2767_v29, %v2736_v1 }
 0x394   : > { %v2668_v28 = vadd.f32 %v2667_v10, %v2382_v44  ;;  %v2669_v4 = vpop.f32.mrb[7].mxu1  ;;  %v2743_v10 = vadd.f32 %v2742_v50, %v2741_v8 }
 0x395   : > { %v2670_v57 = vadd.f32 %v2669_v4, %v2382_v44  ;;  %v2705_v55 = vrot.slane %v2697_v43, %v3152_v5 }
 0x397   : > { %v2698_v12 = vcombine.low %v2668_v28, %v2670_v57  ;;  %v2776_v57 = vadd.f32 %v2774_v2, %v2743_v10 }
 0x399   : > { %v2712_v46 = vrot.slane %v2698_v12, %v3152_v5 }
 0x39b   : > { %v2713_v33 = vcombine.low %v2705_v55, %v2712_v46 }
 0x39d   : > { %v4232_v49 = vadd.f32 %v2713_v33, %v3156_v7 }
 0x39f   : > { %v2777_v60 = vmul.f32 %v4232_v49, %v4232_v49  ;;  %v4237_v16 = vrot.slane %v4232_v49, 4 }
 0x3a1   : > { %v2785_v37 = vrot.slane %v2777_v60, %v3152_v5  ;;  %v2808_v63 = vmul.f32 %v4237_v16, %v4237_v16 }
 0x3a3   : > { %v2786_v3 = vcombine.high %v2785_v37, %v2785_v37  ;;  %v2789_v7 = vsel %vm1236_vm8, %v2785_v37, 0.0  ;;  %v2816_v53 = vrot.slane %v2808_v63, %v3152_v5 }
 0x3a4   : > { %v2790_v44 = vrot.slane %v2789_v7, 4 }
 0x3a5   : > { %v2796_v30 = vsel %vm1236_vm8, %v2786_v3, 0.0  ;;  %v2817_v38 = vcombine.high %v2816_v53, %v2816_v53  ;;  %v2820_v17 = vsel %vm1236_vm8, %v2816_v53, 0.0 }
 0x3a6   : > { %v2791_v47 = vadd.f32 %v2790_v44, %v2789_v7  ;;  %v2797_v62 = vrot.slane %v2796_v30, 4  ;;  %v2821_v18 = vrot.slane %v2820_v17, 4 }
 0x3a7   : > { %v2827_v48 = vsel %vm1236_vm8, %v2817_v38, 0.0 }
 0x3a8   : > { %v2792_v21 = vrot.slane %v2791_v47, 2  ;;  %v2798_v9 = vadd.f32 %v2797_v62, %v2796_v30  ;;  %v2822_v27 = vadd.f32 %v2821_v18, %v2820_v17  ;;  %v2828_v11 = vrot.slane %v2827_v48, 4 }
 0x3aa   : > { %v2793_v24 = vadd.f32 %v2792_v21, %v2791_v47  ;;  %v2799_v36 = vrot.slane %v2798_v9, 2  ;;  %v2823_v61 = vrot.slane %v2822_v27, 2  ;;  %v2829_v19 = vadd.f32 %v2828_v11, %v2827_v48 }
 0x3ac   : > { %v2794_v6 = vrot.slane %v2793_v24, 1  ;;  %v2800_v31 = vadd.f32 %v2799_v36, %v2798_v9  ;;  %v2824_v35 = vadd.f32 %v2823_v61, %v2822_v27  ;;  %v2830_v43 = vrot.slane %v2829_v19, 2 }
 0x3ae   : > { %v2795_v28 = vadd.f32 %v2794_v6, %v2793_v24  ;;  %v2801_v4 = vrot.slane %v2800_v31, 1  ;;  %v2825_v45 = vrot.slane %v2824_v35, 1  ;;  %v2831_v14 = vadd.f32 %v2830_v43, %v2829_v19 }
 0x3b0   : > { %v2802_v41 = vadd.f32 %v2801_v4, %v2800_v31  ;;  %v2803_v34 = vadd.f32 %v2795_v28, %v2775_v58  ;;  %v2826_v12 = vadd.f32 %v2825_v45, %v2824_v35  ;;  %v2832_v56 = vrot.slane %v2831_v14, 1 }
 0x3b2   : > { %v2804_v23 = vadd.f32 %v2802_v41, %v2776_v57  ;;  %v2833_v55 = vadd.f32 %v2832_v56, %v2831_v14  ;;  %v2834_v46 = vadd.f32 %v2826_v12, %v2803_v34 }
 0x3b4   : > { %v2835_v40 = vadd.f32 %v2833_v55, %v2804_v23  ;;  %v2836_v42 = vadd.f32 1e-24, %v2834_v46 }
 0x3b6   : > { %v2837_v33 = vadd.f32 1e-24, %v2835_v40  ;;  %3075 = vrsqrt.f32 %v2836_v42 }
 0x3b8   : > { %3077 = vrsqrt.f32 %v2837_v33 }
 0x3c0   : > { %v3076_v26 = vpop.eup %3075 }
 0x3c2   : > { %v3078_v52 = vpop.eup %3077 }
 0x3c3   : > { %v2842_v51 = vcombine.low %v3076_v26, %v3078_v52 }
 0x3c5   : > { %v2849_v22 = vrot.slane %v2842_v51, %v3152_v5 }
 0x3c7   : > { %v2851_v60 = vmul.f32 %v2849_v22, %v4214_v0  ;;  %v2853_v59 = vmul.f32 %v2849_v22, %v4217_v39  ;;  %v2855_v13 = vmul.f32 %v2849_v22, %v4232_v49  ;;  %v2857_v37 = vmul.f32 %v2849_v22, %v4237_v16 }
 0x3c9   : > { %2852 = vst [vmem:[%s251_s18] sm:$0xf] %v2851_v60  ;;  %2854 = vst [vmem:[%s251_s18 + $0x4] sm:$0xf] %v2853_v59 }
 0x3ca   : > { %2856 = vst [vmem:[%s251_s18 + $0x8] sm:$0xf] %v2855_v13  ;;  %2858 = vst [vmem:[%s251_s18 + $0xc] sm:$0xf] %v2857_v37 }
 0x3cb PF: > { %s16_s21 = sadd.s32 1, %s3085_s21  }
 0x3cc   : > { %p13_p4 = scmp.ge.s32.totalorder %s16_s21, 4  }
 0x3ce   :  { %15 = sbr.rel (!%p13_p4) target bundleno = 1 (0x1), region = 81 }

</bundles_post_ra>
